<compile_context>
chip_gen: v7x
topology: tpu7x:2x2x1
jax: 0.10.0
libtpu: 0.0.40
codegen_flags: <defaults>
</compile_context>

<pallas_src>
import math

import jax
import jax.numpy as jnp
from jax.experimental import pallas as pl
from jax.experimental.pallas import tpu as pltpu

HIDDEN = 256
LOG100 = math.log(100.0)


def _alpha_kernel(s_ref, w1t_ref, b1_ref, w2t_ref, b2_ref, w3_ref, b3_ref,
                  log_alpha_ref):
    # s_ref:         (B, s_dim)                 matmul dtype (bf16 by default)
    # w1t_ref:       (TASK_BLK, s_dim, 256)     matmul dtype (pre-transposed W1)
    # b1_ref:        (TASK_BLK, 1, 256)         f32
    # w2t_ref:       (TASK_BLK, 256, 256)       matmul dtype (pre-transposed W2)
    # b2_ref:        (TASK_BLK, 1, 256)         f32
    # w3_ref:        (TASK_BLK, 1, 256)         f32
    # b3_ref:        (TASK_BLK, 1, 1)           f32
    # log_alpha_ref: (1, TASK_BLK, B)           f32 (task-major, batch on lanes)
    task_blk = w2t_ref.shape[0]
    B, s_dim = s_ref.shape

    # Replicate s across the task block (8 KiB at TASK_BLK=32; one-off, cheap).
    s_b = jnp.broadcast_to(s_ref[...], (task_blk, B, s_dim))

    # ---- layer 1: batched over tasks on the MXU, f32 accumulation ----
    h1 = jnp.einsum('tbk,tkh->tbh', s_b, w1t_ref[...],
                    preferred_element_type=jnp.float32)         # (T, B, 256)
    h1 = jnp.maximum(h1 + b1_ref[...], 0.0)                     # f32 ReLU

    # ---- layer 2: batched over tasks on the MXU, f32 accumulation ----
    h2 = jnp.einsum('tbk,tkh->tbh', h1.astype(s_ref.dtype), w2t_ref[...],
                    preferred_element_type=jnp.float32)         # (T, B, 256)
    h2 = jnp.maximum(h2 + b2_ref[...], 0.0)                     # f32 ReLU

    # ---- layer 3: out_features == 1 -> weighted reduce over hidden (f32) ----
    logits = jnp.sum(h2 * w3_ref[...], axis=-1) + b3_ref[..., 0]   # (T, B)

    # Single store per grid step; exp() is done in the wrapper (fuses with the
    # final reshape/transpose).
    log_alpha_ref[0] = jnp.clip(logits - LOG100, -20.0, 2.0)


def _pick_task_block(n_tasks, s_dim, mm_bytes, cap=32,
                     vmem_budget_bytes=12 << 20, min_groups=2):
    """Largest divisor of n_tasks such that
       (a) blk <= cap,
       (b) double-buffered per-step weight blocks fit `vmem_budget_bytes`
           (<= v5e's 16 MiB scoped-VMEM default, with headroom),
       (c) n_tasks // blk >= min_groups (keep both v7x TCs busy) when possible.
    """
    per_task = 2 * ((HIDDEN * HIDDEN + s_dim * HIDDEN) * mm_bytes   # W2t + W1t
                    + (3 * HIDDEN + 1) * 4)                         # b1,b2,W3,b3 (f32)
    cap = int(max(1, min(cap, n_tasks, vmem_budget_bytes // per_task)))
    divisors = [b for b in range(1, cap + 1) if n_tasks % b == 0]
    ok = [b for b in divisors if n_tasks // b >= min_groups]
    return max(ok) if ok else max(divisors)


def softmax_alpha_forward(s, params, matmul_dtype=jnp.bfloat16, task_block=None,
                          min_groups=2):
    """s: (B, s_dim) float32. Returns (alpha, log_alpha), each (B, n_tasks, 1).

    matmul_dtype=jnp.float32 gives bit-closer parity with the PyTorch module;
    bf16 (default) halves weight DMA bytes on this weight-bandwidth-bound
    kernel.  On v7x an fp8 weight dtype is a further option (gate by
    generation; not portable to v5e/v6e MXUs).
    """
    w1, b1, w2, b2, w3, b3 = params
    B, s_dim = s.shape
    n_tasks = w1.shape[0]
    mm_bytes = jnp.dtype(matmul_dtype).itemsize

    task_blk = (_pick_task_block(n_tasks, s_dim, mm_bytes, min_groups=min_groups)
                if task_block is None else task_block)
    assert n_tasks % task_blk == 0
    n_groups = n_tasks // task_blk

    # One-time layout/dtype prep (folded into parameter layout by XLA):
    #  - pre-transpose W1/W2 so the kernel feeds a contiguous K-major RHS
    #  - cast MXU operands to matmul_dtype (accumulation stays f32 in-kernel)
    s_mm = s.astype(matmul_dtype)
    w1t = jnp.swapaxes(w1, 1, 2).astype(matmul_dtype)    # (n_tasks, s_dim, 256)
    w2t = jnp.swapaxes(w2, 1, 2).astype(matmul_dtype)    # (n_tasks, 256, 256)
    b1r = b1.reshape(n_tasks, 1, HIDDEN).astype(jnp.float32)
    b2r = b2.reshape(n_tasks, 1, HIDDEN).astype(jnp.float32)
    w3r = w3.reshape(n_tasks, 1, HIDDEN).astype(jnp.float32)
    b3r = b3.reshape(n_tasks, 1, 1).astype(jnp.float32)

    grid_spec = pltpu.PrefetchScalarGridSpec(
        num_scalar_prefetch=0,
        grid=(n_groups,),
        in_specs=[
            pl.BlockSpec((B, s_dim), lambda g: (0, 0)),                    # s
            pl.BlockSpec((task_blk, s_dim, HIDDEN), lambda g: (g, 0, 0)),  # W1t
            pl.BlockSpec((task_blk, 1, HIDDEN), lambda g: (g, 0, 0)),      # b1
            pl.BlockSpec((task_blk, HIDDEN, HIDDEN), lambda g: (g, 0, 0)), # W2t
            pl.BlockSpec((task_blk, 1, HIDDEN), lambda g: (g, 0, 0)),      # b2
            pl.BlockSpec((task_blk, 1, HIDDEN), lambda g: (g, 0, 0)),      # W3
            pl.BlockSpec((task_blk, 1, 1), lambda g: (g, 0, 0)),           # b3
        ],
        out_specs=pl.BlockSpec((1, task_blk, B), lambda g: (g, 0, 0)),
    )

    log_alpha_t = pl.pallas_call(
        _alpha_kernel,
        out_shape=jax.ShapeDtypeStruct((n_groups, task_blk, B), jnp.float32),
        grid_spec=grid_spec,
        compiler_params=pltpu.CompilerParams(
            dimension_semantics=("parallel",)),   # task groups split over TCs (v7x)
    )(s_mm, w1t, b1r, w2t, b2r, w3r, b3r)

    # (n_groups, task_blk, B) -> (n_tasks, B) -> (B, n_tasks, 1)  (== .view(-1, n_tasks, 1))
    log_alpha = log_alpha_t.reshape(n_tasks, B).T[..., None]
    alpha = jnp.exp(log_alpha)        # exp done here; fuses with the transpose
    return alpha, log_alpha


def init_params(key, s_dim, n_tasks):
    """Deterministic init matching weights_init_: xavier-uniform weights, zero bias."""
    k1, k2, k3 = jax.random.split(key, 3)

    def xavier(k, shape, fan_in, fan_out):
        bound = math.sqrt(6.0 / (fan_in + fan_out))
        return jax.random.uniform(k, shape, jnp.float32, -bound, bound)

    w1 = xavier(k1, (n_tasks, HIDDEN, s_dim), s_dim, HIDDEN)
    b1 = jnp.zeros((n_tasks, HIDDEN), jnp.float32)
    w2 = xavier(k2, (n_tasks, HIDDEN, HIDDEN), HIDDEN, HIDDEN)
    b2 = jnp.zeros((n_tasks, HIDDEN), jnp.float32)
    w3 = xavier(k3, (n_tasks, 1, HIDDEN), HIDDEN, 1)
    b3 = jnp.zeros((n_tasks, 1), jnp.float32)
    return (w1, b1, w2, b2, w3, b3)


def reference_forward(s, params, matmul_dtype=None):
    """Pure-JAX reference mirroring the PyTorch einsums.

    matmul_dtype=None -> full f32; otherwise the two big matmuls use the same
    reduced-precision operands with f32 accumulation as the kernel.
    """
    w1, b1, w2, b2, w3, b3 = params
    n_tasks = w1.shape[0]
    mm = (lambda a: a) if matmul_dtype is None else (lambda a: a.astype(matmul_dtype))
    x = jnp.einsum('ik,jlk->ijl', mm(s), mm(w1),
                   preferred_element_type=jnp.float32)
    x = jax.nn.relu(x + b1[None])
    x = jnp.einsum('ijk,jlk->ijl', mm(x), mm(w2),
                   preferred_element_type=jnp.float32)
    x = jax.nn.relu(x + b2[None])
    out = jnp.einsum('ijk,jlk->ijl', x, w3,
                     preferred_element_type=jnp.float32) + b3[None]
    log_alpha = jnp.clip(out - LOG100, -20.0, 2.0).reshape(-1, n_tasks, 1)
    return jnp.exp(log_alpha), log_alpha


if __name__ == "__main__":
    B, s_dim, n_tasks = 8, 16, 32   # -> TASK_BLK=16, n_groups=2, grid=(2,)

    key = jax.random.PRNGKey(0)
    k_param, k_s = jax.random.split(key)
    params = init_params(k_param, s_dim, n_tasks)
    s = jax.random.normal(k_s, (B, s_dim), jnp.float32)

    alpha, log_alpha = softmax_alpha_forward(s, params)
    alpha = jax.block_until_ready(alpha)
    log_alpha = jax.block_until_ready(log_alpha)

    assert alpha.shape == (B, n_tasks, 1) and log_alpha.shape == (B, n_tasks, 1)

    # tight check: reference using the same bf16-matmul / f32-accumulate recipe
    a_ref, la_ref = reference_forward(s, params, matmul_dtype=jnp.bfloat16)
    assert jnp.allclose(log_alpha, la_ref, atol=2e-3, rtol=2e-3)
    assert jnp.allclose(alpha, a_ref, atol=2e-3, rtol=2e-3)

    # loose check: full-f32 reference (exact PyTorch-module semantics)
    a_f32, la_f32 = reference_forward(s, params, matmul_dtype=None)
    assert jnp.allclose(log_alpha, la_f32, atol=5e-2, rtol=5e-2)
    assert jnp.allclose(alpha, a_f32, atol=5e-2, rtol=5e-2)

    print("KERNEL_OK")
</pallas_src>

<mosaic_0001>
module attributes {stable_mosaic.version = 11 : i64} {
  func.func @_alpha_kernel(%arg0: i32, %arg1: memref<8x16xbf16, #tpu.memory_space<vmem>>, %arg2: memref<16x16x256xbf16, #tpu.memory_space<vmem>>, %arg3: memref<16x1x256xf32, #tpu.memory_space<vmem>>, %arg4: memref<16x256x256xbf16, #tpu.memory_space<vmem>>, %arg5: memref<16x1x256xf32, #tpu.memory_space<vmem>>, %arg6: memref<16x1x256xf32, #tpu.memory_space<vmem>>, %arg7: memref<16x1x1xf32, #tpu.memory_space<vmem>>, %arg8: memref<1x16x8xf32, #tpu.memory_space<vmem>>) attributes {dimension_semantics = [#tpu.dimension_semantics<parallel>], iteration_bounds = array<i64: 2>, scalar_prefetch = 0 : i64, scratch_operands = 0 : i64, tpu.core_type = #tpu.core_type<tc>, window_params = [{pipeline_mode = #tpu.pipeline_mode<synchronous>, transform_indices = @transform_0, window_bounds = array<i64: 8, 16>}, {transform_indices = @transform_1, window_bounds = array<i64: 16, 16, 256>}, {transform_indices = @transform_2, window_bounds = array<i64: 16, 1, 256>}, {transform_indices = @transform_3, window_bounds = array<i64: 16, 256, 256>}, {transform_indices = @transform_4, window_bounds = array<i64: 16, 1, 256>}, {transform_indices = @transform_5, window_bounds = array<i64: 16, 1, 256>}, {transform_indices = @transform_6, window_bounds = array<i64: 16, 1, 1>}, {transform_indices = @transform_7, window_bounds = array<i64: 1, 16, 8>}]} {
    %c0 = arith.constant 0 : index
    %c0_0 = arith.constant 0 : index
    %0 = vector.load %arg1[%c0, %c0_0] : memref<8x16xbf16, #tpu.memory_space<vmem>>, vector<8x16xbf16>
    %1 = vector.shape_cast %0 : vector<8x16xbf16> to vector<1x8x16xbf16>
    %2 = vector.broadcast %1 : vector<1x8x16xbf16> to vector<16x8x16xbf16>
    %c0_1 = arith.constant 0 : index
    %c0_2 = arith.constant 0 : index
    %c0_3 = arith.constant 0 : index
    %3 = vector.load %arg2[%c0_1, %c0_2, %c0_3] : memref<16x16x256xbf16, #tpu.memory_space<vmem>>, vector<16x16x256xbf16>
    "tpu.trace_start"() <{level = 10 : i32, message = "tbk,tkh->tbh"}> : () -> ()
    %cst = arith.constant dense<0.000000e+00> : vector<16x8x256xf32>
    %4 = tpu.matmul %2, %3, %cst {dimension_numbers = #tpu.dot_dimension_numbers<[2], [1], [1], [2], [0, 0, 0, 1, 1, 2], [0], [0]>} : vector<16x8x16xbf16>, vector<16x16x256xbf16>, vector<16x8x256xf32> -> vector<16x8x256xf32>
    "tpu.trace_stop"() : () -> ()
    %c0_4 = arith.constant 0 : index
    %c0_5 = arith.constant 0 : index
    %c0_6 = arith.constant 0 : index
    %5 = vector.load %arg3[%c0_4, %c0_5, %c0_6] : memref<16x1x256xf32, #tpu.memory_space<vmem>>, vector<16x1x256xf32>
    %6 = vector.broadcast %5 : vector<16x1x256xf32> to vector<16x8x256xf32>
    %7 = arith.addf %4, %6 : vector<16x8x256xf32>
    %cst_7 = arith.constant 0.000000e+00 : f32
    %8 = vector.broadcast %cst_7 : f32 to vector<16x8x256xf32>
    %9 = arith.maximumf %7, %8 : vector<16x8x256xf32>
    %10 = arith.truncf %9 : vector<16x8x256xf32> to vector<16x8x256xbf16>
    %c0_8 = arith.constant 0 : index
    %c0_9 = arith.constant 0 : index
    %c0_10 = arith.constant 0 : index
    %11 = vector.load %arg4[%c0_8, %c0_9, %c0_10] : memref<16x256x256xbf16, #tpu.memory_space<vmem>>, vector<16x256x256xbf16>
    "tpu.trace_start"() <{level = 10 : i32, message = "tbk,tkh->tbh"}> : () -> ()
    %cst_11 = arith.constant dense<0.000000e+00> : vector<16x8x256xf32>
    %12 = tpu.matmul %10, %11, %cst_11 {dimension_numbers = #tpu.dot_dimension_numbers<[2], [1], [1], [2], [0, 0, 0, 1, 1, 2], [0], [0]>} : vector<16x8x256xbf16>, vector<16x256x256xbf16>, vector<16x8x256xf32> -> vector<16x8x256xf32>
    "tpu.trace_stop"() : () -> ()
    %c0_12 = arith.constant 0 : index
    %c0_13 = arith.constant 0 : index
    %c0_14 = arith.constant 0 : index
    %13 = vector.load %arg5[%c0_12, %c0_13, %c0_14] : memref<16x1x256xf32, #tpu.memory_space<vmem>>, vector<16x1x256xf32>
    %14 = vector.broadcast %13 : vector<16x1x256xf32> to vector<16x8x256xf32>
    %15 = arith.addf %12, %14 : vector<16x8x256xf32>
    %cst_15 = arith.constant 0.000000e+00 : f32
    %16 = vector.broadcast %cst_15 : f32 to vector<16x8x256xf32>
    %17 = arith.maximumf %15, %16 : vector<16x8x256xf32>
    %c0_16 = arith.constant 0 : index
    %c0_17 = arith.constant 0 : index
    %c0_18 = arith.constant 0 : index
    %18 = vector.load %arg6[%c0_16, %c0_17, %c0_18] : memref<16x1x256xf32, #tpu.memory_space<vmem>>, vector<16x1x256xf32>
    %19 = vector.broadcast %18 : vector<16x1x256xf32> to vector<16x8x256xf32>
    %20 = arith.mulf %17, %19 : vector<16x8x256xf32>
    %cst_19 = arith.constant dense<0.000000e+00> : vector<16x8xf32>
    %21 = vector.multi_reduction <add>, %20, %cst_19 [2] : vector<16x8x256xf32> to vector<16x8xf32>
    %c0_20 = arith.constant 0 : index
    %c0_21 = arith.constant 0 : index
    %c0_22 = arith.constant 0 : index
    %22 = vector.load %arg7[%c0_20, %c0_21, %c0_22] : memref<16x1x1xf32, #tpu.memory_space<vmem>>, vector<16x1x1xf32>
    %23 = vector.shape_cast %22 : vector<16x1x1xf32> to vector<16x1xf32>
    %24 = vector.broadcast %23 : vector<16x1xf32> to vector<16x8xf32>
    %25 = arith.addf %21, %24 : vector<16x8xf32>
    %cst_23 = arith.constant 4.60517025 : f32
    %26 = vector.broadcast %cst_23 : f32 to vector<16x8xf32>
    %27 = arith.subf %25, %26 : vector<16x8xf32>
    %cst_24 = arith.constant -2.000000e+01 : f32
    %cst_25 = arith.constant 2.000000e+00 : f32
    %28 = vector.broadcast %cst_24 : f32 to vector<16x8xf32>
    %29 = arith.maximumf %28, %27 : vector<16x8xf32>
    %30 = vector.broadcast %cst_25 : f32 to vector<16x8xf32>
    %31 = arith.minimumf %30, %29 : vector<16x8xf32>
    %c0_26 = arith.constant 0 : index
    %c0_27 = arith.constant 0 : index
    %c0_28 = arith.constant 0 : index
    %32 = vector.load %arg8[%c0_26, %c0_27, %c0_28] : memref<1x16x8xf32, #tpu.memory_space<vmem>>, vector<1x16x8xf32>
    %33 = vector.shape_cast %32 : vector<1x16x8xf32> to vector<16x8xf32>
    %34 = vector.shape_cast %31 : vector<16x8xf32> to vector<1x16x8xf32>
    tpu.vector_store %arg8[%c0_26, %c0_27, %c0_28], %34 {strides = array<i32>} : memref<1x16x8xf32, #tpu.memory_space<vmem>>, vector<1x16x8xf32>,
    return
  }
  func.func @transform_0(%arg0: i32) -> (i32, i32) {
    %c0_i32 = arith.constant 0 : i32
    %c0_i32_0 = arith.constant 0 : i32
    %c0_i32_1 = arith.constant 0 : i32
    return %c0_i32, %c0_i32_0 : i32, i32
  }
  func.func @transform_1(%arg0: i32) -> (i32, i32, i32) {
    %c0_i32 = arith.constant 0 : i32
    %c0_i32_0 = arith.constant 0 : i32
    %c0_i32_1 = arith.constant 0 : i32
    return %arg0, %c0_i32, %c0_i32_0 : i32, i32, i32
  }
  func.func @transform_2(%arg0: i32) -> (i32, i32, i32) {
    %c0_i32 = arith.constant 0 : i32
    %c0_i32_0 = arith.constant 0 : i32
    %c0_i32_1 = arith.constant 0 : i32
    return %arg0, %c0_i32, %c0_i32_0 : i32, i32, i32
  }
  func.func @transform_3(%arg0: i32) -> (i32, i32, i32) {
    %c0_i32 = arith.constant 0 : i32
    %c0_i32_0 = arith.constant 0 : i32
    %c0_i32_1 = arith.constant 0 : i32
    return %arg0, %c0_i32, %c0_i32_0 : i32, i32, i32
  }
  func.func @transform_4(%arg0: i32) -> (i32, i32, i32) {
    %c0_i32 = arith.constant 0 : i32
    %c0_i32_0 = arith.constant 0 : i32
    %c0_i32_1 = arith.constant 0 : i32
    return %arg0, %c0_i32, %c0_i32_0 : i32, i32, i32
  }
  func.func @transform_5(%arg0: i32) -> (i32, i32, i32) {
    %c0_i32 = arith.constant 0 : i32
    %c0_i32_0 = arith.constant 0 : i32
    %c0_i32_1 = arith.constant 0 : i32
    return %arg0, %c0_i32, %c0_i32_0 : i32, i32, i32
  }
  func.func @transform_6(%arg0: i32) -> (i32, i32, i32) {
    %c0_i32 = arith.constant 0 : i32
    %c0_i32_0 = arith.constant 0 : i32
    %c0_i32_1 = arith.constant 0 : i32
    return %arg0, %c0_i32, %c0_i32_0 : i32, i32, i32
  }
  func.func @transform_7(%arg0: i32) -> (i32, i32, i32) {
    %c0_i32 = arith.constant 0 : i32
    %c0_i32_0 = arith.constant 0 : i32
    %c0_i32_1 = arith.constant 0 : i32
    return %arg0, %c0_i32, %c0_i32_0 : i32, i32, i32
  }
}

</mosaic_0001>

<bundles_post_ra>
// kernel: tpu_custom_call.1
= control target key start
LH: loop header
LB: loop body
LE: loop exit
PB: predicated region body
PF: predicated region fallthrough
CT: control target
= control target key end

     0   :  { %s9792_s0 = inlined_call_operand.hbm [shape: bf16[8,16], index: 0, kind: input, shape index: {}]   ;;  %s9793_s1 = inlined_call_operand.hbm [shape: bf16[32,16,256], index: 1, kind: input, shape index: {}]   ;;  %s9794_s2 = inlined_call_operand.hbm [shape: f32[32,1,256], index: 2, kind: input, shape index: {}]   ;;  %s9795_s3 = inlined_call_operand.hbm [shape: bf16[32,256,256], index: 3, kind: input, shape index: {}]   ;;  %s9796_s4 = inlined_call_operand.hbm [shape: f32[32,1,256], index: 4, kind: input, shape index: {}]   ;;  %s9797_s5 = inlined_call_operand.hbm [shape: f32[32,1,256], index: 5, kind: input, shape index: {}]   ;;  %s9798_s6 = inlined_call_operand.vmem [shape: f32[32,1,1], index: 6, kind: input, shape index: {}]   ;;  %s9799_s7 = inlined_call_operand.vmem [shape: f32[2,16,8], index: 7, kind: output, shape index: {}]  }
   0x1   :  { %9807 = sst [smem:[#allocation17_spill]] %s9793_s1 }
   0x2   :  { %9808 = sst [smem:[#allocation18_spill]] %s9795_s3 }
   0x3   :  { %12 = vsyncpa [#allocation3], 0 }
   0x4   :  { %13 = vsyncpa [#allocation5], 0 }
   0x5   :  { %15 = vsyncpa [#allocation5 + $0x1], 0 }
   0x6   :  { %16 = vsyncpa [#allocation8], 0 }
   0x7   :  { %18 = vsyncpa [#allocation8 + $0x1], 0 }
   0x8   :  { %19 = vsyncpa [#allocation11], 0 }
   0x9   :  { %21 = vsyncpa [#allocation11 + $0x1], 0  ;;  %s8420_s24 = smov 0   ;;  %s8422_s25 = smov 0  }
   0xa   :  { %s8424_s26 = smov 0   ;;  %s8426_s27 = smov 0  }
   0xb LB: > { %s8441_s28 = sadd.s32 1, %s8366_s27   ;;  %s55_s29 = sadd.s32 1, %s8362_s26  ;;  %s8366_s27 = sphi %s8426_s27, %s9827_s27   ;;  %s8362_s26 = sphi %s8424_s26, %s9826_s26   ;;  %s8358_s25 = sphi %s8422_s25, %s9825_s25   ;;  %s8354_s24 = sphi %s8420_s24, %s9824_s24  }
   0xc   : > { %s52_s30 = ssub.s32 %s8366_s27, %s8441_s28  ;;  %p62_p0 = scmp.ne.s32.totalorder %s8362_s26, %s8358_s25 }
   0xd   : > { %p53_p1 = scmp.eq.s32.totalorder %s52_s30, 0  ;;  %p63_p2 = scmp.eq.s32.totalorder %s8366_s27, 0 }
   0xe   : > { %p7283_p3 = scmp.lt.s32.totalorder %s8366_s27, 2  ;;  %s259_s9 = sand.u32 1, %s8366_s27  }
   0xf   : > { %s8451_s8 = scalar_select %p53_p1, %s8362_s26, %s55_s29  }
  0x10   : > { %p64_p4 = por %p63_p2, %p62_p0  ;;  %s8455_s10 = sand.u32 1, %s8362_s26  }
  0x11   : > { %9809 = sst [smem:[#allocation16_spill]] %s8451_s8  ;;  %s6629_s11 = sshll.u32 %s8455_s10, 8 }
  0x12   : > { %s7238_s12 = sshll.u32 %s8366_s27, 12  ;;  %s9810_s1 = sld [smem:[#allocation17_spill]] }
  0x13   : > { %s263_s16 = scalar_lea.vmem [#allocation4], %s6629_s11  ;;  %p8464_p5 = pnand %p7283_p3, %p64_p4 }
  0x14   : > { %s271_s17 = sshll.u32 %s263_s16, 4  ;;  %s8472_s19 = scalar_lea.sflag [#allocation5], %s259_s9  ;;  %s8468_s17 = int_to_ptr.vmem [resolvable:$true] %s271_s17 }
  0x15   : > { %s9811_s18 = scalar_select %p8464_p5, 1, 0 }
  0x16   : > { %p8478_p7 = pneg %p8464_p5 }
  0x18   : > { %s8462_s15 = scalar_lea.hbm %s9810_s1, %s7238_s12  ;;  %s8147_s29 = scalar_lea.hbm %s9810_s1, 8192 }
  0x19   : > { %s8142_s20 = scalar_lea.hbm %s8462_s15, 4096  ;;  %p8148_p10 = scmp.lt.u32.totalorder %s8462_s15, %s9810_s1 }
  0x1a   : > { %p8143_p6 = scmp.ne.s32.totalorder %s8462_s15, %s8142_s20  ;;  %p8149_p11 = scmp.lt.u32.totalorder %s8147_s29, %s8142_s20 }
  0x1b   : > { %s9812_s21 = scalar_select %p8478_p7, 1, 0 }
  0x1c   : > { %p8145_p8 = pnand %p8478_p7, %p8143_p6  ;;  %p8150_p12 = por %p8149_p11, %p8148_p10 }
  0x1d   : > { %p8151_p13 = scmp.lt.u32.totalorder %s8142_s20, %s8462_s15 }
  0x1e   : > { %p8146_p9 = pneg %p8145_p8 }
  0x1f   : > { %p8152_p0 = por %p8151_p13, %p8150_p12 }
  0x21   : > { %p8153_p1 = pnand %p8152_p0, %p8146_p9 }
  0x23   : > { %8156 = shalt.err (!%p8153_p1)
}
  0x24   : > { %s8157_s12 = scalar_lea.vmem %s8468_s17, 4096  ;;  %s8368_s13 = smov [#allocation4]  }
  0x25   : > { %p8158_p2 = scmp.ne.s32.totalorder %s8468_s17, %s8157_s12  ;;  %s8162_s14 = sshll.u32 %s8368_s13, 4  ;;  %s8163_s14 = int_to_ptr.vmem [resolvable:$false] %s8162_s14 }
  0x26   : > { %s8164_s16 = scalar_lea.vmem %s8163_s14, 8192  ;;  %p8165_p6 = scmp.lt.s32.totalorder %s8468_s17, %s8163_s14 }
  0x27   : > { %p8160_p3 = pnand %p8158_p2, %p8478_p7  ;;  %p8166_p8 = scmp.lt.s32.totalorder %s8164_s16, %s8157_s12 }
  0x29   : > { %p8161_p4 = pneg %p8160_p3  ;;  %p8167_p10 = por %p8166_p8, %p8165_p6 }
  0x2b   : > { %p8168_p11 = pnand %p8167_p10, %p8161_p4 }
  0x2d   : > { %8171 = shalt.err (!%p8168_p11)
}
  0x2e   : > { %s8369_s20 = smov 128   ;;  %s8370_s22 = smov 8  }
  0x2f   : > { %7269 = dma.hbm_to_vmem [thread:$0]  (!%p8464_p5), %s8462_s15, 4096, %s8468_s17, %s8472_s19, %s8369_s20, %s8369_s20, %s8370_s22  }
  0x30   : > { %s6637_s23 = sshll.u32 %s8455_s10, 12  ;;  %s7242_s29 = sshll.u32 %s8366_s27, 16 }
  0x31   : > { %s9813_s3 = sld [smem:[#allocation18_spill]]  ;;  %s307_s13 = scalar_lea.vmem [#allocation7], %s6637_s23 }
  0x32   : > { %s315_s14 = sshll.u32 %s307_s13, 4  ;;  %s8516_s16 = scalar_lea.sflag [#allocation8], %s259_s9  ;;  %s8512_s14 = int_to_ptr.vmem [resolvable:$true] %s315_s14 }
  0x37   : > { %s8510_s12 = scalar_lea.hbm %s9813_s3, %s7242_s29  ;;  %s8177_s29 = scalar_lea.hbm %s9813_s3, 131072 }
  0x38   : > { %s8172_s1 = scalar_lea.hbm %s8510_s12, 65536  ;;  %p8178_p0 = scmp.lt.u32.totalorder %s8510_s12, %s9813_s3 }
  0x39   : > { %p8173_p9 = scmp.ne.s32.totalorder %s8510_s12, %s8172_s1  ;;  %p8179_p1 = scmp.lt.u32.totalorder %s8177_s29, %s8172_s1 }
  0x3a   : > { %p8181_p3 = scmp.lt.u32.totalorder %s8172_s1, %s8510_s12 }
  0x3b   : > { %p8175_p12 = pnand %p8173_p9, %p8478_p7  ;;  %p8180_p2 = por %p8179_p1, %p8178_p0 }
  0x3d   : > { %p8176_p13 = pneg %p8175_p12  ;;  %p8182_p4 = por %p8181_p3, %p8180_p2 }
  0x3f   : > { %p8183_p6 = pnand %p8182_p4, %p8176_p13 }
  0x41   : > { %8186 = shalt.err (!%p8183_p6)
}
  0x42   : > { %s8187_s9 = scalar_lea.vmem %s8512_s14, 65536  ;;  %s8371_s23 = smov [#allocation7]  }
  0x43   : > { %p8188_p8 = scmp.ne.s32.totalorder %s8512_s14, %s8187_s9  ;;  %s8192_s13 = sshll.u32 %s8371_s23, 4  ;;  %s8193_s13 = int_to_ptr.vmem [resolvable:$false] %s8192_s13 }
  0x44   : > { %s8194_s15 = scalar_lea.vmem %s8193_s13, 131072  ;;  %p8195_p9 = scmp.lt.s32.totalorder %s8512_s14, %s8193_s13 }
  0x45   : > { %p8190_p10 = pnand %p8188_p8, %p8478_p7  ;;  %p8196_p12 = scmp.lt.s32.totalorder %s8194_s15, %s8187_s9 }
  0x47   : > { %p8191_p11 = pneg %p8190_p10  ;;  %p8197_p0 = por %p8196_p12, %p8195_p9 }
  0x49   : > { %p8198_p1 = pnand %p8197_p0, %p8191_p11 }
  0x4b   : > { %8201 = shalt.err (!%p8198_p1)
}
  0x4c   : > { %7275 = dma.hbm_to_vmem [thread:$0]  (!%p8464_p5), %s8510_s12, 65536, %s8512_s14, %s8516_s16, %s8369_s20, %s8369_s20, %s8370_s22  }
  0x4d   : > { %s8544_s1 = sadd.s32 4294967295, %s8366_s27   ;;  %p68_p13 = scmp.ne.s32.totalorder %s8358_s25, %s8354_s24 }
  0x4e   : > { %p9800_p2 = scmp.eq.s32.totalorder %s8544_s1, 0  ;;  %p6626_p3 = scmp.ge.s32.totalorder %s8366_s27, 1 }
  0x4f   : > { %p235_p4 = scmp.lt.s32.totalorder %s8366_s27, 3  ;;  %s8372_s20 = smov [#allocation2]  }
  0x50   : > { %p8553_p6 = por %p9800_p2, %p68_p13  ;;  %s248_s22 = sshll.u32 %s8372_s20, 4  ;;  %s249_s22 = int_to_ptr.vmem [resolvable:$true] %s248_s22 }
  0x51   : > { %p8557_p8 = pnand %p6626_p3, %p235_p4  ;;  %s8562_s12 = sshll.u32 %s8455_s10, 5 }
  0x52   : > { %s9814_s17 = scalar_select %p8553_p6, 1, 0 }
  0x53   : > { %s9815_s29 = scalar_select %p8557_p8, 1, 0 }
  0x54   : > { %p7262_p10 = pneg %p8557_p8  ;;  %s8567_s24 = sshll.u32 %s8366_s27, 9 }
  0x55   : > { %s8579_s9 = scalar_lea.hbm %s9794_s2, %s8567_s24  ;;  %s285_s23 = scalar_lea.vmem [#allocation6], %s8562_s12 }
  0x56   : > { %p8571_p11 = pnand %p7262_p10, %p9800_p2  ;;  %s293_s13 = sshll.u32 %s285_s23, 4  ;;  %s8582_s13 = int_to_ptr.vmem [resolvable:$true] %s293_s13 }
  0x57   : > { %s8202_s27 = scalar_lea.hbm %s9792_s0, 64 }
  0x58   : > { %p8203_p9 = scmp.ne.s32.totalorder %s9792_s0, %s8202_s27  ;;  %p8204_p12 = pneg %p8571_p11 }
  0x59   : > { %p8209_p13 = scmp.lt.u32.totalorder %s8202_s27, %s9792_s0 }
  0x5a   : > { %p8205_p0 = pnand %p8204_p12, %p8203_p9 }
  0x5c   : > { %p8206_p1 = pneg %p8205_p0 }
  0x5e   : > { %p8211_p3 = pnand %p8209_p13, %p8206_p1 }
  0x60   : > { %8214 = shalt.err (!%p8211_p3)
}
  0x61   : > { %s8215_s23 = scalar_lea.vmem %s249_s22, 64  ;;  %p8223_p6 = scmp.lt.s32.totalorder %s249_s22, %s249_s22 }
  0x62   : > { %p8216_p4 = scmp.ne.s32.totalorder %s249_s22, %s8215_s23  ;;  %p8224_p8 = scmp.lt.s32.totalorder %s8215_s23, %s8215_s23 }
  0x64   : > { %p8218_p10 = pnand %p8216_p4, %p8204_p12  ;;  %p8225_p5 = por %p8224_p8, %p8223_p6 }
  0x66   : > { %p8219_p2 = pneg %p8218_p10 }
  0x68   : > { %p8226_p7 = pnand %p8225_p5, %p8219_p2 }
  0x6a   : > { %8229 = shalt.err (!%p8226_p7)
}
  0x6b   : > { %7265 = dma.hbm_to_vmem [thread:$0]  (!%p8571_p11), %s9792_s0, 64, %s249_s22, [#allocation3]  }
  0x6c   : > { %s8230_s15 = scalar_lea.hbm %s8579_s9, 512  ;;  %p9817_p12 = scmp.ne.s32.totalorder %s9812_s21, 0 }
  0x6d   : > { %p8231_p9 = scmp.ne.s32.totalorder %s8579_s9, %s8230_s15  ;;  %s8235_s30 = scalar_lea.hbm %s9794_s2, 1024 }
  0x6e   : > { %p8236_p5 = scmp.lt.u32.totalorder %s8579_s9, %s9794_s2  ;;  %p8237_p7 = scmp.lt.u32.totalorder %s8235_s30, %s8230_s15 }
  0x6f   : > { %p8233_p0 = pnand %p8231_p9, %p9817_p12  ;;  %p8239_p6 = scmp.lt.u32.totalorder %s8230_s15, %s8579_s9 }
  0x70   : > { %p8238_p2 = por %p8237_p7, %p8236_p5 }
  0x71   : > { %p8234_p1 = pneg %p8233_p0 }
  0x72   : > { %p8240_p8 = por %p8239_p6, %p8238_p2 }
  0x74   : > { %p8241_p13 = pnand %p8240_p8, %p8234_p1 }
  0x76   : > { %8244 = shalt.err (!%p8241_p13)
}
  0x77   : > { %s8245_s22 = scalar_lea.vmem %s8582_s13, 512  ;;  %s8373_s23 = smov [#allocation6]  }
  0x78   : > { %p8246_p11 = scmp.ne.s32.totalorder %s8582_s13, %s8245_s22  ;;  %s8250_s3 = sshll.u32 %s8373_s23, 4  ;;  %s8251_s3 = int_to_ptr.vmem [resolvable:$false] %s8250_s3 }
  0x79   : > { %s8252_s8 = scalar_lea.vmem %s8251_s3, 1024  ;;  %p8253_p10 = scmp.lt.s32.totalorder %s8582_s13, %s8251_s3 }
  0x7a   : > { %p8248_p3 = pnand %p8246_p11, %p9817_p12  ;;  %p8254_p9 = scmp.lt.s32.totalorder %s8252_s8, %s8245_s22 }
  0x7c   : > { %p8249_p4 = pneg %p8248_p3  ;;  %p8255_p0 = por %p8254_p9, %p8253_p10 }
  0x7e   : > { %p8256_p5 = pnand %p8255_p0, %p8249_p4 }
  0x80   : > { %8259 = shalt.err (!%p8256_p5)
}
  0x81   : > { %s8374_s15 = smov 32   ;;  %s8375_s20 = smov 2  }
  0x82   : > { %p9818_p1 = scmp.ne.s32.totalorder %s9811_s18, 0  ;;  %s8629_s11 = scalar_lea.hbm %s9796_s4, %s8567_s24 }
  0x83   : > { %s329_s14 = scalar_lea.vmem [#allocation9], %s8562_s12  ;;  %s8260_s23 = scalar_lea.hbm %s8629_s11, 512 }
  0x84   : > { %7272 = dma.hbm_to_vmem [thread:$0]  (!%p9818_p1), %s8579_s9, 512, %s8582_s13, %s8472_s19, %s8374_s15, %s8374_s15, %s8375_s20  }
  0x85   : > { %s337_s22 = sshll.u32 %s329_s14, 4  ;;  %p8261_p7 = scmp.ne.s32.totalorder %s8629_s11, %s8260_s23  ;;  %s8632_s22 = int_to_ptr.vmem [resolvable:$true] %s337_s22 }
  0x86   : > { %s8265_s9 = scalar_lea.hbm %s9796_s4, 1024  ;;  %p8266_p8 = scmp.lt.u32.totalorder %s8629_s11, %s9796_s4 }
  0x87   : > { %p8263_p2 = pnand %p8261_p7, %p9817_p12  ;;  %p8267_p13 = scmp.lt.u32.totalorder %s8265_s9, %s8260_s23 }
  0x88   : > { %p8269_p3 = scmp.lt.u32.totalorder %s8260_s23, %s8629_s11 }
  0x89   : > { %p8264_p6 = pneg %p8263_p2  ;;  %p8268_p11 = por %p8267_p13, %p8266_p8 }
  0x8b   : > { %p8270_p4 = por %p8269_p3, %p8268_p11 }
  0x8d   : > { %p8271_p10 = pnand %p8270_p4, %p8264_p6 }
  0x8f   : > { %8274 = shalt.err (!%p8271_p10)
}
  0x90   : > { %s8275_s27 = scalar_lea.vmem %s8632_s22, 512  ;;  %s8376_s30 = smov [#allocation9]  }
  0x91   : > { %p8276_p9 = scmp.ne.s32.totalorder %s8632_s22, %s8275_s27  ;;  %s8280_s14 = sshll.u32 %s8376_s30, 4  ;;  %s8281_s14 = int_to_ptr.vmem [resolvable:$false] %s8280_s14 }
  0x92   : > { %s8282_s3 = scalar_lea.vmem %s8281_s14, 1024  ;;  %p8283_p7 = scmp.lt.s32.totalorder %s8632_s22, %s8281_s14 }
  0x93   : > { %p8278_p0 = pnand %p8276_p9, %p9817_p12  ;;  %p8284_p2 = scmp.lt.s32.totalorder %s8282_s3, %s8275_s27 }
  0x95   : > { %p8279_p5 = pneg %p8278_p0  ;;  %p8285_p8 = por %p8284_p2, %p8283_p7 }
  0x97   : > { %p8286_p13 = pnand %p8285_p8, %p8279_p5 }
  0x99   : > { %8289 = shalt.err (!%p8286_p13)
}
  0x9a   : > { %7278 = dma.hbm_to_vmem [thread:$0]  (!%p9818_p1), %s8629_s11, 512, %s8632_s22, %s8516_s16, %s8374_s15, %s8374_s15, %s8375_s20  }
  0x9b   : > { %s8663_s9 = scalar_lea.hbm %s9797_s5, %s8567_s24  ;;  %s351_s13 = scalar_lea.vmem [#allocation10], %s8562_s12 }
  0x9c   : > { %s359_s8 = sshll.u32 %s351_s13, 4  ;;  %s348_s27 = scalar_lea.sflag [#allocation11], %s8455_s10  ;;  %s8666_s8 = int_to_ptr.vmem [resolvable:$true] %s359_s8 }
  0x9d   : > { %s8290_s30 = scalar_lea.hbm %s8663_s9, 512  ;;  %s8295_s22 = scalar_lea.hbm %s9797_s5, 1024 }
  0x9e   : > { %p8291_p6 = scmp.ne.s32.totalorder %s8663_s9, %s8290_s30  ;;  %p8296_p4 = scmp.lt.u32.totalorder %s8663_s9, %s9797_s5 }
  0x9f   : > { %p8297_p10 = scmp.lt.u32.totalorder %s8295_s22, %s8290_s30  ;;  %p8299_p0 = scmp.lt.u32.totalorder %s8290_s30, %s8663_s9 }
  0xa0   : > { %p8293_p11 = pnand %p8291_p6, %p9817_p12 }
  0xa1   : > { %p8298_p9 = por %p8297_p10, %p8296_p4 }
  0xa2   : > { %p8294_p3 = pneg %p8293_p11 }
  0xa3   : > { %p8300_p5 = por %p8299_p0, %p8298_p9 }
  0xa5   : > { %p8301_p7 = pnand %p8300_p5, %p8294_p3 }
  0xa7   : > { %8304 = shalt.err (!%p8301_p7)
}
  0xa8   : > { %s8305_s12 = scalar_lea.vmem %s8666_s8, 512  ;;  %s8377_s3 = smov [#allocation10]  }
  0xa9   : > { %p8306_p2 = scmp.ne.s32.totalorder %s8666_s8, %s8305_s12  ;;  %s8310_s23 = sshll.u32 %s8377_s3, 4  ;;  %s8311_s23 = int_to_ptr.vmem [resolvable:$false] %s8310_s23 }
  0xaa   : > { %s8312_s19 = scalar_lea.vmem %s8311_s23, 1024  ;;  %p8313_p6 = scmp.lt.s32.totalorder %s8666_s8, %s8311_s23 }
  0xab   : > { %p8308_p8 = pnand %p8306_p2, %p9817_p12  ;;  %p8314_p11 = scmp.lt.s32.totalorder %s8312_s19, %s8305_s12 }
  0xad   : > { %p8309_p13 = pneg %p8308_p8  ;;  %p8315_p4 = por %p8314_p11, %p8313_p6 }
  0xaf   : > { %p8316_p10 = pnand %p8315_p4, %p8309_p13 }
  0xb1   : > { %8319 = shalt.err (!%p8316_p10)
}
  0xb2   : > { %7281 = dma.hbm_to_vmem [thread:$0]  (!%p9818_p1), %s8663_s9, 512, %s8666_s8, %s348_s27, %s8374_s15, %s8374_s15, %s8375_s20  }
  0xb3   : > { %p9819_p12 = scmp.ne.s32.totalorder %s9815_s29, 0 }
  0xb4   : > { %p9820_p3 = scmp.eq.s32.totalorder (!%p9819_p12), %s8544_s1, 0 }
  0xb5   : > { %379 = sbr.rel (%p9819_p12) target bundleno = 1387 (0x56b), region = 48 }
  0xbc   : > { %8337 = dma.done.wait (%p9820_p3), [#allocation3], 64   ;;  %p9821_p9 = pmov %p9820_p3 }
  0xbd   : > { %s385_s18 = sand.u32 1, %s8544_s1   ;;  %s387_s21 = sand.u32 1, %s8358_s25  }
  0xbe   : > { %8339 = vsyncadd (%p9821_p9), [#allocation3], 4294967232  ;;  %s6651_s13 = sshll.u32 %s387_s21, 8  ;;  %s386_s30 = scalar_lea.sflag [#allocation5], %s385_s18 }
  0xbf   : > { %s8703_s10 = scalar_lea.vmem [#allocation4], %s6651_s13  ;;  %p9822_p0 = scmp.ne.s32.totalorder %s9814_s17, 0 }
  0xc1   : > { %8341 = dma.done.wait (%p9822_p0), %s386_s30, 4608  }
  0xc2   : > { %8343 = vsyncadd (%p9822_p0), %s386_s30, 4294962688  ;;  %s6652_s29 = sshll.u32 %s387_s21, 5  ;;  %s6653_s15 = sshll.u32 %s387_s21, 12 }
  0xc3   : > { %s8709_s20 = scalar_lea.vmem [#allocation6], %s6652_s29  ;;  %s404_s9 = scalar_lea.sflag [#allocation8], %s385_s18 }
  0xc4   : > { %s8711_s8 = scalar_lea.vmem [#allocation7], %s6653_s15 }
  0xc5   : > { %8345 = dma.done.wait (%p9822_p0), %s404_s9, 66048  }
  0xc6   : > { %8347 = vsyncadd (%p9822_p0), %s404_s9, 4294901248  ;;  %s8717_s27 = scalar_lea.vmem [#allocation9], %s6652_s29  ;;  %s422_s16 = scalar_lea.sflag [#allocation11], %s387_s21 }
  0xc7   : > { %s8719_s11 = scalar_lea.vmem [#allocation10], %s6652_s29 }
  0xc8   : > { %8349 = dma.done.wait (%p9822_p0), %s422_s16, 512  }
  0xc9   : > { %8351 = vsyncadd (%p9822_p0), %s422_s16, 4294966784  ;;  %v8378_v0 = vmov 0   ;;  %v7326_v1 = vld [vmem:[%s8703_s10 + $0x4] ss:$8 sps:$4 sm:$0xff]   ;;  %v7328_v2 = vld [vmem:[%s8703_s10 + $0x14] ss:$8 sps:$4 sm:$0xff]  }
  0xca   : > { %767 = vmatprep.mubr.bf16.mxu0 %v8378_v0  ;;  %818 = vmatprep.mubr.bf16.mxu1 %v8378_v0  ;;  %v7330_v3 = vld [vmem:[%s8703_s10] ss:$8 sps:$4 sm:$0xff]   ;;  %v7331_v4 = vld [vmem:[%s8703_s10 + $0x10] ss:$8 sps:$4 sm:$0xff]   ;;  %v8733_v5 = vld [vmem:[#allocation2] sm:$0xf] }
  0xcb   : > { %7325 = vset.pattern.permute.xlu1 %v8378_v0  ;;  %7324 = vset.pattern.permute.xlu0 %v8378_v0  ;;  %v7332_v6 = vld [vmem:[%s8703_s10 + $0x20] ss:$8 sps:$4 sm:$0xff]   ;;  %vm731_vm0 = vcmask 130048   ;;  %v7334_v7 = vld [vmem:[%s8703_s10 + $0x24] ss:$8 sps:$4 sm:$0xff]   ;;  %s6656_s17 = sshll.u32 %s8544_s1, 4 }
  0xcc   : > { %735 = vmatprep.subr.bf16.mxu0 %v7326_v1  ;;  %786 = vmatprep.subr.bf16.mxu1 %v7328_v2  ;;  %v7335_v8 = vld [vmem:[%s8703_s10 + $0x30] ss:$8 sps:$4 sm:$0xff]   ;;  %v7337_v9 = vld [vmem:[%s8703_s10 + $0x34] ss:$8 sps:$4 sm:$0xff]   ;;  %v7340_v10 = vld [vmem:[%s8703_s10 + $0x44] ss:$8 sps:$4 sm:$0xff]  }
  0xcd   : > { %736 = vmatpush1.bf16.msra.mxu0 %v7330_v3  ;;  %787 = vmatpush1.bf16.msra.mxu1 %v7331_v4  ;;  %v7343_v11 = vld [vmem:[%s8703_s10 + $0x54] ss:$8 sps:$4 sm:$0xff]   ;;  %v7338_v12 = vld [vmem:[%s8703_s10 + $0x40] ss:$8 sps:$4 sm:$0xff]   ;;  %v7341_v13 = vld [vmem:[%s8703_s10 + $0x50] ss:$8 sps:$4 sm:$0xff]  }
  0xce   : > { %837 = vmatprep.subr.bf16.mxu0 %v7334_v7  ;;  %888 = vmatprep.subr.bf16.mxu1 %v7337_v9  ;;  %v7346_v14 = vld [vmem:[%s8703_s10 + $0x64] ss:$8 sps:$4 sm:$0xff]   ;;  %v7349_v15 = vld [vmem:[%s8703_s10 + $0x74] ss:$8 sps:$4 sm:$0xff]   ;;  %v7344_v16 = vld [vmem:[%s8703_s10 + $0x60] ss:$8 sps:$4 sm:$0xff]  }
  0xcf   : > { %v7347_v17 = vld [vmem:[%s8703_s10 + $0x70] ss:$8 sps:$4 sm:$0xff]   ;;  %v7352_v18 = vld [vmem:[%s8703_s10 + $0x84] ss:$8 sps:$4 sm:$0xff]   ;;  %v7355_v19 = vld [vmem:[%s8703_s10 + $0x94] ss:$8 sps:$4 sm:$0xff]  }
  0xd0   : > { %6661 = vmatmul.mubr.msk.bf16.vlgmr.msra.gmra.mrb[0].mxu0 %vm731_vm0, %v8733_v5  ;;  %6664 = vmatmul.mubr.msk.bf16.vlgmr.msra.gmra.mrb[0].mxu1 %vm731_vm0, %v8733_v5  ;;  %v7350_v20 = vld [vmem:[%s8703_s10 + $0x80] ss:$8 sps:$4 sm:$0xff]   ;;  %v7353_v21 = vld [vmem:[%s8703_s10 + $0x90] ss:$8 sps:$4 sm:$0xff]   ;;  %v7358_v22 = vld [vmem:[%s8703_s10 + $0xa4] ss:$8 sps:$4 sm:$0xff]  }
  0xd1   : > { %838 = vmatpush1.bf16.msra.mxu0 %v7332_v6  ;;  %869 = vmatprep.mubr.bf16.mxu0 %v8378_v0  ;;  %v7361_v23 = vld [vmem:[%s8703_s10 + $0xb4] ss:$8 sps:$4 sm:$0xff]   ;;  %v7356_v24 = vld [vmem:[%s8703_s10 + $0xa0] ss:$8 sps:$4 sm:$0xff]   ;;  %v7359_v25 = vld [vmem:[%s8703_s10 + $0xb0] ss:$8 sps:$4 sm:$0xff]  }
  0xd2   : > { %889 = vmatpush1.bf16.msra.mxu1 %v7335_v8  ;;  %920 = vmatprep.mubr.bf16.mxu1 %v8378_v0  ;;  %v7364_v26 = vld [vmem:[%s8703_s10 + $0xc4] ss:$8 sps:$4 sm:$0xff]   ;;  %v7367_v27 = vld [vmem:[%s8703_s10 + $0xd4] ss:$8 sps:$4 sm:$0xff]   ;;  %v7362_v28 = vld [vmem:[%s8703_s10 + $0xc0] ss:$8 sps:$4 sm:$0xff]  }
  0xd3   : > { %939 = vmatprep.subr.bf16.mxu0 %v7340_v10  ;;  %990 = vmatprep.subr.bf16.mxu1 %v7343_v11  ;;  %v7365_v29 = vld [vmem:[%s8703_s10 + $0xd0] ss:$8 sps:$4 sm:$0xff]   ;;  %v7370_v30 = vld [vmem:[%s8703_s10 + $0xe4] ss:$8 sps:$4 sm:$0xff]   ;;  %v7373_v31 = vld [vmem:[%s8703_s10 + $0xf4] ss:$8 sps:$4 sm:$0xff]  }
  0xd4   : > { %v7368_v32 = vld [vmem:[%s8703_s10 + $0xe0] ss:$8 sps:$4 sm:$0xff]   ;;  %v7371_v33 = vld [vmem:[%s8703_s10 + $0xf0] ss:$8 sps:$4 sm:$0xff]   ;;  %v7376_v34 = vld [vmem:[%s8711_s8 + $0x4] ss:$8 sps:$4 sm:$0xff]  }
  0xd5   : > { %v7379_v35 = vld [vmem:[%s8711_s8 + $0x104] ss:$8 sps:$4 sm:$0xff]   ;;  %v7374_v36 = vld [vmem:[%s8711_s8] ss:$8 sps:$4 sm:$0xff]   ;;  %v7382_v38 = vld [vmem:[%s8711_s8 + $0x14] ss:$8 sps:$4 sm:$0xff]  }
  0xd6   : > { %v7377_v37 = vld [vmem:[%s8711_s8 + $0x100] ss:$8 sps:$4 sm:$0xff]   ;;  %v7385_v39 = vld [vmem:[%s8711_s8 + $0x114] ss:$8 sps:$4 sm:$0xff]   ;;  %v7380_v40 = vld [vmem:[%s8711_s8 + $0x10] ss:$8 sps:$4 sm:$0xff]  }
  0xd7   : > { %v7383_v41 = vld [vmem:[%s8711_s8 + $0x110] ss:$8 sps:$4 sm:$0xff]   ;;  %v7388_v42 = vld [vmem:[%s8711_s8 + $0x24] ss:$8 sps:$4 sm:$0xff]   ;;  %v7386_v44 = vld [vmem:[%s8711_s8 + $0x20] ss:$8 sps:$4 sm:$0xff]  }
  0xd8   : > { %6667 = vmatmul.mubr.msk.bf16.vlgmr.msra.gmra.mrb[4].mxu0 %vm731_vm0, %v8733_v5  ;;  %6670 = vmatmul.mubr.msk.bf16.vlgmr.msra.gmra.mrb[4].mxu1 %vm731_vm0, %v8733_v5  ;;  %v7391_v43 = vld [vmem:[%s8711_s8 + $0x124] ss:$8 sps:$4 sm:$0xff]   ;;  %v7389_v45 = vld [vmem:[%s8711_s8 + $0x120] ss:$8 sps:$4 sm:$0xff]   ;;  %v7394_v46 = vld [vmem:[%s8711_s8 + $0x34] ss:$8 sps:$4 sm:$0xff]  }
  0xd9   : > { %940 = vmatpush1.bf16.msra.mxu0 %v7338_v12  ;;  %971 = vmatprep.mubr.bf16.mxu0 %v8378_v0  ;;  %v7397_v47 = vld [vmem:[%s8711_s8 + $0x134] ss:$8 sps:$4 sm:$0xff]   ;;  %v7392_v48 = vld [vmem:[%s8711_s8 + $0x30] ss:$8 sps:$4 sm:$0xff]   ;;  %v7400_v50 = vld [vmem:[%s8711_s8 + $0x44] ss:$8 sps:$4 sm:$0xff]  }
  0xda   : > { %991 = vmatpush1.bf16.msra.mxu1 %v7341_v13  ;;  %1022 = vmatprep.mubr.bf16.mxu1 %v8378_v0  ;;  %v7395_v49 = vld [vmem:[%s8711_s8 + $0x130] ss:$8 sps:$4 sm:$0xff]   ;;  %v7403_v51 = vld [vmem:[%s8711_s8 + $0x144] ss:$8 sps:$4 sm:$0xff]   ;;  %v7398_v52 = vld [vmem:[%s8711_s8 + $0x40] ss:$8 sps:$4 sm:$0xff]  }
  0xdb   : > { %1041 = vmatprep.subr.bf16.mxu0 %v7346_v14  ;;  %1092 = vmatprep.subr.bf16.mxu1 %v7349_v15  ;;  %v7401_v53 = vld [vmem:[%s8711_s8 + $0x140] ss:$8 sps:$4 sm:$0xff]   ;;  %v7406_v54 = vld [vmem:[%s8711_s8 + $0x54] ss:$8 sps:$4 sm:$0xff]   ;;  %v7404_v56 = vld [vmem:[%s8711_s8 + $0x50] ss:$8 sps:$4 sm:$0xff]  }
  0xdc   : > { %v7409_v55 = vld [vmem:[%s8711_s8 + $0x154] ss:$8 sps:$4 sm:$0xff]   ;;  %v7407_v57 = vld [vmem:[%s8711_s8 + $0x150] ss:$8 sps:$4 sm:$0xff]   ;;  %v7412_v58 = vld [vmem:[%s8711_s8 + $0x64] ss:$8 sps:$4 sm:$0xff]  }
  0xdd   : > { %v7415_v59 = vld [vmem:[%s8711_s8 + $0x164] ss:$8 sps:$4 sm:$0xff]   ;;  %v7410_v60 = vld [vmem:[%s8711_s8 + $0x60] ss:$8 sps:$4 sm:$0xff]   ;;  %v7418_v62 = vld [vmem:[%s8711_s8 + $0x74] ss:$8 sps:$4 sm:$0xff]  }
  0xde   : > { %v7413_v61 = vld [vmem:[%s8711_s8 + $0x160] ss:$8 sps:$4 sm:$0xff]   ;;  %v7421_v63 = vld [vmem:[%s8711_s8 + $0x174] ss:$8 sps:$4 sm:$0xff]   ;;  %p486_p1 = scmp.lt.s32.totalorder %s6656_s17, 31  ;;  %p490_p5 = scmp.lt.s32.totalorder %s8544_s1, 1 }
  0xdf   : > { %v7419_v1 = vld [vmem:[%s8711_s8 + $0x170] ss:$8 sps:$4 sm:$0xff]   ;;  %v7424_v2 = vld [vmem:[%s8711_s8 + $0x84] ss:$8 sps:$4 sm:$0xff]   ;;  %v7422_v6 = vld [vmem:[%s8711_s8 + $0x80] ss:$8 sps:$4 sm:$0xff]  }
  0xe0   : > { %6673 = vmatmul.mubr.msk.bf16.vlgmr.msra.gmra.mrb[8].mxu0 %vm731_vm0, %v8733_v5  ;;  %6676 = vmatmul.mubr.msk.bf16.vlgmr.msra.gmra.mrb[8].mxu1 %vm731_vm0, %v8733_v5  ;;  %s9829_s17 = smov (!%p486_p1, %s6656_s17), 31  ;;  %v7427_v3 = vld [vmem:[%s8711_s8 + $0x184] ss:$8 sps:$4 sm:$0xff]   ;;  %v7425_v7 = vld [vmem:[%s8711_s8 + $0x180] ss:$8 sps:$4 sm:$0xff]   ;;  %vm6425_vm1 = vcmask 1041409  }
  0xe1   : > { %1042 = vmatpush1.bf16.msra.mxu0 %v7344_v16  ;;  %1073 = vmatprep.mubr.bf16.mxu0 %v8378_v0  ;;  %s8847_s14 = scalar_lea.vmem %s9798_s6, %s9829_s17  ;;  %v7430_v8 = vld [vmem:[%s8711_s8 + $0x94] ss:$8 sps:$4 sm:$0xff]   ;;  %v7428_v12 = vld [vmem:[%s8711_s8 + $0x90] ss:$8 sps:$4 sm:$0xff]   ;;  %v7436_v14 = vld [vmem:[%s8711_s8 + $0xa4] ss:$8 sps:$4 sm:$0xff]  }
  0xe2   : > { %1093 = vmatpush1.bf16.msra.mxu1 %v7347_v17  ;;  %1124 = vmatprep.mubr.bf16.mxu1 %v8378_v0  ;;  %v5831_v4 = vld [vmem:[%s8847_s14 + $0x2] sm:$0x1]  ;;  %v5832_v10 = vld [vmem:[%s8847_s14 + $0x3] sm:$0x1]  ;;  %v5830_v11 = vld [vmem:[%s8847_s14 + $0x1] sm:$0x1] }
  0xe3   : > { %1143 = vmatprep.subr.bf16.mxu0 %v7352_v18  ;;  %1194 = vmatprep.subr.bf16.mxu1 %v7355_v19  ;;  %v7433_v9 = vld [vmem:[%s8711_s8 + $0x194] ss:$8 sps:$4 sm:$0xff]   ;;  %v7431_v13 = vld [vmem:[%s8711_s8 + $0x190] ss:$8 sps:$4 sm:$0xff]   ;;  %v7439_v15 = vld [vmem:[%s8711_s8 + $0x1a4] ss:$8 sps:$4 sm:$0xff]  }
  0xe4   : > { %5865 = vperm.xlu1 %7325, %v5831_v4   ;;  %v5834_v16 = vld [vmem:[%s8847_s14 + $0x5] sm:$0x1]  ;;  %v5833_v17 = vld [vmem:[%s8847_s14 + $0x4] sm:$0x1]  ;;  %vm6427_vm2 = vcmask 1042434   ;;  %s9831_s1 = smov (!%p490_p5, %s8544_s1), 1 }
  0xe5   : > { %v7434_v18 = vld [vmem:[%s8711_s8 + $0xa0] ss:$8 sps:$4 sm:$0xff]   ;;  %vm6429_vm3 = vcmask 1043459   ;;  %vm6431_vm4 = vcmask 1044484   ;;  %s7247_s12 = sshll.u32 %s9831_s1, 4  ;;  %vm6433_vm5 = vcmask 1045509  }
  0xe6   : > { %v7437_v19 = vld [vmem:[%s8711_s8 + $0x1a0] ss:$8 sps:$4 sm:$0xff]   ;;  %vm6435_vm6 = vcmask 1046534   ;;  %vm6437_vm7 = vcmask 1047559   ;;  %vm6448_vm8 = vcmask 64512   ;;  %s494_s1 = scalar_lea.vmem %s9799_s7, %s7247_s12 }
  0xe8   : > { %6679 = vmatmul.mubr.msk.bf16.vlgmr.msra.gmra.mrb[12].mxu0 %vm731_vm0, %v8733_v5  ;;  %6682 = vmatmul.mubr.msk.bf16.vlgmr.msra.gmra.mrb[12].mxu1 %vm731_vm0, %v8733_v5 }
  0xe9   : > { %1144 = vmatpush1.bf16.msra.mxu0 %v7350_v20  ;;  %1175 = vmatprep.mubr.bf16.mxu0 %v8378_v0  ;;  %v7442_v20 = vld [vmem:[%s8711_s8 + $0xb4] ss:$8 sps:$4 sm:$0xff]  }
  0xea   : > { %1195 = vmatpush1.bf16.msra.mxu1 %v7353_v21  ;;  %1226 = vmatprep.mubr.bf16.mxu1 %v8378_v0  ;;  %v7445_v21 = vld [vmem:[%s8711_s8 + $0x1b4] ss:$8 sps:$4 sm:$0xff]  }
  0xeb   : > { %1245 = vmatprep.subr.bf16.mxu0 %v7358_v22  ;;  %1296 = vmatprep.subr.bf16.mxu1 %v7361_v23  ;;  %v5836_v22 = vld [vmem:[%s8847_s14 + $0x7] sm:$0x1]  ;;  %v5835_v23 = vld [vmem:[%s8847_s14 + $0x6] sm:$0x1] }
  0xec   : > { %5874 = vperm.xlu1 %7325, %v5832_v10  }
  0xf0   : > { %6685 = vmatmul.mubr.msk.bf16.vlgmr.msra.gmra.mrb[16].mxu0 %vm731_vm0, %v8733_v5  ;;  %6688 = vmatmul.mubr.msk.bf16.vlgmr.msra.gmra.mrb[16].mxu1 %vm731_vm0, %v8733_v5 }
  0xf1   : > { %1246 = vmatpush1.bf16.msra.mxu0 %v7356_v24  ;;  %1277 = vmatprep.mubr.bf16.mxu0 %v8378_v0  ;;  %v7440_v24 = vld [vmem:[%s8711_s8 + $0xb0] ss:$8 sps:$4 sm:$0xff]  }
  0xf2   : > { %1297 = vmatpush1.bf16.msra.mxu1 %v7359_v25  ;;  %1328 = vmatprep.mubr.bf16.mxu1 %v8378_v0  ;;  %v7443_v25 = vld [vmem:[%s8711_s8 + $0x1b0] ss:$8 sps:$4 sm:$0xff]  }
  0xf3   : > { %1347 = vmatprep.subr.bf16.mxu0 %v7364_v26  ;;  %1398 = vmatprep.subr.bf16.mxu1 %v7367_v27  ;;  %v7448_v26 = vld [vmem:[%s8711_s8 + $0xc4] ss:$8 sps:$4 sm:$0xff]  }
  0xf4   : > { %5892 = vperm.xlu1 %7325, %v5834_v16   ;;  %v7451_v27 = vld [vmem:[%s8711_s8 + $0x1c4] ss:$8 sps:$4 sm:$0xff]   ;;  %v7470_v16 = vld [vmem:[%s8711_s8 + $0x200] ss:$8 sps:$4 sm:$0xff]  }
  0xf8   : > { %6691 = vmatmul.mubr.msk.bf16.vlgmr.msra.gmra.mrb[20].mxu0 %vm731_vm0, %v8733_v5  ;;  %6694 = vmatmul.mubr.msk.bf16.vlgmr.msra.gmra.mrb[20].mxu1 %vm731_vm0, %v8733_v5 }
  0xf9   : > { %1348 = vmatpush1.bf16.msra.mxu0 %v7362_v28  ;;  %1379 = vmatprep.mubr.bf16.mxu0 %v8378_v0  ;;  %v5838_v28 = vld [vmem:[%s8847_s14 + $0x9] sm:$0x1] }
  0xfa   : > { %1399 = vmatpush1.bf16.msra.mxu1 %v7365_v29  ;;  %1430 = vmatprep.mubr.bf16.mxu1 %v8378_v0  ;;  %v5837_v29 = vld [vmem:[%s8847_s14 + $0x8] sm:$0x1] }
  0xfb   : > { %1449 = vmatprep.subr.bf16.mxu0 %v7370_v30  ;;  %1500 = vmatprep.subr.bf16.mxu1 %v7373_v31  ;;  %v7446_v30 = vld [vmem:[%s8711_s8 + $0xc0] ss:$8 sps:$4 sm:$0xff]  }
  0xfc   : > { %5910 = vperm.xlu1 %7325, %v5836_v22   ;;  %v7449_v31 = vld [vmem:[%s8711_s8 + $0x1c0] ss:$8 sps:$4 sm:$0xff]  }
 0x100   : > { %6697 = vmatmul.mubr.msk.bf16.vlgmr.msra.gmra.mrb[24].mxu0 %vm731_vm0, %v8733_v5  ;;  %6700 = vmatmul.mubr.msk.bf16.vlgmr.msra.gmra.mrb[24].mxu1 %vm731_vm0, %v8733_v5 }
 0x101   : > { %1450 = vmatpush1.bf16.msra.mxu0 %v7368_v32  ;;  %1481 = vmatprep.mubr.bf16.mxu0 %v8378_v0  ;;  %v7454_v32 = vld [vmem:[%s8711_s8 + $0xd4] ss:$8 sps:$4 sm:$0xff]  }
 0x102   : > { %1501 = vmatpush1.bf16.msra.mxu1 %v7371_v33  ;;  %1532 = vmatprep.mubr.bf16.mxu1 %v8378_v0  ;;  %v7416_v0 = vld [vmem:[%s8711_s8 + $0x70] ss:$8 sps:$4 sm:$0xff]   ;;  %v7457_v33 = vld [vmem:[%s8711_s8 + $0x1d4] ss:$8 sps:$4 sm:$0xff]  }
 0x103   : > { %2469 = vmatprep.subr.bf16.mxu0 %v7376_v34  ;;  %2670 = vmatprep.subr.bf16.mxu1 %v7379_v35  ;;  %v5840_v34 = vld [vmem:[%s8847_s14 + $0xb] sm:$0x1]  ;;  %v5839_v35 = vld [vmem:[%s8847_s14 + $0xa] sm:$0x1] }
 0x104   : > { %5928 = vperm.xlu1 %7325, %v5838_v28   ;;  %v7476_v28 = vld [vmem:[%s8711_s8 + $0x210] ss:$8 sps:$4 sm:$0xff]  }
 0x108   : > { %6703 = vmatmul.mubr.msk.bf16.vlgmr.msra.gmra.mrb[28].mxu0 %vm731_vm0, %v8733_v5  ;;  %6706 = vmatmul.mubr.msk.bf16.vlgmr.msra.gmra.mrb[28].mxu1 %vm731_vm0, %v8733_v5  ;;  %v5829_v5 = vld [vmem:[%s8847_s14] sm:$0x1] }
 0x109   : > { %2470 = vmatpush1.bf16.msra.mxu0 %v7374_v36  ;;  %2671 = vmatpush1.bf16.msra.mxu1 %v7377_v37  ;;  %v7452_v36 = vld [vmem:[%s8711_s8 + $0xd0] ss:$8 sps:$4 sm:$0xff]  }
 0x10a   : > { %2471 = vmatprep.subr.bf16.mxu0 %v7382_v38  ;;  %2672 = vmatprep.subr.bf16.mxu1 %v7385_v39  ;;  %v7455_v37 = vld [vmem:[%s8711_s8 + $0x1d0] ss:$8 sps:$4 sm:$0xff]   ;;  %v7460_v38 = vld [vmem:[%s8711_s8 + $0xe4] ss:$8 sps:$4 sm:$0xff]  }
 0x10b   : > { %5847 = vperm.xlu0 %7324, %v5829_v5   ;;  %5946 = vperm.xlu1 %7325, %v5840_v34   ;;  %v7463_v39 = vld [vmem:[%s8711_s8 + $0x1e4] ss:$8 sps:$4 sm:$0xff]  }
 0x10d   : > { %2472 = vmatpush1.bf16.msra.mxu0 %v7380_v40  ;;  %2673 = vmatpush1.bf16.msra.mxu1 %v7383_v41  ;;  %v5842_v40 = vld [vmem:[%s8847_s14 + $0xd] sm:$0x1]  ;;  %v5841_v41 = vld [vmem:[%s8847_s14 + $0xc] sm:$0x1] }
 0x10e   : > { %2473 = vmatprep.subr.bf16.mxu0 %v7388_v42  ;;  %2674 = vmatprep.subr.bf16.mxu1 %v7391_v43  ;;  %v7458_v42 = vld [vmem:[%s8711_s8 + $0xe0] ss:$8 sps:$4 sm:$0xff]  }
 0x10f   : > { %5856 = vperm.xlu0 %7324, %v5830_v11   ;;  %5964 = vperm.xlu1 %7325, %v5842_v40   ;;  %v7461_v43 = vld [vmem:[%s8711_s8 + $0x1e0] ss:$8 sps:$4 sm:$0xff]  }
 0x111   : > { %2474 = vmatpush1.bf16.msra.mxu0 %v7386_v44  ;;  %2675 = vmatpush1.bf16.msra.mxu1 %v7389_v45  ;;  %v7466_v44 = vld [vmem:[%s8711_s8 + $0xf4] ss:$8 sps:$4 sm:$0xff]  }
 0x112   : > { %2475 = vmatprep.subr.bf16.mxu0 %v7394_v46  ;;  %2676 = vmatprep.subr.bf16.mxu1 %v7397_v47  ;;  %v7469_v45 = vld [vmem:[%s8711_s8 + $0x1f4] ss:$8 sps:$4 sm:$0xff]   ;;  %v5844_v46 = vld [vmem:[%s8847_s14 + $0xf] sm:$0x1]  ;;  %v5843_v47 = vld [vmem:[%s8847_s14 + $0xe] sm:$0x1] }
 0x113   : > { %5883 = vperm.xlu0 %7324, %v5833_v17   ;;  %5982 = vperm.xlu1 %7325, %v5844_v46  }
 0x115   : > { %2476 = vmatpush1.bf16.msra.mxu0 %v7392_v48  ;;  %2677 = vmatpush1.bf16.msra.mxu1 %v7395_v49  ;;  %v7464_v48 = vld [vmem:[%s8711_s8 + $0xf0] ss:$8 sps:$4 sm:$0xff]  }
 0x116   : > { %2477 = vmatprep.subr.bf16.mxu0 %v7400_v50  ;;  %2678 = vmatprep.subr.bf16.mxu1 %v7403_v51  ;;  %v7467_v49 = vld [vmem:[%s8711_s8 + $0x1f0] ss:$8 sps:$4 sm:$0xff]   ;;  %v7472_v50 = vld [vmem:[%s8711_s8 + $0x204] ss:$8 sps:$4 sm:$0xff]  }
 0x117   : > { %5901 = vperm.xlu0 %7324, %v5835_v23   ;;  %v7475_v51 = vld [vmem:[%s8711_s8 + $0x304] ss:$8 sps:$4 sm:$0xff]  }
 0x119   : > { %2478 = vmatpush1.bf16.msra.mxu0 %v7398_v52  ;;  %2679 = vmatpush1.bf16.msra.mxu1 %v7401_v53  ;;  %v561_v52 = vlaneseq }
 0x11a   : > { %2479 = vmatprep.subr.bf16.mxu0 %v7406_v54  ;;  %2680 = vmatprep.subr.bf16.mxu1 %v7409_v55  ;;  %v529_v55 = vld [vmem:[%s8709_s20] sm:$0x3] }
 0x11b   : > { %5919 = vperm.xlu0 %7324, %v5837_v29   ;;  %v8898_v53 = vshrl.u32 %v561_v52, 7  ;;  %v7479_v29 = vld [vmem:[%s8711_s8 + $0x310] ss:$8 sps:$4 sm:$0xff]  }
 0x11d   : > { %2480 = vmatpush1.bf16.msra.mxu0 %v7404_v56  ;;  %2681 = vmatpush1.bf16.msra.mxu1 %v7407_v57  ;;  %v8901_v54 = vsub.s32 0, %v8898_v53  ;;  %v530_v56 = vld [vmem:[%s8709_s20 + $0x2] sm:$0x3]  ;;  %v8906_v57 = vsub.s32 1, %v8898_v53 }
 0x11e   : > { %2481 = vmatprep.subr.bf16.mxu0 %v7412_v58  ;;  %2682 = vmatprep.subr.bf16.mxu1 %v7415_v59 }
 0x11f   : > { %5937 = vperm.xlu0 %7324, %v5839_v35   ;;  %v564_v58 = vrot.slane %v529_v55, %v8901_v54  ;;  %v572_v59 = vrot.slane %v530_v56, %v8901_v54 }
 0x121   : > { %2482 = vmatpush1.bf16.msra.mxu0 %v7410_v60  ;;  %2683 = vmatpush1.bf16.msra.mxu1 %v7413_v61  ;;  %v568_v60 = vrot.slane %v529_v55, %v8906_v57  ;;  %v576_v61 = vrot.slane %v530_v56, %v8906_v57 }
 0x122   : > { %2483 = vmatprep.subr.bf16.mxu0 %v7418_v62  ;;  %2684 = vmatprep.subr.bf16.mxu1 %v7421_v63 }
 0x123   : > { %5955 = vperm.xlu0 %7324, %v5841_v41  }
 0x125   : > { %2484 = vmatpush1.bf16.msra.mxu0 %v7416_v0  ;;  %2685 = vmatpush1.bf16.msra.mxu1 %v7419_v1 }
 0x126   : > { %2485 = vmatprep.subr.bf16.mxu0 %v7424_v2  ;;  %2686 = vmatprep.subr.bf16.mxu1 %v7427_v3 }
 0x127   : > { %5973 = vperm.xlu0 %7324, %v5843_v47  }
 0x129   : > { %2486 = vmatpush1.bf16.msra.mxu0 %v7422_v6  ;;  %2687 = vmatpush1.bf16.msra.mxu1 %v7425_v7 }
 0x12a   : > { %2487 = vmatprep.subr.bf16.mxu0 %v7430_v8  ;;  %2688 = vmatprep.subr.bf16.mxu1 %v7433_v9  ;;  %v8913_v8 = vld [vmem:[%s8709_s20 + $0x4] sm:$0x3] }
 0x12d   : > { %2488 = vmatpush1.bf16.msra.mxu0 %v7428_v12  ;;  %2689 = vmatpush1.bf16.msra.mxu1 %v7431_v13  ;;  %v8916_v13 = vld [vmem:[%s8709_s20 + $0x6] sm:$0x3] }
 0x12e   : > { %2489 = vmatprep.subr.bf16.mxu0 %v7436_v14  ;;  %2690 = vmatprep.subr.bf16.mxu1 %v7439_v15  ;;  %v592_v22 = vrot.slane %v8916_v13, %v8906_v57 }
 0x131   : > { %2490 = vmatpush1.bf16.msra.mxu0 %v7434_v18  ;;  %2691 = vmatpush1.bf16.msra.mxu1 %v7437_v19  ;;  %v7473_v18 = vld [vmem:[%s8711_s8 + $0x300] ss:$8 sps:$4 sm:$0xff]  }
 0x132   : > { %2491 = vmatprep.subr.bf16.mxu0 %v7442_v20  ;;  %2692 = vmatprep.subr.bf16.mxu1 %v7445_v21  ;;  %v584_v21 = vrot.slane %v8913_v8, %v8906_v57 }
 0x135   : > { %2492 = vmatpush1.bf16.msra.mxu0 %v7440_v24  ;;  %2693 = vmatpush1.bf16.msra.mxu1 %v7443_v25  ;;  %v7478_v24 = vld [vmem:[%s8711_s8 + $0x214] ss:$8 sps:$4 sm:$0xff]  }
 0x136   : > { %2493 = vmatprep.subr.bf16.mxu0 %v7448_v26  ;;  %2694 = vmatprep.subr.bf16.mxu1 %v7451_v27  ;;  %v7481_v25 = vld [vmem:[%s8711_s8 + $0x314] ss:$8 sps:$4 sm:$0xff]  }
 0x139   : > { %2494 = vmatpush1.bf16.msra.mxu0 %v7446_v30  ;;  %2695 = vmatpush1.bf16.msra.mxu1 %v7449_v31 }
 0x13a   : > { %2495 = vmatprep.subr.bf16.mxu0 %v7454_v32  ;;  %2696 = vmatprep.subr.bf16.mxu1 %v7457_v33  ;;  %v7484_v32 = vld [vmem:[%s8711_s8 + $0x224] ss:$8 sps:$4 sm:$0xff]  }
 0x13d   : > { %2496 = vmatpush1.bf16.msra.mxu0 %v7452_v36  ;;  %2697 = vmatpush1.bf16.msra.mxu1 %v7455_v37 }
 0x13e   : > { %2497 = vmatprep.subr.bf16.mxu0 %v7460_v38  ;;  %2698 = vmatprep.subr.bf16.mxu1 %v7463_v39  ;;  %v7487_v39 = vld [vmem:[%s8711_s8 + $0x324] ss:$8 sps:$4 sm:$0xff]  }
 0x141   : > { %2498 = vmatpush1.bf16.msra.mxu0 %v7458_v42  ;;  %2699 = vmatpush1.bf16.msra.mxu1 %v7461_v43 }
 0x142   : > { %2499 = vmatprep.subr.bf16.mxu0 %v7466_v44  ;;  %2700 = vmatprep.subr.bf16.mxu1 %v7469_v45  ;;  %v7482_v44 = vld [vmem:[%s8711_s8 + $0x220] ss:$8 sps:$4 sm:$0xff]  }
 0x143   : > { %v7485_v45 = vld [vmem:[%s8711_s8 + $0x320] ss:$8 sps:$4 sm:$0xff]  }
 0x145   : > { %2500 = vmatpush1.bf16.msra.mxu0 %v7464_v48  ;;  %2701 = vmatpush1.bf16.msra.mxu1 %v7467_v49  ;;  %v8379_v48 = vmov 1966171168  }
 0x146   : > { %2871 = vmatprep.subr.bf16.mxu0 %v7472_v50  ;;  %3072 = vmatprep.subr.bf16.mxu1 %v7475_v51  ;;  %v6010_v49 = vunpack.c.l.s4 %v8379_v48  ;;  %v7490_v50 = vld [vmem:[%s8711_s8 + $0x234] ss:$8 sps:$4 sm:$0xff]  }
 0x147   : > { %v7493_v51 = vld [vmem:[%s8711_s8 + $0x334] ss:$8 sps:$4 sm:$0xff]  }
 0x148   : > { %v7517_v48 = vld [vmem:[%s8711_s8 + $0x374] ss:$8 sps:$4 sm:$0xff]  }
 0x163   : > { %v8926_v26 = vpop.permute.xlu1 %5865 }
 0x16b   : > { %v5875_v55 = vpop.permute.xlu1 %5874 }
 0x18a   : > { %v8928_v27 = vpop.permute.xlu0 %5847 }
 0x18e   : > { %v5857_v56 = vpop.permute.xlu0 %5856 }
 0x1a3   : > { %v769_v62 = vpop.f32.mrb[0].mxu0  ;;  %v820_v63 = vpop.f32.mrb[0].mxu1 }
 0x1a4   : > { %v770_v0 = vadd.f32 %v769_v62, %v564_v58  ;;  %v821_v1 = vadd.f32 %v820_v63, %v572_v59  ;;  %v771_v2 = vpop.f32.mrb[1].mxu0  ;;  %v822_v3 = vpop.f32.mrb[1].mxu1  ;;  %v7488_v58 = vld [vmem:[%s8711_s8 + $0x230] ss:$8 sps:$4 sm:$0xff]  }
 0x1a5   : > { %v772_v4 = vadd.f32 %v771_v2, %v568_v60  ;;  %v823_v5 = vadd.f32 %v822_v3, %v576_v61  ;;  %v773_v6 = vpop.f32.mrb[2].mxu0  ;;  %v824_v7 = vpop.f32.mrb[2].mxu1  ;;  %v7491_v59 = vld [vmem:[%s8711_s8 + $0x330] ss:$8 sps:$4 sm:$0xff]   ;;  %v5871_v2 = vrot.slane %v8926_v26, %v8901_v54  ;;  %v6011_v3 = vunpack.c.0.s8 %v6010_v49 }
 0x1a6   : > { %v1541_v9 = vmax.f32 %v770_v0, 0.0  ;;  %v1543_v10 = vmax.f32 %v821_v1, 0.0  ;;  %v774_v11 = vpop.f32.mrb[3].mxu0  ;;  %v825_v12 = vpop.f32.mrb[3].mxu1  ;;  %v7499_v6 = vld [vmem:[%s8711_s8 + $0x344] ss:$8 sps:$4 sm:$0xff]  }
 0x1a7   : > { %v1542_v14 = vmax.f32 %v772_v4, 0.0  ;;  %v1544_v15 = vmax.f32 %v823_v5, 0.0  ;;  %v5880_v4 = vrot.slane %v5875_v55, %v8901_v54  ;;  %v7496_v5 = vld [vmem:[%s8711_s8 + $0x244] ss:$8 sps:$4 sm:$0xff]   ;;  %v5862_v11 = vrot.slane %v5857_v56, %v8901_v54  ;;  %v7494_v12 = vld [vmem:[%s8711_s8 + $0x240] ss:$8 sps:$4 sm:$0xff]  }
 0x1a8   : > { %v1575_v17 = vpack.c.bf16 %v1543_v10, %v1543_v10  ;;  %v1573_v23 = vpack.c.bf16 %v1541_v9, %v1541_v9  ;;  %v5853_v10 = vrot.slane %v8928_v27, %v8901_v54  ;;  %v7512_v55 = vld [vmem:[%s8711_s8 + $0x270] ss:$8 sps:$4 sm:$0xff]  }
 0x1a9   : > { %v1574_v19 = vpack.c.bf16 %v1542_v14, %v1542_v14  ;;  %v1576_v20 = vpack.c.bf16 %v1544_v15, %v1544_v15  ;;  %v7497_v14 = vld [vmem:[%s8711_s8 + $0x340] ss:$8 sps:$4 sm:$0xff]   ;;  %v8963_v15 = vsub.s32 %v6011_v3, %v8898_v53  ;;  %v7515_v56 = vld [vmem:[%s8711_s8 + $0x370] ss:$8 sps:$4 sm:$0xff]  }
 0x1ab   : > { %2501 = vmatprep.mubr.bf16.mxu0 %v1574_v19  ;;  %2702 = vmatprep.mubr.bf16.mxu1 %v1576_v20  ;;  %v8932_v30 = vpop.f32.mrb[4].mxu0  ;;  %v8934_v31 = vpop.f32.mrb[4].mxu1  ;;  %v7502_v19 = vld [vmem:[%s8711_s8 + $0x254] ss:$8 sps:$4 sm:$0xff]  }
 0x1ac   : > { %2502 = vmatmul.mubr.bf16.vlgmr.msra.gmra.mrb[32].mxu0 %v1573_v23  ;;  %2703 = vmatmul.mubr.bf16.vlgmr.msra.gmra.mrb[32].mxu1 %v1575_v17  ;;  %v873_v33 = vpop.f32.mrb[5].mxu0  ;;  %v924_v34 = vpop.f32.mrb[5].mxu1  ;;  %v7505_v20 = vld [vmem:[%s8711_s8 + $0x354] ss:$8 sps:$4 sm:$0xff]  }
 0x1ad   : > { %2872 = vmatpush1.bf16.msra.mxu0 %v7470_v16  ;;  %3073 = vmatpush1.bf16.msra.mxu1 %v7473_v18  ;;  %v874_v35 = vadd.f32 %v873_v33, %v584_v21  ;;  %v875_v36 = vpop.f32.mrb[6].mxu0  ;;  %v925_v37 = vadd.f32 %v924_v34, %v592_v22  ;;  %v926_v38 = vpop.f32.mrb[6].mxu1  ;;  %v6006_v16 = vcombine.low %v5871_v2, %v5880_v4  ;;  %v7508_v34 = vld [vmem:[%s8711_s8 + $0x264] ss:$8 sps:$4 sm:$0xff]  }
 0x1ae   : > { %2873 = vmatprep.subr.bf16.mxu0 %v7478_v24  ;;  %3074 = vmatprep.subr.bf16.mxu1 %v7481_v25  ;;  %v876_v40 = vpop.f32.mrb[7].mxu0  ;;  %v927_v41 = vpop.f32.mrb[7].mxu1  ;;  %v6005_v21 = vcombine.low %v5853_v10, %v5862_v11  ;;  %v7500_v24 = vld [vmem:[%s8711_s8 + $0x250] ss:$8 sps:$4 sm:$0xff]  }
 0x1af   : > { %v1546_v42 = vmax.f32 %v874_v35, 0.0  ;;  %v1548_v43 = vmax.f32 %v925_v37, 0.0  ;;  %v5893_v17 = vpop.permute.xlu1 %5892  ;;  %v5884_v18 = vpop.permute.xlu0 %5883  ;;  %v7503_v25 = vld [vmem:[%s8711_s8 + $0x350] ss:$8 sps:$4 sm:$0xff]   ;;  %v7511_v35 = vld [vmem:[%s8711_s8 + $0x364] ss:$8 sps:$4 sm:$0xff]   ;;  %v6022_v38 = vrot.slane %v6006_v16, %v8963_v15 }
 0x1b0   : > { %v5898_v22 = vrot.slane %v5893_v17, %v8901_v54  ;;  %v5889_v23 = vrot.slane %v5884_v18, %v8901_v54  ;;  %v7526_v17 = vld [vmem:[%s8711_s8 + $0x294] ss:$8 sps:$4 sm:$0xff]  }
 0x1b1   : > { %2874 = vmatpush1.bf16.msra.mxu0 %v7476_v28  ;;  %3075 = vmatpush1.bf16.msra.mxu1 %v7479_v29  ;;  %v1578_v46 = vpack.c.bf16 %v1546_v42, %v1546_v42  ;;  %v1580_v47 = vpack.c.bf16 %v1548_v43, %v1548_v43  ;;  %v7506_v43 = vld [vmem:[%s8711_s8 + $0x260] ss:$8 sps:$4 sm:$0xff]   ;;  %v7529_v18 = vld [vmem:[%s8711_s8 + $0x394] ss:$8 sps:$4 sm:$0xff]  }
 0x1b2   : > { %2875 = vmatprep.subr.bf16.mxu0 %v7484_v32  ;;  %3076 = vmatprep.subr.bf16.mxu1 %v7487_v39  ;;  %v6015_v39 = vrot.slane %v6005_v21, %v8963_v15  ;;  %v6007_v40 = vcombine.low %v5889_v23, %v5898_v22  ;;  %v7524_v22 = vld [vmem:[%s8711_s8 + $0x290] ss:$8 sps:$4 sm:$0xff]  }
 0x1b3   : > { %2903 = vmatprep.mubr.bf16.mxu0 %v1578_v46  ;;  %3104 = vmatprep.mubr.bf16.mxu1 %v1580_v47  ;;  %v8944_v60 = vpop.f32.mrb[8].mxu0  ;;  %v8946_v61 = vpop.f32.mrb[8].mxu1  ;;  %v7514_v47 = vld [vmem:[%s8711_s8 + $0x274] ss:$8 sps:$4 sm:$0xff]   ;;  %v7527_v23 = vld [vmem:[%s8711_s8 + $0x390] ss:$8 sps:$4 sm:$0xff]  }
 0x1b4   : > { %v8948_v62 = vpop.f32.mrb[9].mxu0  ;;  %v8950_v63 = vpop.f32.mrb[9].mxu1  ;;  %v6037_v49 = vcombine.low %v6015_v39, %v6022_v38  ;;  %v7535_v38 = vld [vmem:[%s8711_s8 + $0x3a4] ss:$8 sps:$4 sm:$0xff]  }
 0x1b5   : > { %2876 = vmatpush1.bf16.msra.mxu0 %v7482_v44  ;;  %3077 = vmatpush1.bf16.msra.mxu1 %v7485_v45  ;;  %v977_v0 = vpop.f32.mrb[10].mxu0  ;;  %v1028_v1 = vpop.f32.mrb[10].mxu1  ;;  %v7509_v44 = vld [vmem:[%s8711_s8 + $0x360] ss:$8 sps:$4 sm:$0xff]  }
 0x1b6   : > { %2877 = vmatprep.subr.bf16.mxu0 %v7490_v50  ;;  %3078 = vmatprep.subr.bf16.mxu1 %v7493_v51  ;;  %v978_v7 = vpop.f32.mrb[11].mxu0  ;;  %v1029_v9 = vpop.f32.mrb[11].mxu1  ;;  %v6029_v50 = vrot.slane %v6007_v40, %v8963_v15 }
 0x1b7   : > { %v5911_v41 = vpop.permute.xlu1 %5910  ;;  %v5902_v42 = vpop.permute.xlu0 %5901  ;;  %v6045_v7 = vrot.slane %v6037_v49, %v8963_v15  ;;  %v7538_v49 = vld [vmem:[%s8711_s8 + $0x2b4] ss:$8 sps:$4 sm:$0xff]  }
 0x1b8   : > { %v5916_v45 = vrot.slane %v5911_v41, %v8901_v54  ;;  %v5907_v46 = vrot.slane %v5902_v42, %v8901_v54  ;;  %v7530_v41 = vld [vmem:[%s8711_s8 + $0x2a0] ss:$8 sps:$4 sm:$0xff]  }
 0x1b9   : > { %2878 = vmatpush1.bf16.msra.mxu0 %v7488_v58  ;;  %3079 = vmatpush1.bf16.msra.mxu1 %v7491_v59  ;;  %v7533_v42 = vld [vmem:[%s8711_s8 + $0x3a0] ss:$8 sps:$4 sm:$0xff]  }
 0x1ba   : > { %2879 = vmatprep.subr.bf16.mxu0 %v7496_v5  ;;  %3080 = vmatprep.subr.bf16.mxu1 %v7499_v6  ;;  %v6008_v51 = vcombine.low %v5907_v46, %v5916_v45  ;;  %v7520_v5 = vld [vmem:[%s8711_s8 + $0x284] ss:$8 sps:$4 sm:$0xff]  }
 0x1bb   : > { %v8971_v26 = vpop.f32.mrb[12].mxu0  ;;  %v8973_v27 = vpop.f32.mrb[12].mxu1  ;;  %v7523_v6 = vld [vmem:[%s8711_s8 + $0x384] ss:$8 sps:$4 sm:$0xff]  }
 0x1bc   : > { %v8975_v28 = vpop.f32.mrb[13].mxu0  ;;  %v8977_v29 = vpop.f32.mrb[13].mxu1  ;;  %v6036_v2 = vrot.slane %v6008_v51, %v8963_v15  ;;  %v7536_v51 = vld [vmem:[%s8711_s8 + $0x2b0] ss:$8 sps:$4 sm:$0xff]  }
 0x1bd   : > { %2880 = vmatpush1.bf16.msra.mxu0 %v7494_v12  ;;  %3081 = vmatpush1.bf16.msra.mxu1 %v7497_v14  ;;  %v1079_v32 = vpop.f32.mrb[14].mxu0  ;;  %v1130_v33 = vpop.f32.mrb[14].mxu1  ;;  %v7518_v12 = vld [vmem:[%s8711_s8 + $0x280] ss:$8 sps:$4 sm:$0xff]  }
 0x1be   : > { %2881 = vmatprep.subr.bf16.mxu0 %v7502_v19  ;;  %3082 = vmatprep.subr.bf16.mxu1 %v7505_v20  ;;  %v1080_v36 = vpop.f32.mrb[15].mxu0  ;;  %v1131_v37 = vpop.f32.mrb[15].mxu1  ;;  %v6038_v11 = vcombine.low %v6029_v50, %v6036_v2  ;;  %v7521_v14 = vld [vmem:[%s8711_s8 + $0x380] ss:$8 sps:$4 sm:$0xff]   ;;  %v7541_v50 = vld [vmem:[%s8711_s8 + $0x3b4] ss:$8 sps:$4 sm:$0xff]  }
 0x1bf   : > { %v5929_v20 = vpop.permute.xlu1 %5928  ;;  %v5920_v21 = vpop.permute.xlu0 %5919  ;;  %v7532_v37 = vld [vmem:[%s8711_s8 + $0x2a4] ss:$8 sps:$4 sm:$0xff]  }
 0x1c0   : > { %v6052_v16 = vrot.slane %v6038_v11, %v8963_v15  ;;  %v5925_v46 = vrot.slane %v5920_v21, %v8901_v54  ;;  %v7547_v11 = vld [vmem:[%s8711_s8 + $0x3c4] ss:$8 sps:$4 sm:$0xff]  }
 0x1c1   : > { %2882 = vmatpush1.bf16.msra.mxu0 %v7500_v24  ;;  %3083 = vmatpush1.bf16.msra.mxu1 %v7503_v25 }
 0x1c2   : > { %2883 = vmatprep.subr.bf16.mxu0 %v7508_v34  ;;  %3084 = vmatprep.subr.bf16.mxu1 %v7511_v35  ;;  %v9009_v19 = vcombine.low %v6045_v7, %v6052_v16 }
 0x1c3   : > { %v8992_v58 = vpop.f32.mrb[16].mxu0  ;;  %v8994_v59 = vpop.f32.mrb[16].mxu1 }
 0x1c4   : > { %v8996_v0 = vpop.f32.mrb[17].mxu0  ;;  %v8998_v1 = vpop.f32.mrb[17].mxu1  ;;  %v6106_v34 = vrot.slane %v9009_v19, %v8901_v54  ;;  %v6113_v16 = vrot.slane %v9009_v19, %v8906_v57 }
 0x1c5   : > { %2884 = vmatpush1.bf16.msra.mxu0 %v7506_v43  ;;  %3085 = vmatpush1.bf16.msra.mxu1 %v7509_v44  ;;  %v1181_v3 = vpop.f32.mrb[18].mxu0  ;;  %v1232_v4 = vpop.f32.mrb[18].mxu1  ;;  %v5934_v43 = vrot.slane %v5929_v20, %v8901_v54 }
 0x1c6   : > { %2885 = vmatprep.subr.bf16.mxu0 %v7514_v47  ;;  %3086 = vmatprep.subr.bf16.mxu1 %v7517_v48  ;;  %v1182_v9 = vpop.f32.mrb[19].mxu0  ;;  %v1233_v10 = vpop.f32.mrb[19].mxu1 }
 0x1c7   : > { %6108 = vbcast.lane.b32.xlu1 %v6106_v34, 256  ;;  %v5947_v44 = vpop.permute.xlu1 %5946  ;;  %v5938_v45 = vpop.permute.xlu0 %5937  ;;  %v7544_v10 = vld [vmem:[%s8711_s8 + $0x2c4] ss:$8 sps:$4 sm:$0xff]   ;;  %6115 = vbcast.lane.b32.xlu0 %v6113_v16, 256  ;;  %v6119_v34 = vsub.s32 2, %v8898_v53 }
 0x1c8   : > { %v5952_v47 = vrot.slane %v5947_v44, %v8901_v54  ;;  %v5943_v48 = vrot.slane %v5938_v45, %v8901_v54  ;;  %v7551_v44 = vld [vmem:[%s8711_s8 + $0x3d0] ss:$8 sps:$4 sm:$0xff]   ;;  %v580_v45 = vrot.slane %v8913_v8, %v8901_v54  ;;  %v6126_v8 = vsub.s32 3, %v8898_v53 }
 0x1c9   : > { %2886 = vmatpush1.bf16.msra.mxu0 %v7512_v55  ;;  %3087 = vmatpush1.bf16.msra.mxu1 %v7515_v56  ;;  %v7539_v55 = vld [vmem:[%s8711_s8 + $0x3b0] ss:$8 sps:$4 sm:$0xff]  }
 0x1ca   : > { %2887 = vmatprep.subr.bf16.mxu0 %v7520_v5  ;;  %3088 = vmatprep.subr.bf16.mxu1 %v7523_v6  ;;  %v6054_v5 = vcombine.low %v5925_v46, %v5934_v43  ;;  %v6055_v7 = vcombine.low %v5943_v48, %v5952_v47  ;;  %v7548_v43 = vld [vmem:[%s8711_s8 + $0x2d0] ss:$8 sps:$4 sm:$0xff]   ;;  %v9067_v46 = vld [vmem:[%s8709_s20 + $0xa] sm:$0x3] }
 0x1cb   : > { %v9013_v24 = vpop.f32.mrb[20].mxu0  ;;  %v9015_v25 = vpop.f32.mrb[20].mxu1 }
 0x1cc   : > { %v9017_v32 = vpop.f32.mrb[21].mxu0  ;;  %v9019_v33 = vpop.f32.mrb[21].mxu1 }
 0x1cd   : > { %2888 = vmatpush1.bf16.msra.mxu0 %v7518_v12  ;;  %3089 = vmatpush1.bf16.msra.mxu1 %v7521_v14  ;;  %v1283_v35 = vpop.f32.mrb[22].mxu0  ;;  %v1334_v36 = vpop.f32.mrb[22].mxu1 }
 0x1ce   : > { %2889 = vmatprep.subr.bf16.mxu0 %v7526_v17  ;;  %3090 = vmatprep.subr.bf16.mxu1 %v7529_v18  ;;  %v1284_v39 = vpop.f32.mrb[23].mxu0  ;;  %v1335_v40 = vpop.f32.mrb[23].mxu1  ;;  %v7542_v17 = vld [vmem:[%s8711_s8 + $0x2c0] ss:$8 sps:$4 sm:$0xff]   ;;  %v6064_v35 = vrot.slane %v6054_v5, %v8963_v15  ;;  %v6071_v36 = vrot.slane %v6055_v7, %v8963_v15 }
 0x1cf   : > { %v5965_v14 = vpop.permute.xlu1 %5964  ;;  %v5956_v20 = vpop.permute.xlu0 %5955  ;;  %v9057_v39 = vld [vmem:[%s8709_s20 + $0x8] sm:$0x3] }
 0x1d0   : > { %v5970_v18 = vrot.slane %v5965_v14, %v8901_v54  ;;  %v6086_v7 = vcombine.low %v6064_v35, %v6071_v36  ;;  %v7554_v35 = vld [vmem:[%s8711_s8 + $0x2e0] ss:$8 sps:$4 sm:$0xff]  }
 0x1d1   : > { %2890 = vmatpush1.bf16.msra.mxu0 %v7524_v22  ;;  %3091 = vmatpush1.bf16.msra.mxu1 %v7527_v23  ;;  %v7545_v22 = vld [vmem:[%s8711_s8 + $0x3c0] ss:$8 sps:$4 sm:$0xff]   ;;  %v5961_v23 = vrot.slane %v5956_v20, %v8901_v54  ;;  %v600_v20 = vrot.slane %v9057_v39, %v8906_v57 }
 0x1d2   : > { %2891 = vmatprep.subr.bf16.mxu0 %v7532_v37  ;;  %3092 = vmatprep.subr.bf16.mxu1 %v7535_v38  ;;  %v7550_v37 = vld [vmem:[%s8711_s8 + $0x2d4] ss:$8 sps:$4 sm:$0xff]   ;;  %v7557_v36 = vld [vmem:[%s8711_s8 + $0x3e0] ss:$8 sps:$4 sm:$0xff]  }
 0x1d3   : > { %v9035_v56 = vpop.f32.mrb[24].mxu0  ;;  %v9037_v2 = vpop.f32.mrb[24].mxu1  ;;  %v7553_v38 = vld [vmem:[%s8711_s8 + $0x3d4] ss:$8 sps:$4 sm:$0xff]   ;;  %v6056_v40 = vcombine.low %v5961_v23, %v5970_v18  ;;  %v872_v18 = vadd.f32 %v8932_v30, %v580_v45 }
 0x1d4   : > { %v9039_v3 = vpop.f32.mrb[25].mxu0  ;;  %v9041_v4 = vpop.f32.mrb[25].mxu1  ;;  %v7562_v30 = vld [vmem:[%s8711_s8 + $0x2f4] ss:$8 sps:$4 sm:$0xff]  }
 0x1d5   : > { %2892 = vmatpush1.bf16.msra.mxu0 %v7530_v41  ;;  %3093 = vmatpush1.bf16.msra.mxu1 %v7533_v42  ;;  %v1385_v6 = vpop.f32.mrb[26].mxu0  ;;  %v1436_v9 = vpop.f32.mrb[26].mxu1  ;;  %v6120_v42 = vrot.slane %v9009_v19, %v6119_v34  ;;  %v1545_v45 = vmax.f32 %v872_v18, 0.0  ;;  %v7577_v18 = vld [vmem:[%s8711_s8 + $0x514] ss:$8 sps:$4 sm:$0xff]  }
 0x1d6   : > { %2893 = vmatprep.subr.bf16.mxu0 %v7538_v49  ;;  %3094 = vmatprep.subr.bf16.mxu1 %v7541_v50  ;;  %v1386_v12 = vpop.f32.mrb[27].mxu0  ;;  %v1437_v21 = vpop.f32.mrb[27].mxu1  ;;  %v588_v50 = vrot.slane %v8916_v13, %v8901_v54  ;;  %v7559_v13 = vld [vmem:[%s8711_s8 + $0x3e4] ss:$8 sps:$4 sm:$0xff]  }
 0x1d7   : > { %v5983_v41 = vpop.permute.xlu1 %5982  ;;  %v5974_v49 = vpop.permute.xlu0 %5973  ;;  %6122 = vbcast.lane.b32.xlu0 %v6120_v42, 256  ;;  %v608_v21 = vrot.slane %v9067_v46, %v8906_v57 }
 0x1d8   : > { %v5988_v48 = vrot.slane %v5983_v41, %v8901_v54  ;;  %v5979_v5 = vrot.slane %v5974_v49, %v8901_v54  ;;  %v923_v23 = vadd.f32 %v8934_v31, %v588_v50  ;;  %v6094_v41 = vrot.slane %v6086_v7, %v8963_v15  ;;  %v7563_v49 = vld [vmem:[%s8711_s8 + $0x3f0] ss:$8 sps:$4 sm:$0xff]   ;;  %v7568_v7 = vld [vmem:[%s8711_s8 + $0x404] ss:$8 sps:$4 sm:$0xff]  }
 0x1d9   : > { %2894 = vmatpush1.bf16.msra.mxu0 %v7536_v51  ;;  %3095 = vmatpush1.bf16.msra.mxu1 %v7539_v55  ;;  %v7556_v51 = vld [vmem:[%s8711_s8 + $0x2e4] ss:$8 sps:$4 sm:$0xff]  }
 0x1da   : > { %2895 = vmatprep.subr.bf16.mxu0 %v7544_v10  ;;  %3096 = vmatprep.subr.bf16.mxu1 %v7547_v11  ;;  %v6078_v11 = vrot.slane %v6056_v40, %v8963_v15  ;;  %v6057_v12 = vcombine.low %v5979_v5, %v5988_v48  ;;  %v7565_v40 = vld [vmem:[%s8711_s8 + $0x3f4] ss:$8 sps:$4 sm:$0xff]   ;;  %v7560_v48 = vld [vmem:[%s8711_s8 + $0x2f0] ss:$8 sps:$4 sm:$0xff]   ;;  %v1547_v50 = vmax.f32 %v923_v23, 0.0  ;;  %v6140_v5 = vsub.s32 5, %v8898_v53 }
 0x1db   : > { %v9069_v47 = vpop.f32.mrb[28].mxu0  ;;  %v9078_v6 = vpop.f32.mrb[28].mxu1  ;;  %v7575_v23 = vld [vmem:[%s8711_s8 + $0x510] ss:$8 sps:$4 sm:$0xff]  }
 0x1dc   : > { %v9075_v55 = vpop.f32.mrb[29].mxu0  ;;  %v9081_v10 = vpop.f32.mrb[29].mxu1 }
 0x1dd   : > { %2896 = vmatpush1.bf16.msra.mxu0 %v7542_v17  ;;  %3097 = vmatpush1.bf16.msra.mxu1 %v7545_v22  ;;  %v1487_v9 = vpop.f32.mrb[30].mxu0  ;;  %v1538_v16 = vpop.f32.mrb[30].mxu1  ;;  %v6127_v17 = vrot.slane %v9009_v19, %v6126_v8 }
 0x1de   : > { %2897 = vmatprep.subr.bf16.mxu0 %v7550_v37  ;;  %3098 = vmatprep.subr.bf16.mxu1 %v7553_v38  ;;  %v1488_v14 = vpop.f32.mrb[31].mxu0  ;;  %v1539_v22 = vpop.f32.mrb[31].mxu1  ;;  %v6085_v37 = vrot.slane %v6057_v12, %v8963_v15  ;;  %v6133_v38 = vsub.s32 4, %v8898_v53  ;;  %v7571_v9 = vld [vmem:[%s8711_s8 + $0x504] ss:$8 sps:$4 sm:$0xff]   ;;  %v1579_v16 = vpack.c.bf16 %v1547_v50, %v1547_v50 }
 0x1df   : > { %6129 = vbcast.lane.b32.xlu0 %v6127_v17, 256  ;;  %v1577_v14 = vpack.c.bf16 %v1545_v45, %v1545_v45  ;;  %v7574_v17 = vld [vmem:[%s8711_s8 + $0x414] ss:$8 sps:$4 sm:$0xff]   ;;  %v7572_v22 = vld [vmem:[%s8711_s8 + $0x410] ss:$8 sps:$4 sm:$0xff]  }
 0x1e0   : > { %v6087_v42 = vcombine.low %v6078_v11, %v6085_v37  ;;  %v6134_v31 = vrot.slane %v9009_v19, %v6133_v38  ;;  %v7580_v37 = vld [vmem:[%s8711_s8 + $0x424] ss:$8 sps:$4 sm:$0xff]  }
 0x1e1   : > { %2898 = vmatpush1.bf16.msra.mxu0 %v7548_v43  ;;  %3099 = vmatpush1.bf16.msra.mxu1 %v7551_v44  ;;  %v976_v43 = vadd.f32 %v8948_v62, %v600_v20  ;;  %v1027_v44 = vadd.f32 %v8950_v63, %v608_v21  ;;  %v6141_v62 = vrot.slane %v9009_v19, %v6140_v5  ;;  %v7566_v63 = vld [vmem:[%s8711_s8 + $0x400] ss:$8 sps:$4 sm:$0xff]   ;;  %v6147_v21 = vsub.s32 6, %v8898_v53 }
 0x1e2   : > { %2899 = vmatprep.subr.bf16.mxu0 %v7556_v51  ;;  %3100 = vmatprep.subr.bf16.mxu1 %v7559_v13  ;;  %v6101_v51 = vrot.slane %v6087_v42, %v8963_v15  ;;  %v7569_v15 = vld [vmem:[%s8711_s8 + $0x500] ss:$8 sps:$4 sm:$0xff]  }
 0x1e3   : > { %6136 = vbcast.lane.b32.xlu0 %v6134_v31, 256  ;;  %v1550_v11 = vmax.f32 %v976_v43, 0.0  ;;  %v1552_v12 = vmax.f32 %v1027_v44, 0.0  ;;  %v7578_v42 = vld [vmem:[%s8711_s8 + $0x420] ss:$8 sps:$4 sm:$0xff]  }
 0x1e4   : > { %v9112_v13 = vcombine.low %v6094_v41, %v6101_v51  ;;  %v6148_v41 = vrot.slane %v9009_v19, %v6147_v21  ;;  %v7581_v31 = vld [vmem:[%s8711_s8 + $0x520] ss:$8 sps:$4 sm:$0xff]   ;;  %v7584_v43 = vld [vmem:[%s8711_s8 + $0x430] ss:$8 sps:$4 sm:$0xff]   ;;  %v7595_v51 = vld [vmem:[%s8711_s8 + $0x544] ss:$8 sps:$4 sm:$0xff]  }
 0x1e5   : > { %2900 = vmatpush1.bf16.msra.mxu0 %v7554_v35  ;;  %3101 = vmatpush1.bf16.msra.mxu1 %v7557_v36  ;;  %v1582_v35 = vpack.c.bf16 %v1550_v11, %v1550_v11  ;;  %v1584_v36 = vpack.c.bf16 %v1552_v12, %v1552_v12  ;;  %v7587_v44 = vld [vmem:[%s8711_s8 + $0x530] ss:$8 sps:$4 sm:$0xff]   ;;  %v7604_v12 = vld [vmem:[%s8711_s8 + $0x464] ss:$8 sps:$4 sm:$0xff]  }
 0x1e6   : > { %2901 = vmatprep.subr.bf16.mxu0 %v7562_v30  ;;  %3102 = vmatprep.subr.bf16.mxu1 %v7565_v40  ;;  %v6162_v20 = vrot.slane %v9112_v13, %v8901_v54  ;;  %v7583_v30 = vld [vmem:[%s8711_s8 + $0x524] ss:$8 sps:$4 sm:$0xff]   ;;  %v6169_v40 = vrot.slane %v9112_v13, %v8906_v57  ;;  %v6176_v45 = vrot.slane %v9112_v13, %v6119_v34  ;;  %v7599_v11 = vld [vmem:[%s8711_s8 + $0x550] ss:$8 sps:$4 sm:$0xff]  }
 0x1e7   : > { %6143 = vbcast.lane.b32.xlu0 %v6141_v62, 256  ;;  %v6183_v50 = vrot.slane %v9112_v13, %v6126_v8  ;;  %v7592_v34 = vld [vmem:[%s8711_s8 + $0x444] ss:$8 sps:$4 sm:$0xff]   ;;  %v7593_v8 = vld [vmem:[%s8711_s8 + $0x540] ss:$8 sps:$4 sm:$0xff]  }
 0x1e8   : > { %6164 = vbcast.lane.b32.xlu1 %v6162_v20, 256  ;;  %v7598_v62 = vld [vmem:[%s8711_s8 + $0x454] ss:$8 sps:$4 sm:$0xff]  }
 0x1e9   : > { %2902 = vmatpush1.bf16.msra.mxu0 %v7560_v48  ;;  %3103 = vmatpush1.bf16.msra.mxu1 %v7563_v49  ;;  %v7586_v48 = vld [vmem:[%s8711_s8 + $0x434] ss:$8 sps:$4 sm:$0xff]  }
 0x1ea   : > { %3273 = vmatprep.subr.bf16.mxu0 %v7568_v7  ;;  %3474 = vmatprep.subr.bf16.mxu1 %v7571_v9  ;;  %v7589_v49 = vld [vmem:[%s8711_s8 + $0x534] ss:$8 sps:$4 sm:$0xff]   ;;  %v6190_v7 = vrot.slane %v9112_v13, %v6133_v38  ;;  %v7590_v9 = vld [vmem:[%s8711_s8 + $0x440] ss:$8 sps:$4 sm:$0xff]   ;;  %v7596_v38 = vld [vmem:[%s8711_s8 + $0x450] ss:$8 sps:$4 sm:$0xff]  }
 0x1eb   : > { %6150 = vbcast.lane.b32.xlu0 %v6148_v41, 256  ;;  %v7613_v20 = vld [vmem:[%s8711_s8 + $0x574] ss:$8 sps:$4 sm:$0xff]   ;;  %v7620_v41 = vld [vmem:[%s8711_s8 + $0x490] ss:$8 sps:$4 sm:$0xff]  }
 0x1ec   : > { %2904 = vmatmul.mubr.bf16.vlgmr.msra.gmra.mrb[36].mxu0 %v1577_v14  ;;  %3105 = vmatmul.mubr.bf16.vlgmr.msra.gmra.mrb[36].mxu1 %v1579_v16  ;;  %v7607_v14 = vld [vmem:[%s8711_s8 + $0x564] ss:$8 sps:$4 sm:$0xff]   ;;  %v6204_v16 = vrot.slane %v9112_v13, %v6147_v21  ;;  %v7611_v21 = vld [vmem:[%s8711_s8 + $0x570] ss:$8 sps:$4 sm:$0xff]  }
 0x1ed   : > { %3274 = vmatpush1.bf16.msra.mxu0 %v7566_v63  ;;  %3475 = vmatpush1.bf16.msra.mxu1 %v7569_v15  ;;  %v7601_v63 = vld [vmem:[%s8711_s8 + $0x554] ss:$8 sps:$4 sm:$0xff]   ;;  %v6197_v15 = vrot.slane %v9112_v13, %v6140_v5  ;;  %v7602_v5 = vld [vmem:[%s8711_s8 + $0x460] ss:$8 sps:$4 sm:$0xff]  }
 0x1ee   : > { %3275 = vmatprep.subr.bf16.mxu0 %v7574_v17  ;;  %3476 = vmatprep.subr.bf16.mxu1 %v7577_v18  ;;  %v7605_v17 = vld [vmem:[%s8711_s8 + $0x560] ss:$8 sps:$4 sm:$0xff]   ;;  %v7610_v18 = vld [vmem:[%s8711_s8 + $0x474] ss:$8 sps:$4 sm:$0xff]  }
 0x1ef   : > { %3305 = vmatprep.mubr.bf16.mxu0 %v1582_v35  ;;  %3506 = vmatprep.mubr.bf16.mxu1 %v1584_v36  ;;  %v7619_v35 = vld [vmem:[%s8711_s8 + $0x584] ss:$8 sps:$4 sm:$0xff]   ;;  %v7614_v36 = vld [vmem:[%s8711_s8 + $0x480] ss:$8 sps:$4 sm:$0xff]  }
 0x1f0   : > { %6171 = vbcast.lane.b32.xlu1 %v6169_v40, 256  ;;  %v7625_v40 = vld [vmem:[%s8711_s8 + $0x594] ss:$8 sps:$4 sm:$0xff]  }
 0x1f1   : > { %3276 = vmatpush1.bf16.msra.mxu0 %v7572_v22  ;;  %3477 = vmatpush1.bf16.msra.mxu1 %v7575_v23  ;;  %v7608_v22 = vld [vmem:[%s8711_s8 + $0x470] ss:$8 sps:$4 sm:$0xff]   ;;  %v7616_v23 = vld [vmem:[%s8711_s8 + $0x484] ss:$8 sps:$4 sm:$0xff]  }
 0x1f2   : > { %3277 = vmatprep.subr.bf16.mxu0 %v7580_v37  ;;  %3478 = vmatprep.subr.bf16.mxu1 %v7583_v30  ;;  %v7617_v37 = vld [vmem:[%s8711_s8 + $0x580] ss:$8 sps:$4 sm:$0xff]   ;;  %v7622_v30 = vld [vmem:[%s8711_s8 + $0x494] ss:$8 sps:$4 sm:$0xff]  }
 0x1f4   : > { %6178 = vbcast.lane.b32.xlu1 %v6176_v45, 256  ;;  %v7631_v45 = vld [vmem:[%s8711_s8 + $0x5a4] ss:$8 sps:$4 sm:$0xff]  }
 0x1f5   : > { %3278 = vmatpush1.bf16.msra.mxu0 %v7578_v42  ;;  %3479 = vmatpush1.bf16.msra.mxu1 %v7581_v31  ;;  %v7623_v42 = vld [vmem:[%s8711_s8 + $0x590] ss:$8 sps:$4 sm:$0xff]   ;;  %v7628_v31 = vld [vmem:[%s8711_s8 + $0x4a4] ss:$8 sps:$4 sm:$0xff]  }
 0x1f6   : > { %3279 = vmatprep.subr.bf16.mxu0 %v7586_v48  ;;  %3480 = vmatprep.subr.bf16.mxu1 %v7589_v49  ;;  %v7626_v48 = vld [vmem:[%s8711_s8 + $0x4a0] ss:$8 sps:$4 sm:$0xff]  }
 0x1f7   : > { %v7629_v49 = vld [vmem:[%s8711_s8 + $0x5a0] ss:$8 sps:$4 sm:$0xff]  }
 0x1f8   : > { %6185 = vbcast.lane.b32.xlu1 %v6183_v50, 256  ;;  %v7632_v50 = vld [vmem:[%s8711_s8 + $0x4b0] ss:$8 sps:$4 sm:$0xff]  }
 0x1f9   : > { %3280 = vmatpush1.bf16.msra.mxu0 %v7584_v43  ;;  %3481 = vmatpush1.bf16.msra.mxu1 %v7587_v44  ;;  %v7634_v43 = vld [vmem:[%s8711_s8 + $0x4b4] ss:$8 sps:$4 sm:$0xff]  }
 0x1fa   : > { %3281 = vmatprep.subr.bf16.mxu0 %v7592_v34  ;;  %3482 = vmatprep.subr.bf16.mxu1 %v7595_v51  ;;  %v7637_v44 = vld [vmem:[%s8711_s8 + $0x5b4] ss:$8 sps:$4 sm:$0xff]   ;;  %v7635_v34 = vld [vmem:[%s8711_s8 + $0x5b0] ss:$8 sps:$4 sm:$0xff]   ;;  %v7640_v51 = vld [vmem:[%s8711_s8 + $0x4c4] ss:$8 sps:$4 sm:$0xff]  }
 0x1fc   : > { %6192 = vbcast.lane.b32.xlu1 %v6190_v7, 256  ;;  %v7643_v7 = vld [vmem:[%s8711_s8 + $0x5c4] ss:$8 sps:$4 sm:$0xff]  }
 0x1fd   : > { %3282 = vmatpush1.bf16.msra.mxu0 %v7590_v9  ;;  %3483 = vmatpush1.bf16.msra.mxu1 %v7593_v8  ;;  %v7638_v9 = vld [vmem:[%s8711_s8 + $0x4c0] ss:$8 sps:$4 sm:$0xff]  }
 0x1fe   : > { %3283 = vmatprep.subr.bf16.mxu0 %v7598_v62  ;;  %3484 = vmatprep.subr.bf16.mxu1 %v7601_v63  ;;  %v7641_v8 = vld [vmem:[%s8711_s8 + $0x5c0] ss:$8 sps:$4 sm:$0xff]   ;;  %v7646_v62 = vld [vmem:[%s8711_s8 + $0x4d4] ss:$8 sps:$4 sm:$0xff]  }
 0x1ff   : > { %v7649_v63 = vld [vmem:[%s8711_s8 + $0x5d4] ss:$8 sps:$4 sm:$0xff]  }
 0x200   : > { %6199 = vbcast.lane.b32.xlu1 %v6197_v15, 256  ;;  %v9189_v15 = vld [vmem:[%s8709_s20 + $0xc] sm:$0x3] }
 0x201   : > { %3284 = vmatpush1.bf16.msra.mxu0 %v7596_v38  ;;  %3485 = vmatpush1.bf16.msra.mxu1 %v7599_v11  ;;  %v7644_v38 = vld [vmem:[%s8711_s8 + $0x4d0] ss:$8 sps:$4 sm:$0xff]  }
 0x202   : > { %3285 = vmatprep.subr.bf16.mxu0 %v7604_v12  ;;  %3486 = vmatprep.subr.bf16.mxu1 %v7607_v14  ;;  %v7647_v11 = vld [vmem:[%s8711_s8 + $0x5d0] ss:$8 sps:$4 sm:$0xff]   ;;  %v9194_v12 = vld [vmem:[%s8709_s20 + $0xe] sm:$0x3]  ;;  %v596_v14 = vrot.slane %v9057_v39, %v8901_v54  ;;  %v7650_v39 = vld [vmem:[%s8711_s8 + $0x4e0] ss:$8 sps:$4 sm:$0xff]  }
 0x204   : > { %6206 = vbcast.lane.b32.xlu1 %v6204_v16, 256  ;;  %v604_v16 = vrot.slane %v9067_v46, %v8901_v54 }
 0x205   : > { %3286 = vmatpush1.bf16.msra.mxu0 %v7602_v5  ;;  %3487 = vmatpush1.bf16.msra.mxu1 %v7605_v17  ;;  %v7652_v5 = vld [vmem:[%s8711_s8 + $0x4e4] ss:$8 sps:$4 sm:$0xff]  }
 0x206   : > { %3287 = vmatprep.subr.bf16.mxu0 %v7610_v18  ;;  %3488 = vmatprep.subr.bf16.mxu1 %v7613_v20  ;;  %v7655_v17 = vld [vmem:[%s8711_s8 + $0x5e4] ss:$8 sps:$4 sm:$0xff]   ;;  %v616_v18 = vrot.slane %v9189_v15, %v8906_v57  ;;  %v624_v20 = vrot.slane %v9194_v12, %v8906_v57  ;;  %v1025_v46 = vadd.f32 %v8946_v61, %v604_v16  ;;  %v7683_v16 = vld [vmem:[%s8711_s8 + $0x730] ss:$8 sps:$4 sm:$0xff]  }
 0x207   : > { %v7664_v61 = vld [vmem:[%s8711_s8 + $0x604] ss:$8 sps:$4 sm:$0xff]  }
 0x209   : > { %3288 = vmatpush1.bf16.msra.mxu0 %v7608_v22  ;;  %3489 = vmatpush1.bf16.msra.mxu1 %v7611_v21  ;;  %v7653_v22 = vld [vmem:[%s8711_s8 + $0x5e0] ss:$8 sps:$4 sm:$0xff]   ;;  %v974_v21 = vadd.f32 %v8944_v60, %v596_v14  ;;  %v1551_v60 = vmax.f32 %v1025_v46, 0.0  ;;  %v7680_v14 = vld [vmem:[%s8711_s8 + $0x630] ss:$8 sps:$4 sm:$0xff]  }
 0x20a   : > { %3289 = vmatprep.subr.bf16.mxu0 %v7616_v23  ;;  %3490 = vmatprep.subr.bf16.mxu1 %v7619_v35  ;;  %v7658_v23 = vld [vmem:[%s8711_s8 + $0x4f4] ss:$8 sps:$4 sm:$0xff]   ;;  %v7695_v46 = vld [vmem:[%s8711_s8 + $0x750] ss:$8 sps:$4 sm:$0xff]  }
 0x20b   : > { %v7661_v35 = vld [vmem:[%s8711_s8 + $0x5f4] ss:$8 sps:$4 sm:$0xff]  }
 0x20d   : > { %3290 = vmatpush1.bf16.msra.mxu0 %v7614_v36  ;;  %3491 = vmatpush1.bf16.msra.mxu1 %v7617_v37  ;;  %v1078_v36 = vadd.f32 %v8975_v28, %v616_v18  ;;  %v1129_v37 = vadd.f32 %v8977_v29, %v624_v20  ;;  %v7662_v28 = vld [vmem:[%s8711_s8 + $0x600] ss:$8 sps:$4 sm:$0xff]  }
 0x20e   : > { %3291 = vmatprep.subr.bf16.mxu0 %v7622_v30  ;;  %3492 = vmatprep.subr.bf16.mxu1 %v7625_v40  ;;  %v7656_v30 = vld [vmem:[%s8711_s8 + $0x4f0] ss:$8 sps:$4 sm:$0xff]   ;;  %v7686_v18 = vld [vmem:[%s8711_s8 + $0x640] ss:$8 sps:$4 sm:$0xff]  }
 0x20f   : > { %v7659_v40 = vld [vmem:[%s8711_s8 + $0x5f0] ss:$8 sps:$4 sm:$0xff]   ;;  %v7689_v20 = vld [vmem:[%s8711_s8 + $0x740] ss:$8 sps:$4 sm:$0xff]  }
 0x211   : > { %3292 = vmatpush1.bf16.msra.mxu0 %v7620_v41  ;;  %3493 = vmatpush1.bf16.msra.mxu1 %v7623_v42  ;;  %v1549_v41 = vmax.f32 %v974_v21, 0.0  ;;  %v7667_v42 = vld [vmem:[%s8711_s8 + $0x704] ss:$8 sps:$4 sm:$0xff]   ;;  %v7692_v21 = vld [vmem:[%s8711_s8 + $0x650] ss:$8 sps:$4 sm:$0xff]  }
 0x212   : > { %3293 = vmatprep.subr.bf16.mxu0 %v7628_v31  ;;  %3494 = vmatprep.subr.bf16.mxu1 %v7631_v45  ;;  %v1554_v31 = vmax.f32 %v1078_v36, 0.0  ;;  %v1556_v45 = vmax.f32 %v1129_v37, 0.0  ;;  %v7698_v36 = vld [vmem:[%s8711_s8 + $0x660] ss:$8 sps:$4 sm:$0xff]  }
 0x213   : > { %v1581_v29 = vpack.c.bf16 %v1549_v41, %v1549_v41  ;;  %v7701_v37 = vld [vmem:[%s8711_s8 + $0x760] ss:$8 sps:$4 sm:$0xff]   ;;  %v7704_v41 = vld [vmem:[%s8711_s8 + $0x670] ss:$8 sps:$4 sm:$0xff]  }
 0x215   : > { %3294 = vmatpush1.bf16.msra.mxu0 %v7626_v48  ;;  %3495 = vmatpush1.bf16.msra.mxu1 %v7629_v49  ;;  %v1583_v48 = vpack.c.bf16 %v1551_v60, %v1551_v60  ;;  %v7665_v49 = vld [vmem:[%s8711_s8 + $0x700] ss:$8 sps:$4 sm:$0xff]   ;;  %v7707_v60 = vld [vmem:[%s8711_s8 + $0x770] ss:$8 sps:$4 sm:$0xff]  }
 0x216   : > { %3295 = vmatprep.subr.bf16.mxu0 %v7634_v43  ;;  %3496 = vmatprep.subr.bf16.mxu1 %v7637_v44  ;;  %v1586_v43 = vpack.c.bf16 %v1554_v31, %v1554_v31  ;;  %v7670_v44 = vld [vmem:[%s8711_s8 + $0x614] ss:$8 sps:$4 sm:$0xff]   ;;  %v7710_v31 = vld [vmem:[%s8711_s8 + $0x680] ss:$8 sps:$4 sm:$0xff]  }
 0x219   : > { %3296 = vmatpush1.bf16.msra.mxu0 %v7632_v50  ;;  %3497 = vmatpush1.bf16.msra.mxu1 %v7635_v34  ;;  %v7673_v50 = vld [vmem:[%s8711_s8 + $0x714] ss:$8 sps:$4 sm:$0xff]   ;;  %v1588_v34 = vpack.c.bf16 %v1556_v45, %v1556_v45  ;;  %v7713_v45 = vld [vmem:[%s8711_s8 + $0x780] ss:$8 sps:$4 sm:$0xff]  }
 0x21a   : > { %3297 = vmatprep.subr.bf16.mxu0 %v7640_v51  ;;  %3498 = vmatprep.subr.bf16.mxu1 %v7643_v7  ;;  %v7668_v51 = vld [vmem:[%s8711_s8 + $0x610] ss:$8 sps:$4 sm:$0xff]  }
 0x21b   : > { %v7671_v7 = vld [vmem:[%s8711_s8 + $0x710] ss:$8 sps:$4 sm:$0xff]  }
 0x21d   : > { %3298 = vmatpush1.bf16.msra.mxu0 %v7638_v9  ;;  %3499 = vmatpush1.bf16.msra.mxu1 %v7641_v8  ;;  %v7676_v9 = vld [vmem:[%s8711_s8 + $0x624] ss:$8 sps:$4 sm:$0xff]  }
 0x21e   : > { %3299 = vmatprep.subr.bf16.mxu0 %v7646_v62  ;;  %3500 = vmatprep.subr.bf16.mxu1 %v7649_v63  ;;  %v7679_v8 = vld [vmem:[%s8711_s8 + $0x724] ss:$8 sps:$4 sm:$0xff]   ;;  %v7674_v62 = vld [vmem:[%s8711_s8 + $0x620] ss:$8 sps:$4 sm:$0xff]  }
 0x21f   : > { %v7677_v63 = vld [vmem:[%s8711_s8 + $0x720] ss:$8 sps:$4 sm:$0xff]  }
 0x221   : > { %3300 = vmatpush1.bf16.msra.mxu0 %v7644_v38  ;;  %3501 = vmatpush1.bf16.msra.mxu1 %v7647_v11  ;;  %v7682_v38 = vld [vmem:[%s8711_s8 + $0x634] ss:$8 sps:$4 sm:$0xff]  }
 0x222   : > { %3301 = vmatprep.subr.bf16.mxu0 %v7652_v5  ;;  %3502 = vmatprep.subr.bf16.mxu1 %v7655_v17  ;;  %v7685_v11 = vld [vmem:[%s8711_s8 + $0x734] ss:$8 sps:$4 sm:$0xff]   ;;  %v7688_v5 = vld [vmem:[%s8711_s8 + $0x644] ss:$8 sps:$4 sm:$0xff]  }
 0x223   : > { %v7691_v17 = vld [vmem:[%s8711_s8 + $0x744] ss:$8 sps:$4 sm:$0xff]  }
 0x225   : > { %3302 = vmatpush1.bf16.msra.mxu0 %v7650_v39  ;;  %3503 = vmatpush1.bf16.msra.mxu1 %v7653_v22  ;;  %v7694_v39 = vld [vmem:[%s8711_s8 + $0x654] ss:$8 sps:$4 sm:$0xff]  }
 0x226   : > { %3303 = vmatprep.subr.bf16.mxu0 %v7658_v23  ;;  %3504 = vmatprep.subr.bf16.mxu1 %v7661_v35  ;;  %v7697_v22 = vld [vmem:[%s8711_s8 + $0x754] ss:$8 sps:$4 sm:$0xff]   ;;  %v7700_v23 = vld [vmem:[%s8711_s8 + $0x664] ss:$8 sps:$4 sm:$0xff]  }
 0x227   : > { %v7703_v35 = vld [vmem:[%s8711_s8 + $0x764] ss:$8 sps:$4 sm:$0xff]  }
 0x229   : > { %3304 = vmatpush1.bf16.msra.mxu0 %v7656_v30  ;;  %3505 = vmatpush1.bf16.msra.mxu1 %v7659_v40  ;;  %v7706_v30 = vld [vmem:[%s8711_s8 + $0x674] ss:$8 sps:$4 sm:$0xff]  }
 0x22a   : > { %3675 = vmatprep.subr.bf16.mxu0 %v7664_v61  ;;  %3876 = vmatprep.subr.bf16.mxu1 %v7667_v42  ;;  %v7709_v40 = vld [vmem:[%s8711_s8 + $0x774] ss:$8 sps:$4 sm:$0xff]   ;;  %v7712_v61 = vld [vmem:[%s8711_s8 + $0x684] ss:$8 sps:$4 sm:$0xff]  }
 0x22b   : > { %v7715_v42 = vld [vmem:[%s8711_s8 + $0x784] ss:$8 sps:$4 sm:$0xff]  }
 0x22c   : > { %3306 = vmatmul.mubr.bf16.vlgmr.msra.gmra.mrb[40].mxu0 %v1581_v29  ;;  %3507 = vmatmul.mubr.bf16.vlgmr.msra.gmra.mrb[40].mxu1 %v1583_v48  ;;  %v7721_v29 = vld [vmem:[%s8711_s8 + $0x794] ss:$8 sps:$4 sm:$0xff]   ;;  %v7716_v48 = vld [vmem:[%s8711_s8 + $0x690] ss:$8 sps:$4 sm:$0xff]  }
 0x22d   : > { %3676 = vmatpush1.bf16.msra.mxu0 %v7662_v28  ;;  %3707 = vmatprep.mubr.bf16.mxu0 %v1586_v43  ;;  %v7718_v28 = vld [vmem:[%s8711_s8 + $0x694] ss:$8 sps:$4 sm:$0xff]   ;;  %v7724_v43 = vld [vmem:[%s8711_s8 + $0x6a4] ss:$8 sps:$4 sm:$0xff]  }
 0x22e   : > { %3877 = vmatpush1.bf16.msra.mxu1 %v7665_v49  ;;  %3908 = vmatprep.mubr.bf16.mxu1 %v1588_v34  ;;  %v7719_v49 = vld [vmem:[%s8711_s8 + $0x790] ss:$8 sps:$4 sm:$0xff]   ;;  %v7725_v34 = vld [vmem:[%s8711_s8 + $0x7a0] ss:$8 sps:$4 sm:$0xff]  }
 0x22f   : > { %3677 = vmatprep.subr.bf16.mxu0 %v7670_v44  ;;  %3878 = vmatprep.subr.bf16.mxu1 %v7673_v50  ;;  %v7727_v44 = vld [vmem:[%s8711_s8 + $0x7a4] ss:$8 sps:$4 sm:$0xff]   ;;  %v7722_v50 = vld [vmem:[%s8711_s8 + $0x6a0] ss:$8 sps:$4 sm:$0xff]  }
 0x231   : > { %3678 = vmatpush1.bf16.msra.mxu0 %v7668_v51  ;;  %v7730_v51 = vld [vmem:[%s8711_s8 + $0x6b4] ss:$8 sps:$4 sm:$0xff]  }
 0x232   : > { %3879 = vmatpush1.bf16.msra.mxu1 %v7671_v7  ;;  %3679 = vmatprep.subr.bf16.mxu0 %v7676_v9  ;;  %v7733_v7 = vld [vmem:[%s8711_s8 + $0x7b4] ss:$8 sps:$4 sm:$0xff]   ;;  %v7728_v9 = vld [vmem:[%s8711_s8 + $0x6b0] ss:$8 sps:$4 sm:$0xff]  }
 0x233   : > { %3880 = vmatprep.subr.bf16.mxu1 %v7679_v8  ;;  %v7731_v8 = vld [vmem:[%s8711_s8 + $0x7b0] ss:$8 sps:$4 sm:$0xff]  }
 0x235   : > { %3680 = vmatpush1.bf16.msra.mxu0 %v7674_v62  ;;  %v7736_v62 = vld [vmem:[%s8711_s8 + $0x6c4] ss:$8 sps:$4 sm:$0xff]  }
 0x236   : > { %3881 = vmatpush1.bf16.msra.mxu1 %v7677_v63  ;;  %3681 = vmatprep.subr.bf16.mxu0 %v7682_v38  ;;  %v7739_v63 = vld [vmem:[%s8711_s8 + $0x7c4] ss:$8 sps:$4 sm:$0xff]   ;;  %v7734_v38 = vld [vmem:[%s8711_s8 + $0x6c0] ss:$8 sps:$4 sm:$0xff]  }
 0x237   : > { %3882 = vmatprep.subr.bf16.mxu1 %v7685_v11  ;;  %v7737_v11 = vld [vmem:[%s8711_s8 + $0x7c0] ss:$8 sps:$4 sm:$0xff]  }
 0x239   : > { %3682 = vmatpush1.bf16.msra.mxu0 %v7680_v14  ;;  %v7742_v14 = vld [vmem:[%s8711_s8 + $0x6d4] ss:$8 sps:$4 sm:$0xff]  }
 0x23a   : > { %3883 = vmatpush1.bf16.msra.mxu1 %v7683_v16  ;;  %3683 = vmatprep.subr.bf16.mxu0 %v7688_v5  ;;  %v7745_v16 = vld [vmem:[%s8711_s8 + $0x7d4] ss:$8 sps:$4 sm:$0xff]   ;;  %v9271_v5 = vld [vmem:[%s8709_s20 + $0x10] sm:$0x3] }
 0x23b   : > { %3884 = vmatprep.subr.bf16.mxu1 %v7691_v17  ;;  %v7740_v17 = vld [vmem:[%s8711_s8 + $0x6d0] ss:$8 sps:$4 sm:$0xff]  }
 0x23d   : > { %3684 = vmatpush1.bf16.msra.mxu0 %v7686_v18  ;;  %v612_v18 = vrot.slane %v9189_v15, %v8901_v54 }
 0x23e   : > { %3885 = vmatpush1.bf16.msra.mxu1 %v7689_v20  ;;  %3685 = vmatprep.subr.bf16.mxu0 %v7694_v39  ;;  %v9277_v20 = vld [vmem:[%s8709_s20 + $0x12] sm:$0x3] }
 0x23f   : > { %3886 = vmatprep.subr.bf16.mxu1 %v7697_v22  ;;  %v7743_v39 = vld [vmem:[%s8711_s8 + $0x7d0] ss:$8 sps:$4 sm:$0xff]   ;;  %v7748_v22 = vld [vmem:[%s8711_s8 + $0x6e4] ss:$8 sps:$4 sm:$0xff]   ;;  %v640_v15 = vrot.slane %v9277_v20, %v8906_v57 }
 0x241   : > { %3686 = vmatpush1.bf16.msra.mxu0 %v7692_v21  ;;  %v620_v21 = vrot.slane %v9194_v12, %v8901_v54  ;;  %v7754_v12 = vld [vmem:[%s8711_s8 + $0x6f4] ss:$8 sps:$4 sm:$0xff]  }
 0x242   : > { %3887 = vmatpush1.bf16.msra.mxu1 %v7695_v46  ;;  %3687 = vmatprep.subr.bf16.mxu0 %v7700_v23  ;;  %v7751_v46 = vld [vmem:[%s8711_s8 + $0x7e4] ss:$8 sps:$4 sm:$0xff]   ;;  %v632_v23 = vrot.slane %v9271_v5, %v8906_v57 }
 0x243   : > { %3888 = vmatprep.subr.bf16.mxu1 %v7703_v35  ;;  %v7746_v35 = vld [vmem:[%s8711_s8 + $0x6e0] ss:$8 sps:$4 sm:$0xff]  }
 0x245   : > { %3688 = vmatpush1.bf16.msra.mxu0 %v7698_v36  ;;  %v1076_v36 = vadd.f32 %v8971_v26, %v612_v18  ;;  %v7755_v26 = vld [vmem:[%s8711_s8 + $0x7f0] ss:$8 sps:$4 sm:$0xff]   ;;  %v7787_v18 = vld [vmem:[%s8711_s8 + $0x944] ss:$8 sps:$4 sm:$0xff]  }
 0x246   : > { %3889 = vmatpush1.bf16.msra.mxu1 %v7701_v37  ;;  %3689 = vmatprep.subr.bf16.mxu0 %v7706_v30  ;;  %v7749_v37 = vld [vmem:[%s8711_s8 + $0x7e0] ss:$8 sps:$4 sm:$0xff]   ;;  %v1127_v30 = vadd.f32 %v8973_v27, %v620_v21  ;;  %v7763_v27 = vld [vmem:[%s8711_s8 + $0x904] ss:$8 sps:$4 sm:$0xff]  }
 0x247   : > { %3890 = vmatprep.subr.bf16.mxu1 %v7709_v40  ;;  %v7757_v40 = vld [vmem:[%s8711_s8 + $0x7f4] ss:$8 sps:$4 sm:$0xff]   ;;  %v2118_v21 = vld [vmem:[%s8717_s27 + $0x2] sm:$0x3] }
 0x249   : > { %3690 = vmatpush1.bf16.msra.mxu0 %v7704_v41  ;;  %v1180_v41 = vadd.f32 %v8996_v0, %v632_v23  ;;  %v7758_v0 = vld [vmem:[%s8711_s8 + $0x800] ss:$8 sps:$4 sm:$0xff]   ;;  %v7790_v23 = vld [vmem:[%s8711_s8 + $0x854] ss:$8 sps:$4 sm:$0xff]  }
 0x24a   : > { %3891 = vmatpush1.bf16.msra.mxu1 %v7707_v60  ;;  %3691 = vmatprep.subr.bf16.mxu0 %v7712_v61  ;;  %v1231_v60 = vadd.f32 %v8998_v1, %v640_v15  ;;  %v7752_v61 = vld [vmem:[%s8711_s8 + $0x6f0] ss:$8 sps:$4 sm:$0xff]   ;;  %v7761_v1 = vld [vmem:[%s8711_s8 + $0x900] ss:$8 sps:$4 sm:$0xff]   ;;  %v7793_v15 = vld [vmem:[%s8711_s8 + $0x954] ss:$8 sps:$4 sm:$0xff]  }
 0x24b   : > { %3892 = vmatprep.subr.bf16.mxu1 %v7715_v42  ;;  %v1553_v42 = vmax.f32 %v1076_v36, 0.0  ;;  %v2160_v36 = vrot.slane %v2118_v21, %v8901_v54 }
 0x24d   : > { %3692 = vmatpush1.bf16.msra.mxu0 %v7710_v31  ;;  %v7760_v31 = vld [vmem:[%s8711_s8 + $0x804] ss:$8 sps:$4 sm:$0xff]  }
 0x24e   : > { %3893 = vmatpush1.bf16.msra.mxu1 %v7713_v45  ;;  %3693 = vmatprep.subr.bf16.mxu0 %v7718_v28  ;;  %v1555_v45 = vmax.f32 %v1127_v30, 0.0  ;;  %v1558_v28 = vmax.f32 %v1180_v41, 0.0  ;;  %v7788_v30 = vld [vmem:[%s8711_s8 + $0x850] ss:$8 sps:$4 sm:$0xff]   ;;  %v2164_v41 = vrot.slane %v2118_v21, %v8906_v57 }
 0x24f   : > { %3894 = vmatprep.subr.bf16.mxu1 %v7721_v29  ;;  %v1560_v29 = vmax.f32 %v1231_v60, 0.0  ;;  %v7791_v60 = vld [vmem:[%s8711_s8 + $0x950] ss:$8 sps:$4 sm:$0xff]  }
 0x250   : > { %v7800_v21 = vld [vmem:[%s8711_s8 + $0x870] ss:$8 sps:$4 sm:$0xff]  }
 0x251   : > { %3694 = vmatpush1.bf16.msra.mxu0 %v7716_v48  ;;  %v1585_v48 = vpack.c.bf16 %v1553_v42, %v1553_v42 }
 0x252   : > { %3895 = vmatpush1.bf16.msra.mxu1 %v7719_v49  ;;  %3695 = vmatprep.subr.bf16.mxu0 %v7724_v43  ;;  %v1587_v49 = vpack.c.bf16 %v1555_v45, %v1555_v45  ;;  %v7766_v43 = vld [vmem:[%s8711_s8 + $0x814] ss:$8 sps:$4 sm:$0xff]  }
 0x253   : > { %3896 = vmatprep.subr.bf16.mxu1 %v7727_v44  ;;  %v1590_v44 = vpack.c.bf16 %v1558_v28, %v1558_v28 }
 0x255   : > { %3696 = vmatpush1.bf16.msra.mxu0 %v7722_v50  ;;  %v7769_v50 = vld [vmem:[%s8711_s8 + $0x914] ss:$8 sps:$4 sm:$0xff]  }
 0x256   : > { %3897 = vmatpush1.bf16.msra.mxu1 %v7725_v34  ;;  %3697 = vmatprep.subr.bf16.mxu0 %v7730_v51  ;;  %v1592_v34 = vpack.c.bf16 %v1560_v29, %v1560_v29  ;;  %v7764_v51 = vld [vmem:[%s8711_s8 + $0x810] ss:$8 sps:$4 sm:$0xff]  }
 0x257   : > { %3898 = vmatprep.subr.bf16.mxu1 %v7733_v7  ;;  %v7767_v7 = vld [vmem:[%s8711_s8 + $0x910] ss:$8 sps:$4 sm:$0xff]  }
 0x259   : > { %3698 = vmatpush1.bf16.msra.mxu0 %v7728_v9  ;;  %v7772_v9 = vld [vmem:[%s8711_s8 + $0x824] ss:$8 sps:$4 sm:$0xff]  }
 0x25a   : > { %3899 = vmatpush1.bf16.msra.mxu1 %v7731_v8  ;;  %3699 = vmatprep.subr.bf16.mxu0 %v7736_v62  ;;  %v7775_v8 = vld [vmem:[%s8711_s8 + $0x924] ss:$8 sps:$4 sm:$0xff]   ;;  %v7770_v62 = vld [vmem:[%s8711_s8 + $0x820] ss:$8 sps:$4 sm:$0xff]  }
 0x25b   : > { %3900 = vmatprep.subr.bf16.mxu1 %v7739_v63  ;;  %v7773_v63 = vld [vmem:[%s8711_s8 + $0x920] ss:$8 sps:$4 sm:$0xff]  }
 0x25d   : > { %3700 = vmatpush1.bf16.msra.mxu0 %v7734_v38  ;;  %v7778_v38 = vld [vmem:[%s8711_s8 + $0x834] ss:$8 sps:$4 sm:$0xff]  }
 0x25e   : > { %3901 = vmatpush1.bf16.msra.mxu1 %v7737_v11  ;;  %3701 = vmatprep.subr.bf16.mxu0 %v7742_v14  ;;  %v7781_v11 = vld [vmem:[%s8711_s8 + $0x934] ss:$8 sps:$4 sm:$0xff]   ;;  %v7776_v14 = vld [vmem:[%s8711_s8 + $0x830] ss:$8 sps:$4 sm:$0xff]  }
 0x25f   : > { %3902 = vmatprep.subr.bf16.mxu1 %v7745_v16  ;;  %v7779_v16 = vld [vmem:[%s8711_s8 + $0x930] ss:$8 sps:$4 sm:$0xff]  }
 0x261   : > { %3702 = vmatpush1.bf16.msra.mxu0 %v7740_v17  ;;  %v7784_v17 = vld [vmem:[%s8711_s8 + $0x844] ss:$8 sps:$4 sm:$0xff]  }
 0x262   : > { %3903 = vmatpush1.bf16.msra.mxu1 %v7743_v39  ;;  %3703 = vmatprep.subr.bf16.mxu0 %v7748_v22  ;;  %v7782_v39 = vld [vmem:[%s8711_s8 + $0x840] ss:$8 sps:$4 sm:$0xff]  }
 0x263   : > { %3904 = vmatprep.subr.bf16.mxu1 %v7751_v46  ;;  %v2117_v22 = vld [vmem:[%s8717_s27] sm:$0x3] }
 0x264   : > { %v7785_v46 = vld [vmem:[%s8711_s8 + $0x940] ss:$8 sps:$4 sm:$0xff]  }
 0x265   : > { %3704 = vmatpush1.bf16.msra.mxu0 %v7746_v35  ;;  %v2152_v35 = vrot.slane %v2117_v22, %v8901_v54 }
 0x266   : > { %3905 = vmatpush1.bf16.msra.mxu1 %v7749_v37  ;;  %3705 = vmatprep.subr.bf16.mxu0 %v7754_v12  ;;  %v5557_v37 = vld [vmem:[%s8719_s11] sm:$0x3]  ;;  %v5558_v12 = vld [vmem:[%s8719_s11 + $0x2] sm:$0x3] }
 0x267   : > { %3906 = vmatprep.subr.bf16.mxu1 %v7757_v40  ;;  %v2156_v40 = vrot.slane %v2117_v22, %v8906_v57  ;;  %v5600_v29 = vrot.slane %v5558_v12, %v8901_v54 }
 0x269   : > { %3706 = vmatpush1.bf16.msra.mxu0 %v7752_v61  ;;  %v7796_v61 = vld [vmem:[%s8711_s8 + $0x864] ss:$8 sps:$4 sm:$0xff]  }
 0x26a   : > { %3907 = vmatpush1.bf16.msra.mxu1 %v7755_v26  ;;  %4077 = vmatprep.subr.bf16.mxu0 %v7760_v31  ;;  %v7799_v31 = vld [vmem:[%s8711_s8 + $0x964] ss:$8 sps:$4 sm:$0xff]  }
 0x26b   : > { %4278 = vmatprep.subr.bf16.mxu1 %v7763_v27  ;;  %v5592_v27 = vrot.slane %v5557_v37, %v8901_v54 }
 0x26c   : > { %3708 = vmatmul.mubr.bf16.vlgmr.msra.gmra.mrb[44].mxu0 %v1585_v48 }
 0x26d   : > { %3909 = vmatmul.mubr.bf16.vlgmr.msra.gmra.mrb[44].mxu1 %v1587_v49  ;;  %4078 = vmatpush1.bf16.msra.mxu0 %v7758_v0  ;;  %v5596_v49 = vrot.slane %v5557_v37, %v8906_v57  ;;  %v7806_v37 = vld [vmem:[%s8711_s8 + $0x880] ss:$8 sps:$4 sm:$0xff]  }
 0x26e   : > { %4109 = vmatprep.mubr.bf16.mxu0 %v1590_v44  ;;  %4279 = vmatpush1.bf16.msra.mxu1 %v7761_v1  ;;  %v5604_v44 = vrot.slane %v5558_v12, %v8906_v57  ;;  %v7809_v12 = vld [vmem:[%s8711_s8 + $0x980] ss:$8 sps:$4 sm:$0xff]  }
 0x26f   : > { %4310 = vmatprep.mubr.bf16.mxu1 %v1592_v34  ;;  %4079 = vmatprep.subr.bf16.mxu0 %v7766_v43 }
 0x270   : > { %4280 = vmatprep.subr.bf16.mxu1 %v7769_v50 }
 0x271   : > { %4080 = vmatpush1.bf16.msra.mxu0 %v7764_v51  ;;  %v7794_v51 = vld [vmem:[%s8711_s8 + $0x860] ss:$8 sps:$4 sm:$0xff]  }
 0x272   : > { %4281 = vmatpush1.bf16.msra.mxu1 %v7767_v7  ;;  %4081 = vmatprep.subr.bf16.mxu0 %v7772_v9  ;;  %v7797_v7 = vld [vmem:[%s8711_s8 + $0x960] ss:$8 sps:$4 sm:$0xff]  }
 0x273   : > { %4282 = vmatprep.subr.bf16.mxu1 %v7775_v8 }
 0x275   : > { %4082 = vmatpush1.bf16.msra.mxu0 %v7770_v62 }
 0x276   : > { %4283 = vmatpush1.bf16.msra.mxu1 %v7773_v63  ;;  %4083 = vmatprep.subr.bf16.mxu0 %v7778_v38  ;;  %v7802_v38 = vld [vmem:[%s8711_s8 + $0x874] ss:$8 sps:$4 sm:$0xff]  }
 0x277   : > { %4284 = vmatprep.subr.bf16.mxu1 %v7781_v11 }
 0x279   : > { %4084 = vmatpush1.bf16.msra.mxu0 %v7776_v14 }
 0x27a   : > { %4285 = vmatpush1.bf16.msra.mxu1 %v7779_v16  ;;  %4085 = vmatprep.subr.bf16.mxu0 %v7784_v17  ;;  %v7805_v16 = vld [vmem:[%s8711_s8 + $0x974] ss:$8 sps:$4 sm:$0xff]  }
 0x27b   : > { %4286 = vmatprep.subr.bf16.mxu1 %v7787_v18 }
 0x27d   : > { %4086 = vmatpush1.bf16.msra.mxu0 %v7782_v39 }
 0x27e   : > { %4287 = vmatpush1.bf16.msra.mxu1 %v7785_v46  ;;  %4087 = vmatprep.subr.bf16.mxu0 %v7790_v23  ;;  %v7803_v46 = vld [vmem:[%s8711_s8 + $0x970] ss:$8 sps:$4 sm:$0xff]  }
 0x27f   : > { %v2503_v42 = vpop.f32.mrb[32].mxu0  ;;  %v2704_v26 = vpop.f32.mrb[32].mxu1  ;;  %4288 = vmatprep.subr.bf16.mxu1 %v7793_v15 }
 0x280   : > { %v2504_v45 = vadd.f32 %v2503_v42, %v2152_v35  ;;  %v2705_v28 = vadd.f32 %v2704_v26, %v2160_v36  ;;  %v2505_v0 = vpop.f32.mrb[33].mxu0  ;;  %v2706_v48 = vpop.f32.mrb[33].mxu1  ;;  %v7808_v35 = vld [vmem:[%s8711_s8 + $0x884] ss:$8 sps:$4 sm:$0xff]   ;;  %v7818_v26 = vld [vmem:[%s8711_s8 + $0x8a0] ss:$8 sps:$4 sm:$0xff]  }
 0x281   : > { %v2506_v1 = vadd.f32 %v2505_v0, %v2156_v40  ;;  %v2707_v43 = vadd.f32 %v2706_v48, %v2164_v41  ;;  %4088 = vmatpush1.bf16.msra.mxu0 %v7788_v30  ;;  %v2507_v50 = vpop.f32.mrb[34].mxu0  ;;  %v2708_v34 = vpop.f32.mrb[34].mxu1  ;;  %v7811_v36 = vld [vmem:[%s8711_s8 + $0x984] ss:$8 sps:$4 sm:$0xff]   ;;  %v7814_v30 = vld [vmem:[%s8711_s8 + $0x894] ss:$8 sps:$4 sm:$0xff]  }
 0x282   : > { %v5525_v9 = vmax.f32 %v2504_v45, 0.0  ;;  %v5527_v8 = vmax.f32 %v2705_v28, 0.0  ;;  %4289 = vmatpush1.bf16.msra.mxu1 %v7791_v60  ;;  %v2508_v62 = vpop.f32.mrb[35].mxu0  ;;  %v2709_v63 = vpop.f32.mrb[35].mxu1  ;;  %4089 = vmatprep.subr.bf16.mxu0 %v7796_v61  ;;  %v7817_v40 = vld [vmem:[%s8711_s8 + $0x994] ss:$8 sps:$4 sm:$0xff]  }
 0x283   : > { %v5526_v11 = vmax.f32 %v2506_v1, 0.0  ;;  %v5528_v14 = vmax.f32 %v2707_v43, 0.0  ;;  %4290 = vmatprep.subr.bf16.mxu1 %v7799_v31  ;;  %v7812_v41 = vld [vmem:[%s8711_s8 + $0x890] ss:$8 sps:$4 sm:$0xff]   ;;  %v7820_v61 = vld [vmem:[%s8711_s8 + $0x8a4] ss:$8 sps:$4 sm:$0xff]   ;;  %v636_v62 = vrot.slane %v9277_v20, %v8901_v54 }
 0x284   : > { %v5749_v17 = vmul.f32 %v5592_v27, %v5525_v9  ;;  %v5751_v18 = vmul.f32 %v5600_v29, %v5527_v8  ;;  %v7815_v60 = vld [vmem:[%s8711_s8 + $0x990] ss:$8 sps:$4 sm:$0xff]   ;;  %v7823_v42 = vld [vmem:[%s8711_s8 + $0x9a4] ss:$8 sps:$4 sm:$0xff]   ;;  %v7821_v31 = vld [vmem:[%s8711_s8 + $0x9a0] ss:$8 sps:$4 sm:$0xff]  }
 0x285   : > { %v5750_v39 = vmul.f32 %v5596_v49, %v5526_v11  ;;  %v5752_v22 = vmul.f32 %v5604_v44, %v5528_v14  ;;  %4090 = vmatpush1.bf16.msra.mxu0 %v7794_v51  ;;  %v7826_v45 = vld [vmem:[%s8711_s8 + $0x8b4] ss:$8 sps:$4 sm:$0xff]   ;;  %v7824_v28 = vld [vmem:[%s8711_s8 + $0x8b0] ss:$8 sps:$4 sm:$0xff]   ;;  %v7832_v0 = vld [vmem:[%s8711_s8 + $0x8c4] ss:$8 sps:$4 sm:$0xff]   ;;  %v628_v51 = vrot.slane %v9271_v5, %v8901_v54 }
 0x286   : > { %4291 = vmatpush1.bf16.msra.mxu1 %v7797_v7  ;;  %4091 = vmatprep.subr.bf16.mxu0 %v7802_v38  ;;  %v7829_v27 = vld [vmem:[%s8711_s8 + $0x9b4] ss:$8 sps:$4 sm:$0xff]   ;;  %v7827_v29 = vld [vmem:[%s8711_s8 + $0x9b0] ss:$8 sps:$4 sm:$0xff]   ;;  %v7835_v48 = vld [vmem:[%s8711_s8 + $0x9c4] ss:$8 sps:$4 sm:$0xff]  }
 0x287   : > { %4292 = vmatprep.subr.bf16.mxu1 %v7805_v16  ;;  %v5781_v23 = vadd.f32 %v5750_v39, %v5749_v17  ;;  %v5784_v15 = vadd.f32 %v5752_v22, %v5751_v18  ;;  %v7830_v1 = vld [vmem:[%s8711_s8 + $0x8c0] ss:$8 sps:$4 sm:$0xff]   ;;  %v7838_v43 = vld [vmem:[%s8711_s8 + $0x8d4] ss:$8 sps:$4 sm:$0xff]   ;;  %v7836_v34 = vld [vmem:[%s8711_s8 + $0x8d0] ss:$8 sps:$4 sm:$0xff]   ;;  %v1178_v14 = vadd.f32 %v8992_v58, %v628_v51  ;;  %v1229_v17 = vadd.f32 %v8994_v59, %v636_v62 }
 0x288   : > { %v7833_v49 = vld [vmem:[%s8711_s8 + $0x9c0] ss:$8 sps:$4 sm:$0xff]   ;;  %v7841_v44 = vld [vmem:[%s8711_s8 + $0x9d4] ss:$8 sps:$4 sm:$0xff]   ;;  %v7839_v9 = vld [vmem:[%s8711_s8 + $0x9d0] ss:$8 sps:$4 sm:$0xff]  }
 0x289   : > { %4092 = vmatpush1.bf16.msra.mxu0 %v7800_v21  ;;  %5782 = vadd.xlane.f32.xlu0 %v5781_v23  ;;  %v9365_v50 = vld [vmem:[%s8709_s20 + $0x14] sm:$0x3]  ;;  %v9371_v7 = vld [vmem:[%s8709_s20 + $0x16] sm:$0x3]  ;;  %v7844_v8 = vld [vmem:[%s8711_s8 + $0x8e4] ss:$8 sps:$4 sm:$0xff]  }
 0x28a   : > { %4293 = vmatpush1.bf16.msra.mxu1 %v7803_v46  ;;  %5785 = vadd.xlane.f32.xlu1 %v5784_v15  ;;  %v7847_v63 = vld [vmem:[%s8711_s8 + $0x9e4] ss:$8 sps:$4 sm:$0xff]   ;;  %v648_v38 = vrot.slane %v9365_v50, %v8906_v57  ;;  %v656_v5 = vrot.slane %v9371_v7, %v8906_v57  ;;  %v7842_v11 = vld [vmem:[%s8711_s8 + $0x8e0] ss:$8 sps:$4 sm:$0xff]   ;;  %v7850_v20 = vld [vmem:[%s8711_s8 + $0x8f4] ss:$8 sps:$4 sm:$0xff]  }
 0x28b   : > { %4093 = vmatprep.subr.bf16.mxu0 %v7808_v35  ;;  %4294 = vmatprep.subr.bf16.mxu1 %v7811_v36  ;;  %v7845_v16 = vld [vmem:[%s8711_s8 + $0x9e0] ss:$8 sps:$4 sm:$0xff]   ;;  %v7853_v18 = vld [vmem:[%s8711_s8 + $0x9f4] ss:$8 sps:$4 sm:$0xff]   ;;  %v7848_v21 = vld [vmem:[%s8711_s8 + $0x8f0] ss:$8 sps:$4 sm:$0xff]  }
 0x28c   : > { %v1282_v39 = vadd.f32 %v9017_v32, %v648_v38  ;;  %v1333_v22 = vadd.f32 %v9019_v33, %v656_v5  ;;  %v1557_v46 = vmax.f32 %v1178_v14, 0.0  ;;  %v7851_v58 = vld [vmem:[%s8711_s8 + $0x9f0] ss:$8 sps:$4 sm:$0xff]   ;;  %v7856_v23 = vld [vmem:[%s8711_s8 + $0xa04] ss:$8 sps:$4 sm:$0xff]   ;;  %v1559_v15 = vmax.f32 %v1229_v17, 0.0 }
 0x28d   : > { %4094 = vmatpush1.bf16.msra.mxu0 %v7806_v37  ;;  %v7859_v59 = vld [vmem:[%s8711_s8 + $0xb04] ss:$8 sps:$4 sm:$0xff]   ;;  %v7854_v32 = vld [vmem:[%s8711_s8 + $0xa00] ss:$8 sps:$4 sm:$0xff]  }
 0x28e   : > { %4295 = vmatpush1.bf16.msra.mxu1 %v7809_v12  ;;  %4095 = vmatprep.subr.bf16.mxu0 %v7814_v30  ;;  %v1562_v35 = vmax.f32 %v1282_v39, 0.0  ;;  %v1564_v36 = vmax.f32 %v1333_v22, 0.0  ;;  %v1589_v37 = vpack.c.bf16 %v1557_v46, %v1557_v46  ;;  %v7857_v33 = vld [vmem:[%s8711_s8 + $0xb00] ss:$8 sps:$4 sm:$0xff]   ;;  %v1591_v12 = vpack.c.bf16 %v1559_v15, %v1559_v15  ;;  %v7862_v30 = vld [vmem:[%s8711_s8 + $0xa14] ss:$8 sps:$4 sm:$0xff]  }
 0x28f   : > { %4296 = vmatprep.subr.bf16.mxu1 %v7817_v40  ;;  %v7881_v51 = vld [vmem:[%s8711_s8 + $0xb40] ss:$8 sps:$4 sm:$0xff]   ;;  %v5559_v38 = vld [vmem:[%s8719_s11 + $0x4] sm:$0x3]  ;;  %v5560_v5 = vld [vmem:[%s8719_s11 + $0x6] sm:$0x3] }
 0x290   : > { %v1594_v40 = vpack.c.bf16 %v1562_v35, %v1562_v35  ;;  %v7892_v17 = vld [vmem:[%s8711_s8 + $0xa64] ss:$8 sps:$4 sm:$0xff]   ;;  %v5608_v46 = vrot.slane %v5559_v38, %v8901_v54 }
 0x291   : > { %4096 = vmatpush1.bf16.msra.mxu0 %v7812_v41  ;;  %v7865_v41 = vld [vmem:[%s8711_s8 + $0xb14] ss:$8 sps:$4 sm:$0xff]   ;;  %v7895_v22 = vld [vmem:[%s8711_s8 + $0xb64] ss:$8 sps:$4 sm:$0xff]  }
 0x292   : > { %4297 = vmatpush1.bf16.msra.mxu1 %v7815_v60  ;;  %4097 = vmatprep.subr.bf16.mxu0 %v7820_v61  ;;  %v1596_v60 = vpack.c.bf16 %v1564_v36, %v1564_v36  ;;  %v7860_v61 = vld [vmem:[%s8711_s8 + $0xa10] ss:$8 sps:$4 sm:$0xff]   ;;  %v5612_v36 = vrot.slane %v5559_v38, %v8906_v57 }
 0x293   : > { %4298 = vmatprep.subr.bf16.mxu1 %v7823_v42  ;;  %v7863_v42 = vld [vmem:[%s8711_s8 + $0xb10] ss:$8 sps:$4 sm:$0xff]  }
 0x294   : > { %v7908_v38 = vld [vmem:[%s8711_s8 + $0xa90] ss:$8 sps:$4 sm:$0xff]  }
 0x295   : > { %4098 = vmatpush1.bf16.msra.mxu0 %v7818_v26  ;;  %v7868_v26 = vld [vmem:[%s8711_s8 + $0xa24] ss:$8 sps:$4 sm:$0xff]  }
 0x296   : > { %4299 = vmatpush1.bf16.msra.mxu1 %v7821_v31  ;;  %4099 = vmatprep.subr.bf16.mxu0 %v7826_v45  ;;  %v7871_v31 = vld [vmem:[%s8711_s8 + $0xb24] ss:$8 sps:$4 sm:$0xff]   ;;  %v7866_v45 = vld [vmem:[%s8711_s8 + $0xa20] ss:$8 sps:$4 sm:$0xff]  }
 0x297   : > { %4300 = vmatprep.subr.bf16.mxu1 %v7829_v27  ;;  %v7869_v27 = vld [vmem:[%s8711_s8 + $0xb20] ss:$8 sps:$4 sm:$0xff]  }
 0x299   : > { %4100 = vmatpush1.bf16.msra.mxu0 %v7824_v28  ;;  %v7874_v28 = vld [vmem:[%s8711_s8 + $0xa34] ss:$8 sps:$4 sm:$0xff]  }
 0x29a   : > { %4301 = vmatpush1.bf16.msra.mxu1 %v7827_v29  ;;  %4101 = vmatprep.subr.bf16.mxu0 %v7832_v0  ;;  %v7877_v29 = vld [vmem:[%s8711_s8 + $0xb34] ss:$8 sps:$4 sm:$0xff]   ;;  %v7872_v0 = vld [vmem:[%s8711_s8 + $0xa30] ss:$8 sps:$4 sm:$0xff]  }
 0x29b   : > { %4302 = vmatprep.subr.bf16.mxu1 %v7835_v48  ;;  %v7875_v48 = vld [vmem:[%s8711_s8 + $0xb30] ss:$8 sps:$4 sm:$0xff]  }
 0x29d   : > { %4102 = vmatpush1.bf16.msra.mxu0 %v7830_v1  ;;  %v7880_v1 = vld [vmem:[%s8711_s8 + $0xa44] ss:$8 sps:$4 sm:$0xff]  }
 0x29e   : > { %4303 = vmatpush1.bf16.msra.mxu1 %v7833_v49  ;;  %4103 = vmatprep.subr.bf16.mxu0 %v7838_v43  ;;  %v7883_v49 = vld [vmem:[%s8711_s8 + $0xb44] ss:$8 sps:$4 sm:$0xff]   ;;  %v7878_v43 = vld [vmem:[%s8711_s8 + $0xa40] ss:$8 sps:$4 sm:$0xff]  }
 0x29f   : > { %4304 = vmatprep.subr.bf16.mxu1 %v7841_v44  ;;  %v2119_v44 = vld [vmem:[%s8717_s27 + $0x4] sm:$0x3] }
 0x2a0   : > { %v2168_v62 = vrot.slane %v2119_v44, %v8901_v54 }
 0x2a1   : > { %4104 = vmatpush1.bf16.msra.mxu0 %v7836_v34  ;;  %v2120_v34 = vld [vmem:[%s8717_s27 + $0x6] sm:$0x3] }
 0x2a2   : > { %4305 = vmatpush1.bf16.msra.mxu1 %v7839_v9  ;;  %4105 = vmatprep.subr.bf16.mxu0 %v7844_v8  ;;  %v7886_v9 = vld [vmem:[%s8711_s8 + $0xa54] ss:$8 sps:$4 sm:$0xff]   ;;  %v2180_v14 = vrot.slane %v2120_v34, %v8906_v57 }
 0x2a3   : > { %4306 = vmatprep.subr.bf16.mxu1 %v7847_v63  ;;  %v7889_v8 = vld [vmem:[%s8711_s8 + $0xb54] ss:$8 sps:$4 sm:$0xff]   ;;  %v2176_v63 = vrot.slane %v2120_v34, %v8901_v54  ;;  %v7907_v34 = vld [vmem:[%s8711_s8 + $0xb84] ss:$8 sps:$4 sm:$0xff]  }
 0x2a5   : > { %4106 = vmatpush1.bf16.msra.mxu0 %v7842_v11  ;;  %v2172_v11 = vrot.slane %v2119_v44, %v8906_v57 }
 0x2a6   : > { %4307 = vmatpush1.bf16.msra.mxu1 %v7845_v16  ;;  %4107 = vmatprep.subr.bf16.mxu0 %v7850_v20  ;;  %v7884_v16 = vld [vmem:[%s8711_s8 + $0xa50] ss:$8 sps:$4 sm:$0xff]  }
 0x2a7   : > { %4308 = vmatprep.subr.bf16.mxu1 %v7853_v18  ;;  %v7887_v20 = vld [vmem:[%s8711_s8 + $0xb50] ss:$8 sps:$4 sm:$0xff]  }
 0x2a9   : > { %4108 = vmatpush1.bf16.msra.mxu0 %v7848_v21 }
 0x2aa   : > { %4309 = vmatpush1.bf16.msra.mxu1 %v7851_v58  ;;  %4479 = vmatprep.subr.bf16.mxu0 %v7856_v23  ;;  %v5616_v23 = vrot.slane %v5560_v5, %v8901_v54 }
 0x2ab   : > { %4680 = vmatprep.subr.bf16.mxu1 %v7859_v59 }
 0x2ac   : > { %4110 = vmatmul.mubr.bf16.vlgmr.msra.gmra.mrb[48].mxu0 %v1589_v37  ;;  %v5620_v37 = vrot.slane %v5560_v5, %v8906_v57  ;;  %v7911_v5 = vld [vmem:[%s8711_s8 + $0xb90] ss:$8 sps:$4 sm:$0xff]  }
 0x2ad   : > { %4311 = vmatmul.mubr.bf16.vlgmr.msra.gmra.mrb[48].mxu1 %v1591_v12  ;;  %4480 = vmatpush1.bf16.msra.mxu0 %v7854_v32 }
 0x2ae   : > { %4511 = vmatprep.mubr.bf16.mxu0 %v1594_v40  ;;  %4681 = vmatpush1.bf16.msra.mxu1 %v7857_v33  ;;  %v7893_v40 = vld [vmem:[%s8711_s8 + $0xb60] ss:$8 sps:$4 sm:$0xff]  }
 0x2af   : > { %4712 = vmatprep.mubr.bf16.mxu1 %v1596_v60  ;;  %4481 = vmatprep.subr.bf16.mxu0 %v7862_v30  ;;  %v7890_v30 = vld [vmem:[%s8711_s8 + $0xa60] ss:$8 sps:$4 sm:$0xff]  }
 0x2b0   : > { %4682 = vmatprep.subr.bf16.mxu1 %v7865_v41 }
 0x2b1   : > { %4482 = vmatpush1.bf16.msra.mxu0 %v7860_v61 }
 0x2b2   : > { %4683 = vmatpush1.bf16.msra.mxu1 %v7863_v42  ;;  %4483 = vmatprep.subr.bf16.mxu0 %v7868_v26  ;;  %v7898_v26 = vld [vmem:[%s8711_s8 + $0xa74] ss:$8 sps:$4 sm:$0xff]  }
 0x2b3   : > { %4684 = vmatprep.subr.bf16.mxu1 %v7871_v31 }
 0x2b5   : > { %4484 = vmatpush1.bf16.msra.mxu0 %v7866_v45 }
 0x2b6   : > { %4685 = vmatpush1.bf16.msra.mxu1 %v7869_v27  ;;  %4485 = vmatprep.subr.bf16.mxu0 %v7874_v28  ;;  %v7901_v27 = vld [vmem:[%s8711_s8 + $0xb74] ss:$8 sps:$4 sm:$0xff]  }
 0x2b7   : > { %4686 = vmatprep.subr.bf16.mxu1 %v7877_v29 }
 0x2b9   : > { %4486 = vmatpush1.bf16.msra.mxu0 %v7872_v0 }
 0x2ba   : > { %4687 = vmatpush1.bf16.msra.mxu1 %v7875_v48  ;;  %4487 = vmatprep.subr.bf16.mxu0 %v7880_v1  ;;  %v7896_v1 = vld [vmem:[%s8711_s8 + $0xa70] ss:$8 sps:$4 sm:$0xff]  }
 0x2bb   : > { %4688 = vmatprep.subr.bf16.mxu1 %v7883_v49  ;;  %v7899_v49 = vld [vmem:[%s8711_s8 + $0xb70] ss:$8 sps:$4 sm:$0xff]  }
 0x2bd   : > { %4488 = vmatpush1.bf16.msra.mxu0 %v7878_v43  ;;  %v7904_v43 = vld [vmem:[%s8711_s8 + $0xa84] ss:$8 sps:$4 sm:$0xff]  }
 0x2be   : > { %4689 = vmatpush1.bf16.msra.mxu1 %v7881_v51  ;;  %4489 = vmatprep.subr.bf16.mxu0 %v7886_v9  ;;  %v7902_v9 = vld [vmem:[%s8711_s8 + $0xa80] ss:$8 sps:$4 sm:$0xff]  }
 0x2bf   : > { %v2905_v18 = vpop.f32.mrb[36].mxu0  ;;  %v3106_v39 = vpop.f32.mrb[36].mxu1  ;;  %4690 = vmatprep.subr.bf16.mxu1 %v7889_v8  ;;  %v7905_v8 = vld [vmem:[%s8711_s8 + $0xb80] ss:$8 sps:$4 sm:$0xff]  }
 0x2c0   : > { %v2906_v21 = vadd.f32 %v2905_v18, %v2168_v62  ;;  %v3107_v58 = vadd.f32 %v3106_v39, %v2176_v63  ;;  %v2907_v15 = vpop.f32.mrb[37].mxu0  ;;  %v3108_v59 = vpop.f32.mrb[37].mxu1  ;;  %v7910_v62 = vld [vmem:[%s8711_s8 + $0xa94] ss:$8 sps:$4 sm:$0xff]   ;;  %v7920_v39 = vld [vmem:[%s8711_s8 + $0xab0] ss:$8 sps:$4 sm:$0xff]  }
 0x2c1   : > { %v2908_v35 = vadd.f32 %v2907_v15, %v2172_v11  ;;  %v3109_v32 = vadd.f32 %v3108_v59, %v2180_v14  ;;  %v2909_v33 = vpop.f32.mrb[38].mxu0  ;;  %v3110_v12 = vpop.f32.mrb[38].mxu1  ;;  %4490 = vmatpush1.bf16.msra.mxu0 %v7884_v16  ;;  %v7913_v63 = vld [vmem:[%s8711_s8 + $0xb94] ss:$8 sps:$4 sm:$0xff]   ;;  %v7916_v11 = vld [vmem:[%s8711_s8 + $0xaa4] ss:$8 sps:$4 sm:$0xff]  }
 0x2c2   : > { %v5529_v41 = vmax.f32 %v2906_v21, 0.0  ;;  %v5531_v60 = vmax.f32 %v3107_v58, 0.0  ;;  %4691 = vmatpush1.bf16.msra.mxu1 %v7887_v20  ;;  %v2910_v61 = vpop.f32.mrb[39].mxu0  ;;  %v3111_v42 = vpop.f32.mrb[39].mxu1  ;;  %4491 = vmatprep.subr.bf16.mxu0 %v7892_v17  ;;  %v7919_v14 = vld [vmem:[%s8711_s8 + $0xba4] ss:$8 sps:$4 sm:$0xff]  }
 0x2c3   : > { %v5530_v31 = vmax.f32 %v2908_v35, 0.0  ;;  %v5532_v45 = vmax.f32 %v3109_v32, 0.0  ;;  %4692 = vmatprep.subr.bf16.mxu1 %v7895_v22  ;;  %v7914_v16 = vld [vmem:[%s8711_s8 + $0xaa0] ss:$8 sps:$4 sm:$0xff]   ;;  %v7922_v17 = vld [vmem:[%s8711_s8 + $0xab4] ss:$8 sps:$4 sm:$0xff]   ;;  %v644_v32 = vrot.slane %v9365_v50, %v8901_v54 }
 0x2c4   : > { %v5753_v28 = vmul.f32 %v5608_v46, %v5529_v41  ;;  %v5755_v29 = vmul.f32 %v5616_v23, %v5531_v60  ;;  %v7917_v20 = vld [vmem:[%s8711_s8 + $0xba0] ss:$8 sps:$4 sm:$0xff]   ;;  %v7925_v18 = vld [vmem:[%s8711_s8 + $0xbb4] ss:$8 sps:$4 sm:$0xff]   ;;  %v7923_v22 = vld [vmem:[%s8711_s8 + $0xbb0] ss:$8 sps:$4 sm:$0xff]  }
 0x2c5   : > { %v5754_v0 = vmul.f32 %v5612_v36, %v5530_v31  ;;  %v5756_v48 = vmul.f32 %v5620_v37, %v5532_v45  ;;  %4492 = vmatpush1.bf16.msra.mxu0 %v7890_v30  ;;  %v7928_v21 = vld [vmem:[%s8711_s8 + $0xac4] ss:$8 sps:$4 sm:$0xff]   ;;  %v7926_v58 = vld [vmem:[%s8711_s8 + $0xac0] ss:$8 sps:$4 sm:$0xff]   ;;  %v7934_v15 = vld [vmem:[%s8711_s8 + $0xad4] ss:$8 sps:$4 sm:$0xff]   ;;  %v652_v30 = vrot.slane %v9371_v7, %v8901_v54  ;;  %v1280_v61 = vadd.f32 %v9013_v24, %v644_v32 }
 0x2c6   : > { %4693 = vmatpush1.bf16.msra.mxu1 %v7893_v40  ;;  %4493 = vmatprep.subr.bf16.mxu0 %v7898_v26  ;;  %v7931_v46 = vld [vmem:[%s8711_s8 + $0xbc4] ss:$8 sps:$4 sm:$0xff]   ;;  %v7929_v23 = vld [vmem:[%s8711_s8 + $0xbc0] ss:$8 sps:$4 sm:$0xff]   ;;  %v7937_v59 = vld [vmem:[%s8711_s8 + $0xbd4] ss:$8 sps:$4 sm:$0xff]  }
 0x2c7   : > { %4694 = vmatprep.subr.bf16.mxu1 %v7901_v27  ;;  %v5787_v44 = vadd.f32 %v5754_v0, %v5753_v28  ;;  %v5790_v51 = vadd.f32 %v5756_v48, %v5755_v29  ;;  %v9459_v35 = vld [vmem:[%s8709_s20 + $0x18] sm:$0x3]  ;;  %v9465_v37 = vld [vmem:[%s8709_s20 + $0x1a] sm:$0x3]  ;;  %v7940_v12 = vld [vmem:[%s8711_s8 + $0xae4] ss:$8 sps:$4 sm:$0xff]   ;;  %v1331_v26 = vadd.f32 %v9015_v25, %v652_v30 }
 0x2c8   : > { %v7932_v36 = vld [vmem:[%s8711_s8 + $0xad0] ss:$8 sps:$4 sm:$0xff]   ;;  %v7943_v40 = vld [vmem:[%s8711_s8 + $0xbe4] ss:$8 sps:$4 sm:$0xff]   ;;  %v664_v41 = vrot.slane %v9459_v35, %v8906_v57  ;;  %v672_v50 = vrot.slane %v9465_v37, %v8906_v57  ;;  %v7938_v60 = vld [vmem:[%s8711_s8 + $0xae0] ss:$8 sps:$4 sm:$0xff]  }
 0x2c9   : > { %4494 = vmatpush1.bf16.msra.mxu0 %v7896_v1  ;;  %5788 = vadd.xlane.f32.xlu1 %v5787_v44  ;;  %v7935_v33 = vld [vmem:[%s8711_s8 + $0xbd0] ss:$8 sps:$4 sm:$0xff]   ;;  %v7941_v42 = vld [vmem:[%s8711_s8 + $0xbe0] ss:$8 sps:$4 sm:$0xff]   ;;  %v7946_v7 = vld [vmem:[%s8711_s8 + $0xaf4] ss:$8 sps:$4 sm:$0xff]  }
 0x2ca   : > { %4695 = vmatpush1.bf16.msra.mxu1 %v7899_v49  ;;  %4495 = vmatprep.subr.bf16.mxu0 %v7904_v43  ;;  %v7949_v31 = vld [vmem:[%s8711_s8 + $0xbf4] ss:$8 sps:$4 sm:$0xff]   ;;  %v1384_v45 = vadd.f32 %v9039_v3, %v664_v41  ;;  %v1435_v27 = vadd.f32 %v9041_v4, %v672_v50  ;;  %v7944_v28 = vld [vmem:[%s8711_s8 + $0xaf0] ss:$8 sps:$4 sm:$0xff]   ;;  %v1561_v29 = vmax.f32 %v1280_v61, 0.0  ;;  %v1563_v48 = vmax.f32 %v1331_v26, 0.0 }
 0x2cb   : > { %4696 = vmatprep.subr.bf16.mxu1 %v7907_v34  ;;  %v7947_v24 = vld [vmem:[%s8711_s8 + $0xbf0] ss:$8 sps:$4 sm:$0xff]   ;;  %v7952_v0 = vld [vmem:[%s8711_s8 + $0xc04] ss:$8 sps:$4 sm:$0xff]   ;;  %v7950_v3 = vld [vmem:[%s8711_s8 + $0xc00] ss:$8 sps:$4 sm:$0xff]  }
 0x2cc   : > { %v7955_v25 = vld [vmem:[%s8711_s8 + $0xd04] ss:$8 sps:$4 sm:$0xff]   ;;  %v1566_v1 = vmax.f32 %v1384_v45, 0.0  ;;  %v1568_v49 = vmax.f32 %v1435_v27, 0.0  ;;  %v1593_v43 = vpack.c.bf16 %v1561_v29, %v1561_v29  ;;  %v7953_v4 = vld [vmem:[%s8711_s8 + $0xd00] ss:$8 sps:$4 sm:$0xff]   ;;  %v1595_v44 = vpack.c.bf16 %v1563_v48, %v1563_v48 }
 0x2cd   : > { %4496 = vmatpush1.bf16.msra.mxu0 %v7902_v9  ;;  %5791 = vadd.xlane.f32.xlu1 %v5790_v51  ;;  %v7958_v34 = vld [vmem:[%s8711_s8 + $0xc14] ss:$8 sps:$4 sm:$0xff]   ;;  %v7980_v41 = vld [vmem:[%s8711_s8 + $0xc50] ss:$8 sps:$4 sm:$0xff]  }
 0x2ce   : > { %4697 = vmatpush1.bf16.msra.mxu1 %v7905_v8  ;;  %4497 = vmatprep.subr.bf16.mxu0 %v7910_v62  ;;  %v1598_v51 = vpack.c.bf16 %v1566_v1, %v1566_v1  ;;  %v7961_v9 = vld [vmem:[%s8711_s8 + $0xd14] ss:$8 sps:$4 sm:$0xff]   ;;  %v1600_v8 = vpack.c.bf16 %v1568_v49, %v1568_v49  ;;  %v7956_v62 = vld [vmem:[%s8711_s8 + $0xc10] ss:$8 sps:$4 sm:$0xff]  }
 0x2cf   : > { %4698 = vmatprep.subr.bf16.mxu1 %v7913_v63  ;;  %v7959_v63 = vld [vmem:[%s8711_s8 + $0xd10] ss:$8 sps:$4 sm:$0xff]  }
 0x2d0   : > { %v7983_v50 = vld [vmem:[%s8711_s8 + $0xd50] ss:$8 sps:$4 sm:$0xff]  }
 0x2d1   : > { %4498 = vmatpush1.bf16.msra.mxu0 %v7908_v38  ;;  %v7964_v38 = vld [vmem:[%s8711_s8 + $0xc24] ss:$8 sps:$4 sm:$0xff]  }
 0x2d2   : > { %4699 = vmatpush1.bf16.msra.mxu1 %v7911_v5  ;;  %4499 = vmatprep.subr.bf16.mxu0 %v7916_v11  ;;  %v7967_v5 = vld [vmem:[%s8711_s8 + $0xd24] ss:$8 sps:$4 sm:$0xff]   ;;  %v7962_v11 = vld [vmem:[%s8711_s8 + $0xc20] ss:$8 sps:$4 sm:$0xff]  }
 0x2d3   : > { %4700 = vmatprep.subr.bf16.mxu1 %v7919_v14  ;;  %v7965_v14 = vld [vmem:[%s8711_s8 + $0xd20] ss:$8 sps:$4 sm:$0xff]  }
 0x2d5   : > { %4500 = vmatpush1.bf16.msra.mxu0 %v7914_v16  ;;  %v7970_v16 = vld [vmem:[%s8711_s8 + $0xc34] ss:$8 sps:$4 sm:$0xff]  }
 0x2d6   : > { %4701 = vmatpush1.bf16.msra.mxu1 %v7917_v20  ;;  %4501 = vmatprep.subr.bf16.mxu0 %v7922_v17  ;;  %v7973_v20 = vld [vmem:[%s8711_s8 + $0xd34] ss:$8 sps:$4 sm:$0xff]   ;;  %v7968_v17 = vld [vmem:[%s8711_s8 + $0xc30] ss:$8 sps:$4 sm:$0xff]  }
 0x2d7   : > { %4702 = vmatprep.subr.bf16.mxu1 %v7925_v18  ;;  %v7971_v18 = vld [vmem:[%s8711_s8 + $0xd30] ss:$8 sps:$4 sm:$0xff]  }
 0x2d9   : > { %4502 = vmatpush1.bf16.msra.mxu0 %v7920_v39  ;;  %v7976_v39 = vld [vmem:[%s8711_s8 + $0xc44] ss:$8 sps:$4 sm:$0xff]  }
 0x2da   : > { %4703 = vmatpush1.bf16.msra.mxu1 %v7923_v22  ;;  %4503 = vmatprep.subr.bf16.mxu0 %v7928_v21  ;;  %v7979_v22 = vld [vmem:[%s8711_s8 + $0xd44] ss:$8 sps:$4 sm:$0xff]   ;;  %v7974_v21 = vld [vmem:[%s8711_s8 + $0xc40] ss:$8 sps:$4 sm:$0xff]  }
 0x2db   : > { %4704 = vmatprep.subr.bf16.mxu1 %v7931_v46  ;;  %v2121_v46 = vld [vmem:[%s8717_s27 + $0x8] sm:$0x3] }
 0x2dc   : > { %v2188_v30 = vrot.slane %v2121_v46, %v8906_v57 }
 0x2dd   : > { %4504 = vmatpush1.bf16.msra.mxu0 %v7926_v58  ;;  %v2122_v58 = vld [vmem:[%s8717_s27 + $0xa] sm:$0x3] }
 0x2de   : > { %4705 = vmatpush1.bf16.msra.mxu1 %v7929_v23  ;;  %4505 = vmatprep.subr.bf16.mxu0 %v7934_v15  ;;  %v7977_v23 = vld [vmem:[%s8711_s8 + $0xd40] ss:$8 sps:$4 sm:$0xff]   ;;  %v7982_v15 = vld [vmem:[%s8711_s8 + $0xc54] ss:$8 sps:$4 sm:$0xff]   ;;  %v2192_v32 = vrot.slane %v2122_v58, %v8901_v54 }
 0x2df   : > { %4706 = vmatprep.subr.bf16.mxu1 %v7937_v59  ;;  %v7985_v59 = vld [vmem:[%s8711_s8 + $0xd54] ss:$8 sps:$4 sm:$0xff]  }
 0x2e1   : > { %4506 = vmatpush1.bf16.msra.mxu0 %v7932_v36  ;;  %v2184_v36 = vrot.slane %v2121_v46, %v8901_v54  ;;  %v8001_v46 = vld [vmem:[%s8711_s8 + $0xd80] ss:$8 sps:$4 sm:$0xff]  }
 0x2e2   : > { %4707 = vmatpush1.bf16.msra.mxu1 %v7935_v33  ;;  %4507 = vmatprep.subr.bf16.mxu0 %v7940_v12  ;;  %v5561_v33 = vld [vmem:[%s8719_s11 + $0x8] sm:$0x3]  ;;  %v5562_v12 = vld [vmem:[%s8719_s11 + $0xa] sm:$0x3] }
 0x2e3   : > { %4708 = vmatprep.subr.bf16.mxu1 %v7943_v40  ;;  %v2196_v40 = vrot.slane %v2122_v58, %v8906_v57  ;;  %v5632_v27 = vrot.slane %v5562_v12, %v8901_v54  ;;  %v8006_v58 = vld [vmem:[%s8711_s8 + $0xc94] ss:$8 sps:$4 sm:$0xff]  }
 0x2e5   : > { %4508 = vmatpush1.bf16.msra.mxu0 %v7938_v60  ;;  %v7988_v60 = vld [vmem:[%s8711_s8 + $0xc64] ss:$8 sps:$4 sm:$0xff]  }
 0x2e6   : > { %4709 = vmatpush1.bf16.msra.mxu1 %v7941_v42  ;;  %4509 = vmatprep.subr.bf16.mxu0 %v7946_v7  ;;  %v7991_v7 = vld [vmem:[%s8711_s8 + $0xd64] ss:$8 sps:$4 sm:$0xff]  }
 0x2e7   : > { %4710 = vmatprep.subr.bf16.mxu1 %v7949_v31  ;;  %v5624_v31 = vrot.slane %v5561_v33, %v8901_v54 }
 0x2e9   : > { %4510 = vmatpush1.bf16.msra.mxu0 %v7944_v28 }
 0x2ea   : > { %4711 = vmatpush1.bf16.msra.mxu1 %v7947_v24  ;;  %4881 = vmatprep.subr.bf16.mxu0 %v7952_v0  ;;  %v5628_v0 = vrot.slane %v5561_v33, %v8906_v57  ;;  %v8010_v33 = vld [vmem:[%s8711_s8 + $0xca0] ss:$8 sps:$4 sm:$0xff]  }
 0x2eb   : > { %5082 = vmatprep.subr.bf16.mxu1 %v7955_v25  ;;  %v5636_v25 = vrot.slane %v5562_v12, %v8906_v57  ;;  %v8013_v12 = vld [vmem:[%s8711_s8 + $0xda0] ss:$8 sps:$4 sm:$0xff]  }
 0x2ec   : > { %4512 = vmatmul.mubr.bf16.vlgmr.msra.gmra.mrb[52].mxu0 %v1593_v43  ;;  %v7989_v43 = vld [vmem:[%s8711_s8 + $0xd60] ss:$8 sps:$4 sm:$0xff]  }
 0x2ed   : > { %4713 = vmatmul.mubr.bf16.vlgmr.msra.gmra.mrb[52].mxu1 %v1595_v44  ;;  %4882 = vmatpush1.bf16.msra.mxu0 %v7950_v3  ;;  %v7986_v3 = vld [vmem:[%s8711_s8 + $0xc60] ss:$8 sps:$4 sm:$0xff]  }
 0x2ee   : > { %4913 = vmatprep.mubr.bf16.mxu0 %v1598_v51  ;;  %5083 = vmatpush1.bf16.msra.mxu1 %v7953_v4 }
 0x2ef   : > { %5114 = vmatprep.mubr.bf16.mxu1 %v1600_v8  ;;  %4883 = vmatprep.subr.bf16.mxu0 %v7958_v34 }
 0x2f0   : > { %5084 = vmatprep.subr.bf16.mxu1 %v7961_v9  ;;  %v7994_v9 = vld [vmem:[%s8711_s8 + $0xc74] ss:$8 sps:$4 sm:$0xff]  }
 0x2f1   : > { %4884 = vmatpush1.bf16.msra.mxu0 %v7956_v62 }
 0x2f2   : > { %5085 = vmatpush1.bf16.msra.mxu1 %v7959_v63  ;;  %4885 = vmatprep.subr.bf16.mxu0 %v7964_v38  ;;  %v7997_v63 = vld [vmem:[%s8711_s8 + $0xd74] ss:$8 sps:$4 sm:$0xff]  }
 0x2f3   : > { %5086 = vmatprep.subr.bf16.mxu1 %v7967_v5 }
 0x2f5   : > { %4886 = vmatpush1.bf16.msra.mxu0 %v7962_v11 }
 0x2f6   : > { %5087 = vmatpush1.bf16.msra.mxu1 %v7965_v14  ;;  %4887 = vmatprep.subr.bf16.mxu0 %v7970_v16  ;;  %v7992_v16 = vld [vmem:[%s8711_s8 + $0xc70] ss:$8 sps:$4 sm:$0xff]  }
 0x2f7   : > { %5088 = vmatprep.subr.bf16.mxu1 %v7973_v20  ;;  %v7995_v20 = vld [vmem:[%s8711_s8 + $0xd70] ss:$8 sps:$4 sm:$0xff]  }
 0x2f9   : > { %4888 = vmatpush1.bf16.msra.mxu0 %v7968_v17  ;;  %v8000_v17 = vld [vmem:[%s8711_s8 + $0xc84] ss:$8 sps:$4 sm:$0xff]  }
 0x2fa   : > { %5089 = vmatpush1.bf16.msra.mxu1 %v7971_v18  ;;  %4889 = vmatprep.subr.bf16.mxu0 %v7976_v39  ;;  %v8003_v39 = vld [vmem:[%s8711_s8 + $0xd84] ss:$8 sps:$4 sm:$0xff]  }
 0x2fb   : > { %5090 = vmatprep.subr.bf16.mxu1 %v7979_v22 }
 0x2fd   : > { %4890 = vmatpush1.bf16.msra.mxu0 %v7974_v21  ;;  %v7998_v21 = vld [vmem:[%s8711_s8 + $0xc80] ss:$8 sps:$4 sm:$0xff]  }
 0x2fe   : > { %5091 = vmatpush1.bf16.msra.mxu1 %v7977_v23  ;;  %4891 = vmatprep.subr.bf16.mxu0 %v7982_v15  ;;  %v8009_v23 = vld [vmem:[%s8711_s8 + $0xd94] ss:$8 sps:$4 sm:$0xff]   ;;  %v8004_v15 = vld [vmem:[%s8711_s8 + $0xc90] ss:$8 sps:$4 sm:$0xff]  }
 0x2ff   : > { %v3307_v61 = vpop.f32.mrb[40].mxu0  ;;  %v3508_v42 = vpop.f32.mrb[40].mxu1  ;;  %5092 = vmatprep.subr.bf16.mxu1 %v7985_v59  ;;  %v8007_v59 = vld [vmem:[%s8711_s8 + $0xd90] ss:$8 sps:$4 sm:$0xff]  }
 0x300   : > { %v3308_v26 = vadd.f32 %v3307_v61, %v2184_v36  ;;  %v3509_v45 = vadd.f32 %v3508_v42, %v2192_v32  ;;  %v3309_v28 = vpop.f32.mrb[41].mxu0  ;;  %v3510_v29 = vpop.f32.mrb[41].mxu1  ;;  %v8012_v36 = vld [vmem:[%s8711_s8 + $0xca4] ss:$8 sps:$4 sm:$0xff]   ;;  %v8022_v42 = vld [vmem:[%s8711_s8 + $0xcc0] ss:$8 sps:$4 sm:$0xff]  }
 0x301   : > { %v3310_v24 = vadd.f32 %v3309_v28, %v2188_v30  ;;  %v3511_v48 = vadd.f32 %v3510_v29, %v2196_v40  ;;  %v3311_v1 = vpop.f32.mrb[42].mxu0  ;;  %v3512_v49 = vpop.f32.mrb[42].mxu1  ;;  %4892 = vmatpush1.bf16.msra.mxu0 %v7980_v41  ;;  %v8015_v32 = vld [vmem:[%s8711_s8 + $0xda4] ss:$8 sps:$4 sm:$0xff]   ;;  %v8021_v30 = vld [vmem:[%s8711_s8 + $0xcb4] ss:$8 sps:$4 sm:$0xff]   ;;  %v660_v28 = vrot.slane %v9459_v35, %v8901_v54 }
 0x302   : > { %v5533_v4 = vmax.f32 %v3308_v26, 0.0  ;;  %v5535_v44 = vmax.f32 %v3509_v45, 0.0  ;;  %5093 = vmatpush1.bf16.msra.mxu1 %v7983_v50  ;;  %v3312_v34 = vpop.f32.mrb[43].mxu0  ;;  %v3513_v51 = vpop.f32.mrb[43].mxu1  ;;  %4893 = vmatprep.subr.bf16.mxu0 %v7988_v60  ;;  %v8018_v40 = vld [vmem:[%s8711_s8 + $0xdb4] ss:$8 sps:$4 sm:$0xff]  }
 0x303   : > { %v5534_v8 = vmax.f32 %v3310_v24, 0.0  ;;  %v5536_v62 = vmax.f32 %v3511_v48, 0.0  ;;  %5094 = vmatprep.subr.bf16.mxu1 %v7991_v7  ;;  %v8019_v41 = vld [vmem:[%s8711_s8 + $0xcb0] ss:$8 sps:$4 sm:$0xff]   ;;  %v8024_v60 = vld [vmem:[%s8711_s8 + $0xcc4] ss:$8 sps:$4 sm:$0xff]   ;;  %v668_v48 = vrot.slane %v9465_v37, %v8901_v54  ;;  %v9570_v49 = vpop.permute.xlu1 %6108 }
 0x304   : > { %v5757_v38 = vmul.f32 %v5624_v31, %v5533_v4  ;;  %v5759_v5 = vmul.f32 %v5632_v27, %v5535_v44  ;;  %v8016_v50 = vld [vmem:[%s8711_s8 + $0xdb0] ss:$8 sps:$4 sm:$0xff]   ;;  %v8027_v61 = vld [vmem:[%s8711_s8 + $0xdc4] ss:$8 sps:$4 sm:$0xff]   ;;  %v8025_v7 = vld [vmem:[%s8711_s8 + $0xdc0] ss:$8 sps:$4 sm:$0xff]  }
 0x305   : > { %v5758_v11 = vmul.f32 %v5628_v0, %v5534_v8  ;;  %v5760_v14 = vmul.f32 %v5636_v25, %v5536_v62  ;;  %4894 = vmatpush1.bf16.msra.mxu0 %v7986_v3  ;;  %v8030_v26 = vld [vmem:[%s8711_s8 + $0xcd4] ss:$8 sps:$4 sm:$0xff]   ;;  %v8028_v27 = vld [vmem:[%s8711_s8 + $0xcd0] ss:$8 sps:$4 sm:$0xff]   ;;  %v8036_v0 = vld [vmem:[%s8711_s8 + $0xce4] ss:$8 sps:$4 sm:$0xff]   ;;  %v1433_v44 = vadd.f32 %v9037_v2, %v668_v48 }
 0x306   : > { %5095 = vmatpush1.bf16.msra.mxu1 %v7989_v43  ;;  %4895 = vmatprep.subr.bf16.mxu0 %v7994_v9  ;;  %v8033_v31 = vld [vmem:[%s8711_s8 + $0xdd4] ss:$8 sps:$4 sm:$0xff]   ;;  %v8031_v24 = vld [vmem:[%s8711_s8 + $0xdd0] ss:$8 sps:$4 sm:$0xff]   ;;  %v8039_v25 = vld [vmem:[%s8711_s8 + $0xde4] ss:$8 sps:$4 sm:$0xff]   ;;  %v1382_v43 = vadd.f32 %v9035_v56, %v660_v28 }
 0x307   : > { %5096 = vmatprep.subr.bf16.mxu1 %v7997_v63  ;;  %v5793_v18 = vadd.f32 %v5758_v11, %v5757_v38  ;;  %v5796_v22 = vadd.f32 %v5760_v14, %v5759_v5  ;;  %v9553_v45 = vld [vmem:[%s8709_s20 + $0x1c] sm:$0x3]  ;;  %v9559_v29 = vld [vmem:[%s8709_s20 + $0x1e] sm:$0x3]  ;;  %v8034_v3 = vld [vmem:[%s8711_s8 + $0xce0] ss:$8 sps:$4 sm:$0xff]   ;;  %v9583_v5 = vpop.permute.xlu1 %6164 }
 0x308   : > { %v680_v1 = vrot.slane %v9553_v45, %v8906_v57  ;;  %v688_v35 = vrot.slane %v9559_v29, %v8906_v57  ;;  %v8037_v37 = vld [vmem:[%s8711_s8 + $0xde0] ss:$8 sps:$4 sm:$0xff]   ;;  %v8042_v4 = vld [vmem:[%s8711_s8 + $0xcf4] ss:$8 sps:$4 sm:$0xff]   ;;  %v8040_v8 = vld [vmem:[%s8711_s8 + $0xcf0] ss:$8 sps:$4 sm:$0xff]  }
 0x309   : > { %4896 = vmatpush1.bf16.msra.mxu0 %v7992_v16  ;;  %5794 = vadd.xlane.f32.xlu1 %v5793_v18  ;;  %v8045_v34 = vld [vmem:[%s8711_s8 + $0xdf4] ss:$8 sps:$4 sm:$0xff]   ;;  %v1565_v62 = vmax.f32 %v1382_v43, 0.0  ;;  %v8043_v56 = vld [vmem:[%s8711_s8 + $0xdf0] ss:$8 sps:$4 sm:$0xff]   ;;  %v1567_v38 = vmax.f32 %v1433_v44, 0.0 }
 0x30a   : > { %5097 = vmatpush1.bf16.msra.mxu1 %v7995_v20  ;;  %4897 = vmatprep.subr.bf16.mxu0 %v8000_v17  ;;  %v1486_v51 = vadd.f32 %v9075_v55, %v680_v1  ;;  %v1537_v9 = vadd.f32 %v9081_v10, %v688_v35  ;;  %v8048_v63 = vld [vmem:[%s8711_s8 + $0xe04] ss:$8 sps:$4 sm:$0xff]   ;;  %v8046_v10 = vld [vmem:[%s8711_s8 + $0xe00] ss:$8 sps:$4 sm:$0xff]   ;;  %v8054_v17 = vld [vmem:[%s8711_s8 + $0xe14] ss:$8 sps:$4 sm:$0xff]  }
 0x30b   : > { %5098 = vmatprep.subr.bf16.mxu1 %v8003_v39  ;;  %v8051_v2 = vld [vmem:[%s8711_s8 + $0xf04] ss:$8 sps:$4 sm:$0xff]   ;;  %v1597_v14 = vpack.c.bf16 %v1565_v62, %v1565_v62  ;;  %v8049_v16 = vld [vmem:[%s8711_s8 + $0xf00] ss:$8 sps:$4 sm:$0xff]   ;;  %v1599_v20 = vpack.c.bf16 %v1567_v38, %v1567_v38  ;;  %v8057_v39 = vld [vmem:[%s8711_s8 + $0xf14] ss:$8 sps:$4 sm:$0xff]  }
 0x30c   : > { %v1570_v11 = vmax.f32 %v1486_v51, 0.0  ;;  %v1572_v55 = vmax.f32 %v1537_v9, 0.0  ;;  %v5564_v1 = vld [vmem:[%s8719_s11 + $0xe] sm:$0x3] }
 0x30d   : > { %4898 = vmatpush1.bf16.msra.mxu0 %v7998_v21  ;;  %5797 = vadd.xlane.f32.xlu1 %v5796_v22  ;;  %v9590_v21 = vpop.permute.xlu1 %6171  ;;  %v8084_v43 = vld [vmem:[%s8711_s8 + $0xe64] ss:$8 sps:$4 sm:$0xff]  }
 0x30e   : > { %5099 = vmatpush1.bf16.msra.mxu1 %v8001_v46  ;;  %4899 = vmatprep.subr.bf16.mxu0 %v8006_v58  ;;  %v1602_v18 = vpack.c.bf16 %v1570_v11, %v1570_v11  ;;  %v1604_v22 = vpack.c.bf16 %v1572_v55, %v1572_v55  ;;  %v8052_v46 = vld [vmem:[%s8711_s8 + $0xe10] ss:$8 sps:$4 sm:$0xff]   ;;  %v8087_v44 = vld [vmem:[%s8711_s8 + $0xf64] ss:$8 sps:$4 sm:$0xff]   ;;  %v8082_v55 = vld [vmem:[%s8711_s8 + $0xe60] ss:$8 sps:$4 sm:$0xff]  }
 0x30f   : > { %5100 = vmatprep.subr.bf16.mxu1 %v8009_v23  ;;  %v8055_v58 = vld [vmem:[%s8711_s8 + $0xf10] ss:$8 sps:$4 sm:$0xff]   ;;  %v8060_v23 = vld [vmem:[%s8711_s8 + $0xe24] ss:$8 sps:$4 sm:$0xff]  }
 0x311   : > { %4900 = vmatpush1.bf16.msra.mxu0 %v8004_v15  ;;  %v8063_v15 = vld [vmem:[%s8711_s8 + $0xf24] ss:$8 sps:$4 sm:$0xff]  }
 0x312   : > { %5101 = vmatpush1.bf16.msra.mxu1 %v8007_v59  ;;  %4901 = vmatprep.subr.bf16.mxu0 %v8012_v36  ;;  %v8058_v59 = vld [vmem:[%s8711_s8 + $0xe20] ss:$8 sps:$4 sm:$0xff]  }
 0x313   : > { %5102 = vmatprep.subr.bf16.mxu1 %v8015_v32  ;;  %v8061_v36 = vld [vmem:[%s8711_s8 + $0xf20] ss:$8 sps:$4 sm:$0xff]   ;;  %v8066_v32 = vld [vmem:[%s8711_s8 + $0xe34] ss:$8 sps:$4 sm:$0xff]  }
 0x315   : > { %4902 = vmatpush1.bf16.msra.mxu0 %v8010_v33  ;;  %v9599_v33 = vpop.permute.xlu1 %6178 }
 0x316   : > { %5103 = vmatpush1.bf16.msra.mxu1 %v8013_v12  ;;  %4903 = vmatprep.subr.bf16.mxu0 %v8021_v30  ;;  %v8069_v12 = vld [vmem:[%s8711_s8 + $0xf34] ss:$8 sps:$4 sm:$0xff]   ;;  %v8064_v30 = vld [vmem:[%s8711_s8 + $0xe30] ss:$8 sps:$4 sm:$0xff]  }
 0x317   : > { %5104 = vmatprep.subr.bf16.mxu1 %v8018_v40  ;;  %v8067_v40 = vld [vmem:[%s8711_s8 + $0xf30] ss:$8 sps:$4 sm:$0xff]  }
 0x319   : > { %4904 = vmatpush1.bf16.msra.mxu0 %v8019_v41  ;;  %v8072_v41 = vld [vmem:[%s8711_s8 + $0xe44] ss:$8 sps:$4 sm:$0xff]  }
 0x31a   : > { %5105 = vmatpush1.bf16.msra.mxu1 %v8016_v50  ;;  %4905 = vmatprep.subr.bf16.mxu0 %v8024_v60  ;;  %v8075_v50 = vld [vmem:[%s8711_s8 + $0xf44] ss:$8 sps:$4 sm:$0xff]   ;;  %v9606_v60 = vpop.permute.xlu1 %6185 }
 0x31b   : > { %5106 = vmatprep.subr.bf16.mxu1 %v8027_v61  ;;  %v8070_v61 = vld [vmem:[%s8711_s8 + $0xe40] ss:$8 sps:$4 sm:$0xff]  }
 0x31d   : > { %4906 = vmatpush1.bf16.msra.mxu0 %v8022_v42  ;;  %v2123_v42 = vld [vmem:[%s8717_s27 + $0xc] sm:$0x3] }
 0x31e   : > { %5107 = vmatpush1.bf16.msra.mxu1 %v8025_v7  ;;  %4907 = vmatprep.subr.bf16.mxu0 %v8030_v26  ;;  %v8073_v7 = vld [vmem:[%s8711_s8 + $0xf40] ss:$8 sps:$4 sm:$0xff]   ;;  %v2124_v26 = vld [vmem:[%s8717_s27 + $0xe] sm:$0x3]  ;;  %v2200_v28 = vrot.slane %v2123_v42, %v8901_v54  ;;  %v2204_v48 = vrot.slane %v2123_v42, %v8906_v57 }
 0x31f   : > { %5108 = vmatprep.subr.bf16.mxu1 %v8033_v31  ;;  %v8078_v31 = vld [vmem:[%s8711_s8 + $0xe54] ss:$8 sps:$4 sm:$0xff]   ;;  %v2212_v35 = vrot.slane %v2124_v26, %v8906_v57  ;;  %v8099_v42 = vld [vmem:[%s8711_s8 + $0xf84] ss:$8 sps:$4 sm:$0xff]  }
 0x321   : > { %4908 = vmatpush1.bf16.msra.mxu0 %v8028_v27  ;;  %v8081_v27 = vld [vmem:[%s8711_s8 + $0xf54] ss:$8 sps:$4 sm:$0xff]  }
 0x322   : > { %5109 = vmatpush1.bf16.msra.mxu1 %v8031_v24  ;;  %4909 = vmatprep.subr.bf16.mxu0 %v8036_v0  ;;  %v5563_v24 = vld [vmem:[%s8719_s11 + $0xc] sm:$0x3]  ;;  %v2208_v0 = vrot.slane %v2124_v26, %v8901_v54  ;;  %v8094_v26 = vld [vmem:[%s8711_s8 + $0xe80] ss:$8 sps:$4 sm:$0xff]  }
 0x323   : > { %5110 = vmatprep.subr.bf16.mxu1 %v8039_v25  ;;  %v8076_v25 = vld [vmem:[%s8711_s8 + $0xe50] ss:$8 sps:$4 sm:$0xff]   ;;  %v5640_v51 = vrot.slane %v5563_v24, %v8901_v54  ;;  %v5644_v38 = vrot.slane %v5563_v24, %v8906_v57  ;;  %v8105_v24 = vld [vmem:[%s8711_s8 + $0xf94] ss:$8 sps:$4 sm:$0xff]  }
 0x325   : > { %4910 = vmatpush1.bf16.msra.mxu0 %v8034_v3  ;;  %v8079_v3 = vld [vmem:[%s8711_s8 + $0xf50] ss:$8 sps:$4 sm:$0xff]  }
 0x326   : > { %5111 = vmatpush1.bf16.msra.mxu1 %v8037_v37  ;;  %4911 = vmatprep.subr.bf16.mxu0 %v8042_v4  ;;  %v9623_v37 = vpop.permute.xlu1 %6192 }
 0x327   : > { %5112 = vmatprep.subr.bf16.mxu1 %v8045_v34 }
 0x329   : > { %4912 = vmatpush1.bf16.msra.mxu0 %v8040_v8 }
 0x32a   : > { %5113 = vmatpush1.bf16.msra.mxu1 %v8043_v56  ;;  %5283 = vmatprep.subr.bf16.mxu0 %v8048_v63  ;;  %v5648_v56 = vrot.slane %v5564_v1, %v8901_v54 }
 0x32b   : > { %5484 = vmatprep.subr.bf16.mxu1 %v8051_v2 }
 0x32c   : > { %4914 = vmatmul.mubr.bf16.vlgmr.msra.gmra.mrb[56].mxu0 %v1597_v14 }
 0x32d   : > { %5115 = vmatmul.mubr.bf16.vlgmr.msra.gmra.mrb[56].mxu1 %v1599_v20  ;;  %5284 = vmatpush1.bf16.msra.mxu0 %v8046_v10  ;;  %v8085_v10 = vld [vmem:[%s8711_s8 + $0xf60] ss:$8 sps:$4 sm:$0xff]   ;;  %v5652_v20 = vrot.slane %v5564_v1, %v8906_v57  ;;  %v8111_v1 = vld [vmem:[%s8711_s8 + $0xfa4] ss:$8 sps:$4 sm:$0xff]  }
 0x32e   : > { %5315 = vmatprep.mubr.bf16.mxu0 %v1602_v18  ;;  %5485 = vmatpush1.bf16.msra.mxu1 %v8049_v16 }
 0x32f   : > { %5516 = vmatprep.mubr.bf16.mxu1 %v1604_v22  ;;  %5285 = vmatprep.subr.bf16.mxu0 %v8054_v17 }
 0x330   : > { %5486 = vmatprep.subr.bf16.mxu1 %v8057_v39  ;;  %v8090_v39 = vld [vmem:[%s8711_s8 + $0xe74] ss:$8 sps:$4 sm:$0xff]  }
 0x331   : > { %5286 = vmatpush1.bf16.msra.mxu0 %v8052_v46 }
 0x332   : > { %5487 = vmatpush1.bf16.msra.mxu1 %v8055_v58  ;;  %5287 = vmatprep.subr.bf16.mxu0 %v8060_v23  ;;  %v8093_v23 = vld [vmem:[%s8711_s8 + $0xf74] ss:$8 sps:$4 sm:$0xff]  }
 0x333   : > { %5488 = vmatprep.subr.bf16.mxu1 %v8063_v15 }
 0x335   : > { %5288 = vmatpush1.bf16.msra.mxu0 %v8058_v59 }
 0x336   : > { %5489 = vmatpush1.bf16.msra.mxu1 %v8061_v36  ;;  %5289 = vmatprep.subr.bf16.mxu0 %v8066_v32  ;;  %v9634_v36 = vpop.permute.xlu1 %6199 }
 0x337   : > { %5490 = vmatprep.subr.bf16.mxu1 %v8069_v12 }
 0x339   : > { %5290 = vmatpush1.bf16.msra.mxu0 %v8064_v30  ;;  %v8088_v30 = vld [vmem:[%s8711_s8 + $0xe70] ss:$8 sps:$4 sm:$0xff]  }
 0x33a   : > { %5491 = vmatpush1.bf16.msra.mxu1 %v8067_v40  ;;  %5291 = vmatprep.subr.bf16.mxu0 %v8072_v41  ;;  %v8091_v41 = vld [vmem:[%s8711_s8 + $0xf70] ss:$8 sps:$4 sm:$0xff]  }
 0x33b   : > { %5492 = vmatprep.subr.bf16.mxu1 %v8075_v50  ;;  %v8096_v50 = vld [vmem:[%s8711_s8 + $0xe84] ss:$8 sps:$4 sm:$0xff]  }
 0x33d   : > { %5292 = vmatpush1.bf16.msra.mxu0 %v8070_v61 }
 0x33e   : > { %5493 = vmatpush1.bf16.msra.mxu1 %v8073_v7  ;;  %5293 = vmatprep.subr.bf16.mxu0 %v8078_v31  ;;  %v8097_v31 = vld [vmem:[%s8711_s8 + $0xf80] ss:$8 sps:$4 sm:$0xff]  }
 0x33f   : > { %v3709_v4 = vpop.f32.mrb[44].mxu0  ;;  %5494 = vmatprep.subr.bf16.mxu1 %v8081_v27  ;;  %v8102_v27 = vld [vmem:[%s8711_s8 + $0xe94] ss:$8 sps:$4 sm:$0xff]  }
 0x340   : > { %v3710_v34 = vadd.f32 %v3709_v4, %v2200_v28  ;;  %v3910_v9 = vpop.f32.mrb[44].mxu1  ;;  %v3711_v8 = vpop.f32.mrb[45].mxu0  ;;  %v8114_v4 = vld [vmem:[%s8711_s8 + $0xeb4] ss:$8 sps:$4 sm:$0xff]  }
 0x341   : > { %v3911_v62 = vadd.f32 %v3910_v9, %v2208_v0  ;;  %v3712_v63 = vadd.f32 %v3711_v8, %v2204_v48  ;;  %v3912_v2 = vpop.f32.mrb[45].mxu1  ;;  %v3713_v11 = vpop.f32.mrb[46].mxu0  ;;  %5294 = vmatpush1.bf16.msra.mxu0 %v8076_v25  ;;  %v8100_v0 = vld [vmem:[%s8711_s8 + $0xe90] ss:$8 sps:$4 sm:$0xff]   ;;  %v8108_v25 = vld [vmem:[%s8711_s8 + $0xea4] ss:$8 sps:$4 sm:$0xff]  }
 0x342   : > { %v5537_v14 = vmax.f32 %v3710_v34, 0.0  ;;  %v3913_v16 = vadd.f32 %v3912_v2, %v2212_v35  ;;  %v3914_v17 = vpop.f32.mrb[46].mxu1  ;;  %5495 = vmatpush1.bf16.msra.mxu1 %v8079_v3  ;;  %v3714_v18 = vpop.f32.mrb[47].mxu0  ;;  %5295 = vmatprep.subr.bf16.mxu0 %v8084_v43  ;;  %v8103_v48 = vld [vmem:[%s8711_s8 + $0xf90] ss:$8 sps:$4 sm:$0xff]  }
 0x343   : > { %v5539_v22 = vmax.f32 %v3911_v62, 0.0  ;;  %v5538_v46 = vmax.f32 %v3712_v63, 0.0  ;;  %v3915_v58 = vpop.f32.mrb[47].mxu1  ;;  %5496 = vmatprep.subr.bf16.mxu1 %v8087_v44  ;;  %v9643_v28 = vpop.permute.xlu1 %6206  ;;  %v8106_v3 = vld [vmem:[%s8711_s8 + $0xea0] ss:$8 sps:$4 sm:$0xff]   ;;  %v676_v17 = vrot.slane %v9553_v45, %v8901_v54 }
 0x344   : > { %v5761_v15 = vmul.f32 %v5640_v51, %v5537_v14  ;;  %v5540_v59 = vmax.f32 %v3913_v16, 0.0  ;;  %v8109_v43 = vld [vmem:[%s8711_s8 + $0xfa0] ss:$8 sps:$4 sm:$0xff]   ;;  %v6116_v44 = vpop.permute.xlu0 %6115  ;;  %v8117_v34 = vld [vmem:[%s8711_s8 + $0xfb4] ss:$8 sps:$4 sm:$0xff]  }
 0x345   : > { %v5763_v32 = vmul.f32 %v5648_v56, %v5539_v22  ;;  %v5762_v12 = vmul.f32 %v5644_v38, %v5538_v46  ;;  %5296 = vmatpush1.bf16.msra.mxu0 %v8082_v55  ;;  %v8112_v9 = vld [vmem:[%s8711_s8 + $0xeb0] ss:$8 sps:$4 sm:$0xff]   ;;  %v8120_v62 = vld [vmem:[%s8711_s8 + $0xec4] ss:$8 sps:$4 sm:$0xff]   ;;  %v6154_v56 = vsub.s32 7, %v8898_v53 }
 0x346   : > { %v5764_v40 = vmul.f32 %v5652_v20, %v5540_v59  ;;  %5497 = vmatpush1.bf16.msra.mxu1 %v8085_v10  ;;  %5297 = vmatprep.subr.bf16.mxu0 %v8090_v39  ;;  %v8115_v8 = vld [vmem:[%s8711_s8 + $0xfb0] ss:$8 sps:$4 sm:$0xff]   ;;  %v8123_v63 = vld [vmem:[%s8711_s8 + $0xfc4] ss:$8 sps:$4 sm:$0xff]   ;;  %v8118_v2 = vld [vmem:[%s8711_s8 + $0xec0] ss:$8 sps:$4 sm:$0xff]   ;;  %v684_v39 = vrot.slane %v9559_v29, %v8901_v54 }
 0x347   : > { %5498 = vmatprep.subr.bf16.mxu1 %v8093_v23  ;;  %v5799_v61 = vadd.f32 %v5762_v12, %v5761_v15  ;;  %v5786_v35 = vpop.xlane.xlu1 %5785  ;;  %v8121_v11 = vld [vmem:[%s8711_s8 + $0xfc0] ss:$8 sps:$4 sm:$0xff]   ;;  %v6211_v55 = vrot.slane %v9112_v13, %v6154_v56  ;;  %v8126_v10 = vld [vmem:[%s8711_s8 + $0xed4] ss:$8 sps:$4 sm:$0xff]   ;;  %v8124_v20 = vld [vmem:[%s8711_s8 + $0xed0] ss:$8 sps:$4 sm:$0xff]   ;;  %v1484_v23 = vadd.f32 %v9069_v47, %v676_v17 }
 0x348   : > { %v5802_v7 = vadd.f32 %v5764_v40, %v5763_v32  ;;  %v6232_v51 = vadd.f32 %v6116_v44, %v5786_v35  ;;  %v8129_v14 = vld [vmem:[%s8711_s8 + $0xfd4] ss:$8 sps:$4 sm:$0xff]   ;;  %v8127_v18 = vld [vmem:[%s8711_s8 + $0xfd0] ss:$8 sps:$4 sm:$0xff]   ;;  %v8132_v13 = vld [vmem:[%s8711_s8 + $0xee4] ss:$8 sps:$4 sm:$0xff]   ;;  %v1535_v59 = vadd.f32 %v9078_v6, %v684_v39 }
 0x349   : > { %5298 = vmatpush1.bf16.msra.mxu0 %v8088_v30  ;;  %5800 = vadd.xlane.f32.xlu1 %v5799_v61  ;;  %v8135_v22 = vld [vmem:[%s8711_s8 + $0xfe4] ss:$8 sps:$4 sm:$0xff]   ;;  %v8130_v58 = vld [vmem:[%s8711_s8 + $0xee0] ss:$8 sps:$4 sm:$0xff]   ;;  %v8138_v15 = vld [vmem:[%s8711_s8 + $0xef4] ss:$8 sps:$4 sm:$0xff]  }
 0x34a   : > { %5499 = vmatpush1.bf16.msra.mxu1 %v8091_v41  ;;  %5299 = vmatprep.subr.bf16.mxu0 %v8096_v50  ;;  %v7220_v38 = vadd.f32 -4.6051702, %v6232_v51  ;;  %v8133_v45 = vld [vmem:[%s8711_s8 + $0xfe0] ss:$8 sps:$4 sm:$0xff]   ;;  %v8141_v29 = vld [vmem:[%s8711_s8 + $0xff4] ss:$8 sps:$4 sm:$0xff]  }
 0x34b   : > { %5500 = vmatprep.subr.bf16.mxu1 %v8099_v42  ;;  %v8136_v32 = vld [vmem:[%s8711_s8 + $0xef0] ss:$8 sps:$4 sm:$0xff]   ;;  %v1569_v12 = vmax.f32 %v1484_v23, 0.0  ;;  %v1571_v47 = vmax.f32 %v1535_v59, 0.0  ;;  %v2127_v39 = vld [vmem:[%s8717_s27 + $0x14] sm:$0x3] }
 0x34c   : > { %v6264_v16 = vmax.f32 %v7220_v38, -20.0  ;;  %v8139_v30 = vld [vmem:[%s8711_s8 + $0xff0] ss:$8 sps:$4 sm:$0xff]   ;;  %v2236_v23 = vrot.slane %v2127_v39, %v8906_v57 }
 0x34d   : > { %5300 = vmatpush1.bf16.msra.mxu0 %v8094_v26  ;;  %5803 = vadd.xlane.f32.xlu1 %v5802_v7  ;;  %v1601_v40 = vpack.c.bf16 %v1569_v12, %v1569_v12  ;;  %v1603_v41 = vpack.c.bf16 %v1571_v47, %v1571_v47  ;;  %v2125_v6 = vld [vmem:[%s8717_s27 + $0x10] sm:$0x3]  ;;  %v2126_v50 = vld [vmem:[%s8717_s27 + $0x12] sm:$0x3] }
 0x34e   : > { %5501 = vmatpush1.bf16.msra.mxu1 %v8097_v31  ;;  %5301 = vmatprep.subr.bf16.mxu0 %v8102_v27  ;;  %v6280_v46 = vmin.f32 %v6264_v16, 2.0  ;;  %v2216_v61 = vrot.slane %v2125_v6, %v8901_v54  ;;  %v5565_v42 = vld [vmem:[%s8719_s11 + $0x10] sm:$0x3]  ;;  %v2224_v7 = vrot.slane %v2126_v50, %v8901_v54  ;;  %v2220_v26 = vrot.slane %v2125_v6, %v8906_v57  ;;  %v5566_v31 = vld [vmem:[%s8719_s11 + $0x12] sm:$0x3] }
 0x34f   : > { %5502 = vmatprep.subr.bf16.mxu1 %v8105_v24  ;;  %v2228_v27 = vrot.slane %v2126_v50, %v8906_v57 }
 0x351   : > { %5302 = vmatpush1.bf16.msra.mxu0 %v8100_v0 }
 0x352   : > { %5503 = vmatpush1.bf16.msra.mxu1 %v8103_v48  ;;  %5303 = vmatprep.subr.bf16.mxu0 %v8108_v25  ;;  %v5656_v48 = vrot.slane %v5565_v42, %v8901_v54 }
 0x353   : > { %5504 = vmatprep.subr.bf16.mxu1 %v8111_v1 }
 0x355   : > { %5304 = vmatpush1.bf16.msra.mxu0 %v8106_v3  ;;  %v5664_v3 = vrot.slane %v5566_v31, %v8901_v54 }
 0x356   : > { %5505 = vmatpush1.bf16.msra.mxu1 %v8109_v43  ;;  %5305 = vmatprep.subr.bf16.mxu0 %v8114_v4  ;;  %v5660_v4 = vrot.slane %v5565_v42, %v8906_v57 }
 0x357   : > { %5506 = vmatprep.subr.bf16.mxu1 %v8117_v34 }
 0x359   : > { %5306 = vmatpush1.bf16.msra.mxu0 %v8112_v9 }
 0x35a   : > { %5507 = vmatpush1.bf16.msra.mxu1 %v8115_v8  ;;  %5307 = vmatprep.subr.bf16.mxu0 %v8120_v62  ;;  %v5668_v8 = vrot.slane %v5566_v31, %v8906_v57 }
 0x35b   : > { %5508 = vmatprep.subr.bf16.mxu1 %v8123_v63 }
 0x35d   : > { %5308 = vmatpush1.bf16.msra.mxu0 %v8118_v2 }
 0x35e   : > { %5509 = vmatpush1.bf16.msra.mxu1 %v8121_v11  ;;  %6213 = vbcast.lane.b32.xlu1 %v6211_v55, 256 }
 0x35f   : > { %5309 = vmatprep.subr.bf16.mxu0 %v8126_v10  ;;  %5510 = vmatprep.subr.bf16.mxu1 %v8129_v14 }
 0x361   : > { %5310 = vmatpush1.bf16.msra.mxu0 %v8124_v20 }
 0x362   : > { %5511 = vmatpush1.bf16.msra.mxu1 %v8127_v18  ;;  %6315 = vperm.xlu1 %7325, %v6280_v46   ;;  %v5567_v46 = vld [vmem:[%s8719_s11 + $0x14] sm:$0x3] }
 0x363   : > { %5311 = vmatprep.subr.bf16.mxu0 %v8132_v13  ;;  %5512 = vmatprep.subr.bf16.mxu1 %v8135_v22  ;;  %v2128_v13 = vld [vmem:[%s8717_s27 + $0x16] sm:$0x3]  ;;  %v2232_v22 = vrot.slane %v2127_v39, %v8901_v54  ;;  %v5676_v6 = vrot.slane %v5567_v46, %v8906_v57 }
 0x365   : > { %5312 = vmatpush1.bf16.msra.mxu0 %v8130_v58  ;;  %v2240_v58 = vrot.slane %v2128_v13, %v8901_v54 }
 0x366   : > { %5513 = vmatpush1.bf16.msra.mxu1 %v8133_v45  ;;  %5313 = vmatprep.subr.bf16.mxu0 %v8138_v15  ;;  %v5568_v45 = vld [vmem:[%s8719_s11 + $0x16] sm:$0x3]  ;;  %v2244_v15 = vrot.slane %v2128_v13, %v8906_v57 }
 0x367   : > { %5514 = vmatprep.subr.bf16.mxu1 %v8141_v29 }
 0x369   : > { %5314 = vmatpush1.bf16.msra.mxu0 %v8136_v32  ;;  %v5672_v32 = vrot.slane %v5567_v46, %v8901_v54 }
 0x36a   : > { %5515 = vmatpush1.bf16.msra.mxu1 %v8139_v30 }
 0x36c   : > { %5316 = vmatmul.mubr.bf16.vlgmr.msra.gmra.mrb[60].mxu0 %v1601_v40  ;;  %v5680_v40 = vrot.slane %v5568_v45, %v8901_v54 }
 0x36d   : > { %5517 = vmatmul.mubr.bf16.vlgmr.msra.gmra.mrb[60].mxu1 %v1603_v41 }
 0x37f   : > { %v4111_v24 = vpop.f32.mrb[48].mxu0 }
 0x380   : > { %v4112_v0 = vadd.f32 %v4111_v24, %v2216_v61  ;;  %v4312_v25 = vpop.f32.mrb[48].mxu1  ;;  %v4113_v1 = vpop.f32.mrb[49].mxu0 }
 0x381   : > { %v4313_v35 = vadd.f32 %v4312_v25, %v2224_v7  ;;  %v4114_v43 = vadd.f32 %v4113_v1, %v2220_v26  ;;  %v4314_v44 = vpop.f32.mrb[49].mxu1  ;;  %v4115_v34 = vpop.f32.mrb[50].mxu0  ;;  %v5684_v26 = vrot.slane %v5568_v45, %v8906_v57 }
 0x382   : > { %v5541_v51 = vmax.f32 %v4112_v0, 0.0  ;;  %v4315_v9 = vadd.f32 %v4314_v44, %v2228_v27  ;;  %v4316_v62 = vpop.f32.mrb[50].mxu1  ;;  %v4116_v63 = vpop.f32.mrb[51].mxu0 }
 0x383   : > { %v5543_v38 = vmax.f32 %v4313_v35, 0.0  ;;  %v5542_v2 = vmax.f32 %v4114_v43, 0.0  ;;  %v4317_v11 = vpop.f32.mrb[51].mxu1  ;;  %v9706_v34 = vpop.permute.xlu0 %6122  ;;  %v5569_v63 = vld [vmem:[%s8719_s11 + $0x18] sm:$0x3] }
 0x384   : > { %v5765_v55 = vmul.f32 %v5656_v48, %v5541_v51  ;;  %v5544_v10 = vmax.f32 %v4315_v9, 0.0  ;;  %v2129_v9 = vld [vmem:[%s8717_s27 + $0x18] sm:$0x3]  ;;  %v5570_v11 = vld [vmem:[%s8719_s11 + $0x1a] sm:$0x3]  ;;  %v5692_v46 = vrot.slane %v5569_v63, %v8906_v57 }
 0x385   : > { %v5767_v14 = vmul.f32 %v5664_v3, %v5543_v38  ;;  %v5766_v16 = vmul.f32 %v5660_v4, %v5542_v2  ;;  %v2248_v62 = vrot.slane %v2129_v9, %v8901_v54  ;;  %v2252_v2 = vrot.slane %v2129_v9, %v8906_v57 }
 0x386   : > { %v5768_v20 = vmul.f32 %v5668_v8, %v5544_v10  ;;  %v2130_v8 = vld [vmem:[%s8717_s27 + $0x1a] sm:$0x3]  ;;  %v5696_v13 = vrot.slane %v5570_v11, %v8901_v54 }
 0x387   : > { %v5805_v17 = vadd.f32 %v5766_v16, %v5765_v55  ;;  %v9708_v51 = vpop.permute.xlu0 %6129  ;;  %v2256_v38 = vrot.slane %v2130_v8, %v8901_v54  ;;  %v2260_v55 = vrot.slane %v2130_v8, %v8906_v57 }
 0x388   : > { %v5808_v18 = vadd.f32 %v5768_v20, %v5767_v14  ;;  %v5688_v20 = vrot.slane %v5569_v63, %v8901_v54 }
 0x389   : > { %5806 = vadd.xlane.f32.xlu0 %v5805_v17 }
 0x38b   : > { %v9718_v10 = vpop.permute.xlu0 %6136 }
 0x38d   : > { %5809 = vadd.xlane.f32.xlu0 %v5808_v18 }
 0x3bf   : > { %v4513_v59 = vpop.f32.mrb[52].mxu0 }
 0x3c0   : > { %v4514_v29 = vadd.f32 %v4513_v59, %v2232_v22  ;;  %v4714_v12 = vpop.f32.mrb[52].mxu1  ;;  %v4515_v30 = vpop.f32.mrb[53].mxu0  ;;  %v5700_v59 = vrot.slane %v5570_v11, %v8906_v57 }
 0x3c1   : > { %v4715_v47 = vadd.f32 %v4714_v12, %v2240_v58  ;;  %v4516_v41 = vadd.f32 %v4515_v30, %v2236_v23  ;;  %v4716_v50 = vpop.f32.mrb[53].mxu1  ;;  %v4517_v61 = vpop.f32.mrb[54].mxu0 }
 0x3c2   : > { %v5545_v42 = vmax.f32 %v4514_v29, 0.0  ;;  %v4717_v7 = vadd.f32 %v4716_v50, %v2244_v15  ;;  %v4718_v31 = vpop.f32.mrb[54].mxu1  ;;  %v4518_v27 = vpop.f32.mrb[55].mxu0 }
 0x3c3   : > { %v5547_v24 = vmax.f32 %v4715_v47, 0.0  ;;  %v5546_v0 = vmax.f32 %v4516_v41, 0.0  ;;  %v4719_v48 = vpop.f32.mrb[55].mxu1  ;;  %v9724_v61 = vpop.permute.xlu0 %6143 }
 0x3c4   : > { %v5769_v25 = vmul.f32 %v5672_v32, %v5545_v42  ;;  %v5548_v1 = vmax.f32 %v4717_v7, 0.0 }
 0x3c5   : > { %v5771_v35 = vmul.f32 %v5680_v40, %v5547_v24  ;;  %v5770_v3 = vmul.f32 %v5676_v6, %v5546_v0 }
 0x3c6   : > { %v5772_v43 = vmul.f32 %v5684_v26, %v5548_v1 }
 0x3c7   : > { %v5811_v4 = vadd.f32 %v5770_v3, %v5769_v25  ;;  %v9726_v31 = vpop.permute.xlu0 %6150  ;;  %v2131_v3 = vld [vmem:[%s8717_s27 + $0x1c] sm:$0x3] }
 0x3c8   : > { %v5814_v44 = vadd.f32 %v5772_v43, %v5771_v35  ;;  %v2132_v43 = vld [vmem:[%s8717_s27 + $0x1e] sm:$0x3]  ;;  %v2268_v8 = vrot.slane %v2131_v3, %v8906_v57 }
 0x3c9   : > { %5812 = vadd.xlane.f32.xlu0 %v5811_v4  ;;  %v2264_v4 = vrot.slane %v2131_v3, %v8901_v54  ;;  %v2272_v9 = vrot.slane %v2132_v43, %v8901_v54  ;;  %v2276_v63 = vrot.slane %v2132_v43, %v8906_v57 }
 0x3cb   : > { %v5783_v27 = vpop.xlane.xlu0 %5782 }
 0x3cd   : > { %5815 = vadd.xlane.f32.xlu0 %v5814_v44  ;;  %v5571_v44 = vld [vmem:[%s8719_s11 + $0x1c] sm:$0x3] }
 0x3ff   : > { %v4915_v14 = vpop.f32.mrb[56].mxu0 }
 0x400   : > { %v4916_v16 = vadd.f32 %v4915_v14, %v2248_v62  ;;  %v5116_v17 = vpop.f32.mrb[56].mxu1  ;;  %v4917_v18 = vpop.f32.mrb[57].mxu0  ;;  %v5572_v62 = vld [vmem:[%s8719_s11 + $0x1e] sm:$0x3] }
 0x401   : > { %v5117_v39 = vadd.f32 %v5116_v17, %v2256_v38  ;;  %v4918_v22 = vadd.f32 %v4917_v18, %v2252_v2  ;;  %v5118_v58 = vpop.f32.mrb[57].mxu1  ;;  %v4919_v23 = vpop.f32.mrb[58].mxu0  ;;  %v5708_v17 = vrot.slane %v5571_v44, %v8906_v57 }
 0x402   : > { %v5549_v45 = vmax.f32 %v4916_v16, 0.0  ;;  %v5119_v15 = vadd.f32 %v5118_v58, %v2260_v55  ;;  %v5120_v29 = vpop.f32.mrb[58].mxu1  ;;  %v4920_v32 = vpop.f32.mrb[59].mxu0  ;;  %v5712_v16 = vrot.slane %v5572_v62, %v8901_v54 }
 0x403   : > { %v5551_v12 = vmax.f32 %v5117_v39, 0.0  ;;  %v5550_v30 = vmax.f32 %v4918_v22, 0.0  ;;  %v5121_v47 = vpop.f32.mrb[59].mxu1 }
 0x404   : > { %v5773_v40 = vmul.f32 %v5688_v20, %v5549_v45  ;;  %v5552_v41 = vmax.f32 %v5119_v15, 0.0 }
 0x405   : > { %v5775_v6 = vmul.f32 %v5696_v13, %v5551_v12  ;;  %v5774_v50 = vmul.f32 %v5692_v46, %v5550_v30  ;;  %v5716_v46 = vrot.slane %v5572_v62, %v8906_v57 }
 0x406   : > { %v5776_v42 = vmul.f32 %v5700_v59, %v5552_v41 }
 0x407   : > { %v5817_v7 = vadd.f32 %v5774_v50, %v5773_v40  ;;  %v6231_v50 = vadd.f32 %v9570_v49, %v5783_v27  ;;  %v6155_v49 = vrot.slane %v9009_v19, %v6154_v56 }
 0x408   : > { %v5820_v26 = vadd.f32 %v5776_v42, %v5775_v6  ;;  %v5789_v42 = vpop.xlane.xlu1 %5788 }
 0x409   : > { %5818 = vadd.xlane.f32.xlu0 %v5817_v7 }
 0x40d   : > { %5821 = vadd.xlane.f32.xlu0 %v5820_v26 }
 0x416   : > { %v5807_v24 = vpop.xlane.xlu0 %5806 }
 0x41a   : > { %v5810_v0 = vpop.xlane.xlu0 %5809 }
 0x41b   : > { %v6240_v48 = vadd.f32 %v9590_v21, %v5810_v0  ;;  %v5704_v21 = vrot.slane %v5571_v44, %v8901_v54  ;;  %v6233_v44 = vadd.f32 %v9706_v34, %v5789_v42 }
 0x41d   : > { %v7228_v25 = vadd.f32 -4.6051702, %v6240_v48  ;;  %v7219_v48 = vadd.f32 -4.6051702, %v6231_v50 }
 0x41f   : > { %v6272_v1 = vmax.f32 %v7228_v25, -20.0  ;;  %v6239_v25 = vadd.f32 %v9583_v5, %v5807_v24  ;;  %v6263_v43 = vmax.f32 %v7219_v48, -20.0 }
 0x421   : > { %v6288_v35 = vmin.f32 %v6272_v1, 2.0  ;;  %v6279_v27 = vmin.f32 %v6263_v43, 2.0 }
 0x423   : > { %6339 = vperm.xlu1 %7325, %v6288_v35  }
 0x43f   : > { %v5317_v38 = vpop.f32.mrb[60].mxu0 }
 0x440   : > { %v5318_v2 = vadd.f32 %v5317_v38, %v2264_v4  ;;  %v5518_v11 = vpop.f32.mrb[60].mxu1  ;;  %v5319_v55 = vpop.f32.mrb[61].mxu0 }
 0x441   : > { %v5519_v14 = vadd.f32 %v5518_v11, %v2272_v9  ;;  %v5320_v20 = vadd.f32 %v5319_v55, %v2268_v8  ;;  %v5520_v18 = vpop.f32.mrb[61].mxu1  ;;  %v5321_v39 = vpop.f32.mrb[62].mxu0  ;;  %v7221_v8 = vadd.f32 -4.6051702, %v6233_v44 }
 0x442   : > { %v5553_v13 = vmax.f32 %v5318_v2, 0.0  ;;  %v5521_v22 = vadd.f32 %v5520_v18, %v2276_v63  ;;  %v5522_v58 = vpop.f32.mrb[62].mxu1  ;;  %v5322_v23 = vpop.f32.mrb[63].mxu0 }
 0x443   : > { %v5555_v45 = vmax.f32 %v5519_v14, 0.0  ;;  %v5554_v15 = vmax.f32 %v5320_v20, 0.0  ;;  %v5523_v59 = vpop.f32.mrb[63].mxu1  ;;  %v5792_v4 = vpop.xlane.xlu1 %5791  ;;  %v6265_v62 = vmax.f32 %v7221_v8, -20.0 }
 0x444   : > { %v5777_v29 = vmul.f32 %v5704_v21, %v5553_v13  ;;  %v5556_v32 = vmax.f32 %v5521_v22, 0.0  ;;  %v6234_v5 = vadd.f32 %v9708_v51, %v5792_v4 }
 0x445   : > { %v5779_v12 = vmul.f32 %v5712_v16, %v5555_v45  ;;  %v5778_v30 = vmul.f32 %v5708_v17, %v5554_v15  ;;  %v6281_v21 = vmin.f32 %v6265_v62, 2.0 }
 0x446   : > { %v5780_v47 = vmul.f32 %v5716_v46, %v5556_v32  ;;  %v7222_v63 = vadd.f32 -4.6051702, %v6234_v5 }
 0x447   : > { %v5823_v54 = vadd.f32 %v5778_v30, %v5777_v29 }
 0x448   : > { %v5826_v40 = vadd.f32 %v5780_v47, %v5779_v12  ;;  %v6266_v11 = vmax.f32 %v7222_v63, -20.0 }
 0x449   : > { %5824 = vadd.xlane.f32.xlu0 %v5823_v54 }
 0x44a   : > { %v6282_v14 = vmin.f32 %v6266_v11, 2.0 }
 0x44d   : > { %5827 = vadd.xlane.f32.xlu0 %v5826_v40 }
 0x456   : > { %v5813_v41 = vpop.xlane.xlu0 %5812 }
 0x457   : > { %v6241_v6 = vadd.f32 %v9599_v33, %v5813_v41  ;;  %v7227_v33 = vadd.f32 -4.6051702, %v6239_v25 }
 0x459   : > { %v7229_v57 = vadd.f32 -4.6051702, %v6241_v6  ;;  %v6271_v24 = vmax.f32 %v7227_v33, -20.0 }
 0x45a   : > { %v5816_v7 = vpop.xlane.xlu0 %5815 }
 0x45b   : > { %v6273_v26 = vmax.f32 %v7229_v57, -20.0  ;;  %v6242_v0 = vadd.f32 %v9606_v60, %v5816_v7  ;;  %v5795_v60 = vpop.xlane.xlu1 %5794  ;;  %v6287_v34 = vmin.f32 %v6271_v24, 2.0 }
 0x45c   : > { %v6235_v38 = vadd.f32 %v9718_v10, %v5795_v60 }
 0x45d   : > { %v6289_v1 = vmin.f32 %v6273_v26, 2.0  ;;  %v7230_v35 = vadd.f32 -4.6051702, %v6242_v0 }
 0x45e   : > { %v7223_v55 = vadd.f32 -4.6051702, %v6235_v38 }
 0x45f   : > { %v6274_v3 = vmax.f32 %v7230_v35, -20.0  ;;  %6342 = vperm.xlu1 %7325, %v6289_v1   ;;  %v5798_v2 = vpop.xlane.xlu1 %5797 }
 0x460   : > { %v6236_v19 = vadd.f32 %v9724_v61, %v5798_v2  ;;  %v6267_v16 = vmax.f32 %v7223_v55, -20.0 }
 0x461   : > { %v6290_v9 = vmin.f32 %v6274_v3, 2.0 }
 0x462   : > { %v7224_v20 = vadd.f32 -4.6051702, %v6236_v19  ;;  %v6283_v17 = vmin.f32 %v6267_v16, 2.0 }
 0x463   : > { %6157 = vbcast.lane.b32.xlu0 %v6155_v49, 256  ;;  %6345 = vperm.xlu1 %7325, %v6290_v9   ;;  %v5801_v56 = vpop.xlane.xlu1 %5800  ;;  %v6360_v9 = vand.u32 127, %v561_v52 }
 0x464   : > { %v6237_v51 = vadd.f32 %v9726_v31, %v5801_v56  ;;  %v6268_v18 = vmax.f32 %v7224_v20, -20.0 }
 0x465   : > { %v6363_v60 = vsub.s32 %v6360_v9, %v8898_v53 }
 0x466   : > { %v7225_v39 = vadd.f32 -4.6051702, %v6237_v51  ;;  %v6284_v10 = vmin.f32 %v6268_v18, 2.0 }
 0x467   : > { %6312 = vperm.xlu0 %7324, %v6279_v27   ;;  %v5804_v12 = vpop.xlane.xlu1 %5803 }
 0x468   : > { %v6269_v13 = vmax.f32 %v7225_v39, -20.0 }
 0x46a   : > { %v6285_v22 = vmin.f32 %v6269_v13, 2.0 }
 0x46b   : > { %6336 = vperm.xlu0 %7324, %v6287_v34   ;;  %v6214_v40 = vpop.permute.xlu1 %6213 }
 0x46f   : > { %6318 = vperm.xlu0 %7324, %v6281_v21  }
 0x473   : > { %6321 = vperm.xlu0 %7324, %v6282_v14  }
 0x477   : > { %6324 = vperm.xlu0 %7324, %v6283_v17  }
 0x47b   : > { %6327 = vperm.xlu0 %7324, %v6284_v10  }
 0x47f   : > { %6330 = vperm.xlu0 %7324, %v6285_v22  }
 0x496   : > { %v5819_v46 = vpop.xlane.xlu0 %5818 }
 0x497   : > { %v6243_v61 = vadd.f32 %v9623_v37, %v5819_v46 }
 0x499   : > { %v7231_v58 = vadd.f32 -4.6051702, %v6243_v61 }
 0x49a   : > { %v5822_v23 = vpop.xlane.xlu0 %5821 }
 0x49b   : > { %v6275_v45 = vmax.f32 %v7231_v58, -20.0  ;;  %v6244_v15 = vadd.f32 %v9634_v36, %v5822_v23 }
 0x49d   : > { %v6291_v59 = vmin.f32 %v6275_v45, 2.0  ;;  %v7232_v31 = vadd.f32 -4.6051702, %v6244_v15 }
 0x49f   : > { %v6276_v29 = vmax.f32 %v7232_v31, -20.0  ;;  %6348 = vperm.xlu1 %7325, %v6291_v59  }
 0x4a1   : > { %v6292_v32 = vmin.f32 %v6276_v29, 2.0 }
 0x4a3   : > { %6351 = vperm.xlu1 %7325, %v6292_v32  }
 0x4d6   : > { %v5825_v30 = vpop.xlane.xlu0 %5824 }
 0x4d7   : > { %v6245_v47 = vadd.f32 %v9643_v28, %v5825_v30  ;;  %v6316_v28 = vpop.permute.xlu1 %6315 }
 0x4d8   : > { %v6368_v55 = vrot.slane %v6316_v28, %v6363_v60 }
 0x4d9   : > { %v7233_v54 = vadd.f32 -4.6051702, %v6245_v47 }
 0x4da   : > { %v5828_v41 = vpop.xlane.xlu0 %5827 }
 0x4db   : > { %v6277_v6 = vmax.f32 %v7233_v54, -20.0  ;;  %v6246_v37 = vadd.f32 %v6214_v40, %v5828_v41  ;;  %v6340_v3 = vpop.permute.xlu1 %6339 }
 0x4dc   : > { %v6400_v5 = vrot.slane %v6340_v3, %v6363_v60 }
 0x4dd   : > { %v6293_v50 = vmin.f32 %v6277_v6, 2.0  ;;  %v7234_v57 = vadd.f32 -4.6051702, %v6246_v37 }
 0x4de   : > { %v6158_v42 = vpop.permute.xlu0 %6157 }
 0x4df   : > { %v6278_v7 = vmax.f32 %v7234_v57, -20.0  ;;  %v6238_v36 = vadd.f32 %v6158_v42, %v5804_v12  ;;  %6354 = vperm.xlu1 %7325, %v6293_v50   ;;  %v6343_v4 = vpop.permute.xlu1 %6342 }
 0x4e0   : > { %v6404_v38 = vrot.slane %v6343_v4, %v6363_v60 }
 0x4e1   : > { %v6294_v26 = vmin.f32 %v6278_v7, 2.0  ;;  %v7226_v0 = vadd.f32 -4.6051702, %v6238_v36 }
 0x4e3   : > { %v6270_v48 = vmax.f32 %v7226_v0, -20.0  ;;  %6357 = vperm.xlu1 %7325, %v6294_v26   ;;  %v6346_v33 = vpop.permute.xlu1 %6345 }
 0x4e4   : > { %v6408_v21 = vrot.slane %v6346_v33, %v6363_v60 }
 0x4e5   : > { %v6286_v25 = vmin.f32 %v6270_v48, 2.0 }
 0x4e6   : > { %v6313_v1 = vpop.permute.xlu0 %6312 }
 0x4e7   : > { %6333 = vperm.xlu0 %7324, %v6286_v25   ;;  %v6364_v11 = vrot.slane %v6313_v1, %v6363_v60 }
 0x4e9   : > { %v6426_v39 = vsel %vm6425_vm1, %v6368_v55, %v6364_v11 }
 0x4ea   : > { %v6337_v35 = vpop.permute.xlu0 %6336 }
 0x4eb   : > { %v6396_v8 = vrot.slane %v6337_v35, %v6363_v60 }
 0x4ed   : > { %v6439_v62 = vsel %vm6425_vm1, %v6400_v5, %v6396_v8 }
 0x4ee   : > { %v6319_v43 = vpop.permute.xlu0 %6318  ;;  %v6440_v34 = vsel %vm6427_vm2, %v6404_v38, %v6439_v62 }
 0x4ef   : > { %v6372_v19 = vrot.slane %v6319_v43, %v6363_v60  ;;  %v6441_v20 = vsel %vm6429_vm3, %v6408_v21, %v6440_v34 }
 0x4f1   : > { %v6428_v46 = vsel %vm6427_vm2, %v6372_v19, %v6426_v39 }
 0x4f2   : > { %v6322_v44 = vpop.permute.xlu0 %6321 }
 0x4f3   : > { %v6376_v14 = vrot.slane %v6322_v44, %v6363_v60 }
 0x4f5   : > { %v6430_v23 = vsel %vm6429_vm3, %v6376_v14, %v6428_v46 }
 0x4f6   : > { %v6325_v27 = vpop.permute.xlu0 %6324 }
 0x4f7   : > { %v6380_v51 = vrot.slane %v6325_v27, %v6363_v60 }
 0x4f9   : > { %v6432_v15 = vsel %vm6431_vm4, %v6380_v51, %v6430_v23 }
 0x4fa   : > { %v6328_v63 = vpop.permute.xlu0 %6327 }
 0x4fb   : > { %v6384_v10 = vrot.slane %v6328_v63, %v6363_v60 }
 0x4fd   : > { %v6434_v31 = vsel %vm6433_vm5, %v6384_v10, %v6432_v15 }
 0x4fe   : > { %v6331_v16 = vpop.permute.xlu0 %6330 }
 0x4ff   : > { %v6388_v61 = vrot.slane %v6331_v16, %v6363_v60 }
 0x501   : > { %v6436_v32 = vsel %vm6435_vm6, %v6388_v61, %v6434_v31 }
 0x51e   : > { %v6349_v49 = vpop.permute.xlu1 %6348 }
 0x51f   : > { %v6412_v2 = vrot.slane %v6349_v49, %v6363_v60 }
 0x521   : > { %v6442_v17 = vsel %vm6431_vm4, %v6412_v2, %v6441_v20 }
 0x522   : > { %v6352_v24 = vpop.permute.xlu1 %6351 }
 0x523   : > { %v6416_v53 = vrot.slane %v6352_v24, %v6363_v60 }
 0x525   : > { %v6443_v13 = vsel %vm6433_vm5, %v6416_v53, %v6442_v17 }
 0x55e   : > { %v6355_v52 = vpop.permute.xlu1 %6354 }
 0x55f   : > { %v6420_v56 = vrot.slane %v6355_v52, %v6363_v60 }
 0x561   : > { %v6444_v58 = vsel %vm6435_vm6, %v6420_v56, %v6443_v13 }
 0x562   : > { %v6358_v18 = vpop.permute.xlu1 %6357 }
 0x563   : > { %v6424_v22 = vrot.slane %v6358_v18, %v6363_v60 }
 0x565   : > { %v6445_v45 = vsel %vm6437_vm7, %v6424_v22, %v6444_v58 }
 0x566   : > { %6450 = vst.msk [vmem:[%s494_s1 + $0x8] sm:$0xff] %vm6448_vm8, %v6445_v45  ;;  %v6334_v59 = vpop.permute.xlu0 %6333 }
 0x567   : > { %v6392_v29 = vrot.slane %v6334_v59, %v6363_v60 }
 0x569   : > { %v6438_v12 = vsel %vm6437_vm7, %v6392_v29, %v6436_v32 }
 0x56a   : > { %6449 = vst.msk [vmem:[%s494_s1] sm:$0xff] %vm6448_vm8, %v6438_v12 }
 0x56b PF: > { %s9823_s19 = sld [smem:[#allocation16_spill]]  ;;  %p24_p7 = scmp.ge.s32.totalorder %s8441_s28, 4  }
 0x56c   : > { %s9824_s24 = smov %s8358_s25  ;;  %s9825_s25 = smov %s8362_s26 }
 0x56d   : > { %s9827_s27 = smov %s8441_s28  ;;  %26 = sbr.rel (!%p24_p7) target bundleno = 11 (0xb), region = 144 }
 0x571   : > { %s9826_s26 = smov %s9823_s19 }
 0x574   :  { %6472 = vsyncpa [#allocation3], 1 }
 0x575   :  { %6474 = vsyncpa [#allocation3 + $0x1], 1 }
 0x576   :  { %6475 = vsyncpa [#allocation5], 1 }
 0x577   :  { %6477 = vsyncpa [#allocation5 + $0x1], 1 }
 0x578   :  { %6478 = vsyncpa [#allocation8], 1 }
 0x579   :  { %6480 = vsyncpa [#allocation8 + $0x1], 1 }
 0x57a   :  { %6481 = vsyncpa [#allocation11], 1 }
 0x57b   :  { %6483 = vsyncpa [#allocation11 + $0x1], 1 }

</bundles_post_ra>
